<compile_context>
chip_gen: v7x
topology: tpu7x:2x2x1
jax: 0.10.0
libtpu: 0.0.40
codegen_flags: <defaults>
</compile_context>

<pallas_src>
import jax
import jax.numpy as jnp
from jax.experimental import pallas as pl
from jax.experimental.pallas import tpu as pltpu


# ----------------------------------------------------------------------------
# Kernel helpers
# ----------------------------------------------------------------------------
def _zero_border(ref):
    """Zero the 1-pixel spatial border of a (rows, cols, C) VMEM ref."""
    R, Ccol, Cc = ref.shape
    z_row = jnp.zeros((1, Ccol, Cc), ref.dtype)
    z_col = jnp.zeros((R, 1, Cc), ref.dtype)
    ref[0:1, :, :] = z_row
    ref[R - 1:R, :, :] = z_row
    ref[:, 0:1, :] = z_col
    ref[:, Ccol - 1:Ccol, :] = z_col


def _make_block_kernel(H, W, Cin, C, with_pool):
    """Fused Block kernel: conv3x3+ReLU -> conv3x3 (+ pre-padded 2x2 max-pool)."""
    HW = H * W
    Ho, Wo = H // 2, W // 2

    def conv3x3(xpad, w_ref, b_ref, cin):
        # xpad: (H+2, W+2, cin) f32 value with a zero halo.
        # Build the im2col matrix once (K = 9*cin) and hit the MXU with a
        # single dot: one f32->bf16 cast at the MXU boundary, f32 accumulation.
        taps = []
        for dh in range(3):
            for dw in range(3):
                taps.append(xpad[dh:dh + H, dw:dw + W, :].reshape(HW, cin))
        k = jnp.concatenate(taps, axis=-1)                    # (HW, 9*cin) f32
        y = jnp.dot(k.astype(jnp.bfloat16), w_ref[...],
                    preferred_element_type=jnp.float32)       # (HW, C) f32
        return y + b_ref[...]

    def kernel(xp_ref, w1_ref, b1_ref, w2_ref, b2_ref, *refs):
        # xp_ref : (H+2, W+2, Cin) f32 zero-padded input tile
        # w*_ref : (9*Cin, C) / (9*C, C) bf16 ; b*_ref: (1, C) f32
        if with_pool:
            full_ref, pool_ref, mid_ref = refs
        else:
            (full_ref, mid_ref), pool_ref = refs, None

        # ---- conv1 + bias + ReLU (single MXU dot) ---------------------------
        y1 = jnp.maximum(conv3x3(xp_ref[...], w1_ref, b1_ref, Cin), 0.0)

        # Stage conv1's activation in a zero-padded VMEM scratch (conv2 halo);
        # it never touches HBM.  Only the halo frame is re-zeroed (per step:
        # the scratch is per-core under "parallel" batch, and the interior is
        # fully overwritten below, so the frame is the only state that matters).
        _zero_border(mid_ref)
        mid_ref[1:H + 1, 1:W + 1, :] = y1.reshape(H, W, C)

        # ---- conv2 + bias (single MXU dot) ----------------------------------
        y2 = conv3x3(mid_ref[...], w2_ref, b2_ref, C)
        full_ref[...] = y2.reshape(H, W, C).astype(full_ref.dtype)

        # ---- fused 2x2 max-pool epilogue, emitted PRE-PADDED ---------------
        # The next Block consumes pool_ref directly: no host-side pad /
        # transpose between blocks.  The strided reads hit the VMEM-resident
        # output block (not HBM).
        if pool_ref is not None:
            _zero_border(pool_ref)
            even = full_ref[:, pl.ds(0, Wo, stride=2), :]      # (H, Wo, C)
            odd = full_ref[:, pl.ds(1, Wo, stride=2), :]       # (H, Wo, C)
            xw = jnp.maximum(even, odd).reshape(Ho, 2, Wo, C)
            pool_ref[1:Ho + 1, 1:Wo + 1, :] = (
                jnp.max(xw, axis=1).astype(pool_ref.dtype))

    return kernel


# ----------------------------------------------------------------------------
# One fused Block launch
# ----------------------------------------------------------------------------
def fused_block(xp, prep, with_pool):
    """One U-Net Block (conv-ReLU-conv) with an optional fused 2x2 max-pool.

    xp: (B, H+2, W+2, Cin) f32 zero-padded NHWC input.
    Returns (feature (B,H,W,C) f32 NHWC,
             pre-padded pooled (B,Ho+2,Wo+2,C) f32 or None)."""
    B, Hp, Wp, Cin = xp.shape
    H, W = Hp - 2, Wp - 2
    C = prep["w1"].shape[-1]
    Ho, Wo = H // 2, W // 2

    kernel = _make_block_kernel(H, W, Cin, C, with_pool)

    full_shape = jax.ShapeDtypeStruct((B, H, W, C), jnp.float32)
    full_spec = pl.BlockSpec((None, H, W, C), lambda b: (b, 0, 0, 0))
    if with_pool:
        out_shape = (full_shape,
                     jax.ShapeDtypeStruct((B, Ho + 2, Wo + 2, C), jnp.float32))
        out_specs = (full_spec,
                     pl.BlockSpec((None, Ho + 2, Wo + 2, C),
                                  lambda b: (b, 0, 0, 0)))
    else:
        out_shape = full_shape
        out_specs = full_spec

    outs = pl.pallas_call(
        kernel,
        out_shape=out_shape,
        grid=(B,),
        in_specs=[
            pl.BlockSpec((None, Hp, Wp, Cin), lambda b: (b, 0, 0, 0)),
            pl.BlockSpec(prep["w1"].shape, lambda b: (0, 0)),
            pl.BlockSpec(prep["b1"].shape, lambda b: (0, 0)),
            pl.BlockSpec(prep["w2"].shape, lambda b: (0, 0)),
            pl.BlockSpec(prep["b2"].shape, lambda b: (0, 0)),
        ],
        out_specs=out_specs,
        scratch_shapes=[pltpu.VMEM((Hp, Wp, C), jnp.float32)],
        compiler_params=pltpu.CompilerParams(
            dimension_semantics=("parallel",),
            vmem_limit_bytes=64 * 1024 * 1024),
    )(xp, prep["w1"], prep["b1"], prep["w2"], prep["b2"])

    if with_pool:
        return outs[0], outs[1]
    return outs, None


# ----------------------------------------------------------------------------
# Encoder forward (matching the PyTorch module semantics)
# ----------------------------------------------------------------------------
def encoder_forward(x_nchw, kernel_params):
    """Returns the list of per-block (pre-pool) features, each NCHW (f32)."""
    # NCHW -> zero-padded NHWC once at the API boundary.
    xp = jnp.pad(jnp.transpose(x_nchw, (0, 2, 3, 1)),
                 ((0, 0), (1, 1), (1, 1), (0, 0)))
    ftrs = []
    n = len(kernel_params)
    for i, prep in enumerate(kernel_params):
        # PyTorch pools after every block, but the final pooled tensor is
        # never returned, so the last pool is skipped (identical semantics).
        feat, xp = fused_block(xp, prep, with_pool=(i + 1 < n))
        ftrs.append(jnp.transpose(feat, (0, 3, 1, 2)))   # API boundary: NCHW
    return ftrs


# ----------------------------------------------------------------------------
# Parameters
# ----------------------------------------------------------------------------
def init_block_params(key, in_ch, out_ch):
    """Shapes from nn.Conv2d(in, out, 3, padding=1); HWIO f32 weights."""
    k1, k2, k3, k4 = jax.random.split(key, 4)
    s1 = 1.0 / jnp.sqrt(jnp.float32(in_ch * 9))
    s2 = 1.0 / jnp.sqrt(jnp.float32(out_ch * 9))
    return {
        "w1": jax.random.uniform(k1, (3, 3, in_ch, out_ch), jnp.float32, -s1, s1),
        "b1": jax.random.uniform(k2, (out_ch,), jnp.float32, -s1, s1),
        "w2": jax.random.uniform(k3, (3, 3, out_ch, out_ch), jnp.float32, -s2, s2),
        "b2": jax.random.uniform(k4, (out_ch,), jnp.float32, -s2, s2),
    }


def prepare_block_params(p):
    """One-time conversion to kernel layout: weights flattened to (9*Cin, Cout)
    and cast to bf16 once (not per forward); biases as (1, Cout) f32 rows."""
    kh, kw, cin, cout = p["w1"].shape
    return {
        "w1": p["w1"].reshape(kh * kw * cin, cout).astype(jnp.bfloat16),
        "b1": p["b1"].reshape(1, cout).astype(jnp.float32),
        "w2": p["w2"].reshape(kh * kw * cout, cout).astype(jnp.bfloat16),
        "b2": p["b2"].reshape(1, cout).astype(jnp.float32),
    }


if __name__ == "__main__":
    key = jax.random.PRNGKey(0)
    chs = (4, 16, 32)          # Encoder(chs) -> two Blocks: 4->16, 16->32
    B, H, W = 2, 16, 16

    kx, kp = jax.random.split(key)
    x = jax.random.normal(kx, (B, chs[0], H, W), jnp.float32)   # NCHW input
    pkeys = jax.random.split(kp, len(chs) - 1)
    params = [init_block_params(pkeys[i], chs[i], chs[i + 1])
              for i in range(len(chs) - 1)]
    kernel_params = [prepare_block_params(p) for p in params]   # bf16, once

    ftrs = encoder_forward(x, kernel_params)
    ftrs = [jax.block_until_ready(f) for f in ftrs]

    # --- precision-matched pure-JAX reference (bf16 operands, f32 accum) ----
    def q(a):   # model "bf16 into the MXU, f32 accumulation"
        return a.astype(jnp.bfloat16).astype(jnp.float32)

    def ref_conv(xh, w, b):
        y = jax.lax.conv_general_dilated(
            q(xh), q(w), (1, 1), "SAME",
            dimension_numbers=("NHWC", "HWIO", "NHWC"),
            precision=jax.lax.Precision.HIGHEST)
        return y + b.reshape(1, 1, 1, -1)

    xr = jnp.transpose(x, (0, 2, 3, 1))
    ref_ftrs = []
    for i, p in enumerate(params):
        yr = ref_conv(jax.nn.relu(ref_conv(xr, p["w1"], p["b1"])),
                      p["w2"], p["b2"])
        ref_ftrs.append(jnp.transpose(yr, (0, 3, 1, 2)))
        if i + 1 < len(params):
            Br, Hr, Wr, Cr = yr.shape
            xr = jnp.max(yr.reshape(Br, Hr // 2, 2, Wr // 2, 2, Cr), axis=(2, 4))

    for got, want in zip(ftrs, ref_ftrs):
        assert got.shape == want.shape, (got.shape, want.shape)
        err = float(jnp.max(jnp.abs(got - want)))
        assert jnp.allclose(got, want, atol=2e-3, rtol=2e-3), err

    print("KERNEL_OK")
</pallas_src>

<mosaic_0001>
module attributes {stable_mosaic.version = 11 : i64} {
  func.func @kernel(%arg0: i32, %arg1: memref<1x18x18x4xf32, #tpu.memory_space<vmem>>, %arg2: memref<36x16xbf16, #tpu.memory_space<vmem>>, %arg3: memref<1x16xf32, #tpu.memory_space<vmem>>, %arg4: memref<144x16xbf16, #tpu.memory_space<vmem>>, %arg5: memref<1x16xf32, #tpu.memory_space<vmem>>, %arg6: memref<1x16x16x16xf32, #tpu.memory_space<vmem>>, %arg7: memref<1x10x10x16xf32, #tpu.memory_space<vmem>>, %arg8: memref<18x18x16xf32, #tpu.memory_space<vmem>>) attributes {dimension_semantics = [#tpu.dimension_semantics<parallel>], iteration_bounds = array<i64: 2>, scalar_prefetch = 0 : i64, scratch_operands = 1 : i64, tpu.core_type = #tpu.core_type<tc>, window_params = [{transform_indices = @transform_0, window_bounds = array<i64: 1, 18, 18, 4>}, {pipeline_mode = #tpu.pipeline_mode<synchronous>, transform_indices = @transform_1, window_bounds = array<i64: 36, 16>}, {pipeline_mode = #tpu.pipeline_mode<synchronous>, transform_indices = @transform_2, window_bounds = array<i64: 1, 16>}, {pipeline_mode = #tpu.pipeline_mode<synchronous>, transform_indices = @transform_3, window_bounds = array<i64: 144, 16>}, {pipeline_mode = #tpu.pipeline_mode<synchronous>, transform_indices = @transform_4, window_bounds = array<i64: 1, 16>}, {transform_indices = @transform_5, window_bounds = array<i64: 1, 16, 16, 16>}, {transform_indices = @transform_6, window_bounds = array<i64: 1, 10, 10, 16>}]} {
    %c0 = arith.constant 0 : index
    %c0_0 = arith.constant 0 : index
    %c0_1 = arith.constant 0 : index
    %c0_2 = arith.constant 0 : index
    %0 = vector.load %arg1[%c0, %c0_0, %c0_1, %c0_2] : memref<1x18x18x4xf32, #tpu.memory_space<vmem>>, vector<1x18x18x4xf32>
    %1 = vector.shape_cast %0 : vector<1x18x18x4xf32> to vector<18x18x4xf32>
    %2 = vector.extract_strided_slice %1 {offsets = [0, 0, 0], sizes = [16, 16, 4], strides = [1, 1, 1]} : vector<18x18x4xf32> to vector<16x16x4xf32>
    %3 = vector.shape_cast %2 : vector<16x16x4xf32> to vector<256x4xf32>
    %4 = vector.extract_strided_slice %1 {offsets = [0, 1, 0], sizes = [16, 16, 4], strides = [1, 1, 1]} : vector<18x18x4xf32> to vector<16x16x4xf32>
    %5 = vector.shape_cast %4 : vector<16x16x4xf32> to vector<256x4xf32>
    %6 = vector.extract_strided_slice %1 {offsets = [0, 2, 0], sizes = [16, 16, 4], strides = [1, 1, 1]} : vector<18x18x4xf32> to vector<16x16x4xf32>
    %7 = vector.shape_cast %6 : vector<16x16x4xf32> to vector<256x4xf32>
    %8 = vector.extract_strided_slice %1 {offsets = [1, 0, 0], sizes = [16, 16, 4], strides = [1, 1, 1]} : vector<18x18x4xf32> to vector<16x16x4xf32>
    %9 = vector.shape_cast %8 : vector<16x16x4xf32> to vector<256x4xf32>
    %10 = vector.extract_strided_slice %1 {offsets = [1, 1, 0], sizes = [16, 16, 4], strides = [1, 1, 1]} : vector<18x18x4xf32> to vector<16x16x4xf32>
    %11 = vector.shape_cast %10 : vector<16x16x4xf32> to vector<256x4xf32>
    %12 = vector.extract_strided_slice %1 {offsets = [1, 2, 0], sizes = [16, 16, 4], strides = [1, 1, 1]} : vector<18x18x4xf32> to vector<16x16x4xf32>
    %13 = vector.shape_cast %12 : vector<16x16x4xf32> to vector<256x4xf32>
    %14 = vector.extract_strided_slice %1 {offsets = [2, 0, 0], sizes = [16, 16, 4], strides = [1, 1, 1]} : vector<18x18x4xf32> to vector<16x16x4xf32>
    %15 = vector.shape_cast %14 : vector<16x16x4xf32> to vector<256x4xf32>
    %16 = vector.extract_strided_slice %1 {offsets = [2, 1, 0], sizes = [16, 16, 4], strides = [1, 1, 1]} : vector<18x18x4xf32> to vector<16x16x4xf32>
    %17 = vector.shape_cast %16 : vector<16x16x4xf32> to vector<256x4xf32>
    %18 = vector.extract_strided_slice %1 {offsets = [2, 2, 0], sizes = [16, 16, 4], strides = [1, 1, 1]} : vector<18x18x4xf32> to vector<16x16x4xf32>
    %19 = vector.shape_cast %18 : vector<16x16x4xf32> to vector<256x4xf32>
    %20 = tpu.concatenate %3, %5, %7, %9, %11, %13, %15, %17, %19 in 1 : vector<256x4xf32>, vector<256x4xf32>, vector<256x4xf32>, vector<256x4xf32>, vector<256x4xf32>, vector<256x4xf32>, vector<256x4xf32>, vector<256x4xf32>, vector<256x4xf32> -> vector<256x36xf32>
    %21 = arith.truncf %20 : vector<256x36xf32> to vector<256x36xbf16>
    %c0_3 = arith.constant 0 : index
    %c0_4 = arith.constant 0 : index
    %22 = vector.load %arg2[%c0_3, %c0_4] : memref<36x16xbf16, #tpu.memory_space<vmem>>, vector<36x16xbf16>
    %cst = arith.constant dense<0.000000e+00> : vector<256x16xf32>
    %23 = tpu.matmul %21, %22, %cst {dimension_numbers = #tpu.dot_dimension_numbers<[1], [0], [0], [1], [0, 0, 1, 1], [], []>} : vector<256x36xbf16>, vector<36x16xbf16>, vector<256x16xf32> -> vector<256x16xf32>
    %c0_5 = arith.constant 0 : index
    %c0_6 = arith.constant 0 : index
    %24 = vector.load %arg3[%c0_5, %c0_6] : memref<1x16xf32, #tpu.memory_space<vmem>>, vector<1x16xf32>
    %25 = vector.broadcast %24 : vector<1x16xf32> to vector<256x16xf32>
    %26 = arith.addf %23, %25 : vector<256x16xf32>
    %cst_7 = arith.constant 0.000000e+00 : f32
    %27 = vector.broadcast %cst_7 : f32 to vector<256x16xf32>
    %28 = arith.maximumf %26, %27 : vector<256x16xf32>
    %cst_8 = arith.constant 0.000000e+00 : f32
    %29 = vector.broadcast %cst_8 : f32 to vector<1x18x16xf32>
    %cst_9 = arith.constant 0.000000e+00 : f32
    %30 = vector.broadcast %cst_9 : f32 to vector<18x1x16xf32>
    %c0_10 = arith.constant 0 : index
    %c0_11 = arith.constant 0 : index
    %c0_12 = arith.constant 0 : index
    %31 = vector.load %arg8[%c0_10, %c0_11, %c0_12] : memref<18x18x16xf32, #tpu.memory_space<vmem>>, vector<1x18x16xf32>
    tpu.vector_store %arg8[%c0_10, %c0_11, %c0_12], %29 {strides = array<i32>} : memref<18x18x16xf32, #tpu.memory_space<vmem>>, vector<1x18x16xf32>,
    %c17 = arith.constant 17 : index
    %c0_13 = arith.constant 0 : index
    %c0_14 = arith.constant 0 : index
    %32 = vector.load %arg8[%c17, %c0_13, %c0_14] : memref<18x18x16xf32, #tpu.memory_space<vmem>>, vector<1x18x16xf32>
    tpu.vector_store %arg8[%c17, %c0_13, %c0_14], %29 {strides = array<i32>} : memref<18x18x16xf32, #tpu.memory_space<vmem>>, vector<1x18x16xf32>,
    %c0_15 = arith.constant 0 : index
    %c0_16 = arith.constant 0 : index
    %c0_17 = arith.constant 0 : index
    %33 = vector.load %arg8[%c0_15, %c0_16, %c0_17] : memref<18x18x16xf32, #tpu.memory_space<vmem>>, vector<18x1x16xf32>
    tpu.vector_store %arg8[%c0_15, %c0_16, %c0_17], %30 {strides = array<i32>} : memref<18x18x16xf32, #tpu.memory_space<vmem>>, vector<18x1x16xf32>,
    %c0_18 = arith.constant 0 : index
    %c17_19 = arith.constant 17 : index
    %c0_20 = arith.constant 0 : index
    %34 = vector.load %arg8[%c0_18, %c17_19, %c0_20] : memref<18x18x16xf32, #tpu.memory_space<vmem>>, vector<18x1x16xf32>
    tpu.vector_store %arg8[%c0_18, %c17_19, %c0_20], %30 {strides = array<i32>} : memref<18x18x16xf32, #tpu.memory_space<vmem>>, vector<18x1x16xf32>,
    %35 = vector.shape_cast %28 : vector<256x16xf32> to vector<16x16x16xf32>
    %c1 = arith.constant 1 : index
    %c1_21 = arith.constant 1 : index
    %c0_22 = arith.constant 0 : index
    %36 = vector.load %arg8[%c1, %c1_21, %c0_22] : memref<18x18x16xf32, #tpu.memory_space<vmem>>, vector<16x16x16xf32>
    tpu.vector_store %arg8[%c1, %c1_21, %c0_22], %35 {strides = array<i32>} : memref<18x18x16xf32, #tpu.memory_space<vmem>>, vector<16x16x16xf32>,
    %c0_23 = arith.constant 0 : index
    %c0_24 = arith.constant 0 : index
    %c0_25 = arith.constant 0 : index
    %37 = vector.load %arg8[%c0_23, %c0_24, %c0_25] : memref<18x18x16xf32, #tpu.memory_space<vmem>>, vector<18x18x16xf32>
    %38 = vector.extract_strided_slice %37 {offsets = [0, 0, 0], sizes = [16, 16, 16], strides = [1, 1, 1]} : vector<18x18x16xf32> to vector<16x16x16xf32>
    %39 = vector.shape_cast %38 : vector<16x16x16xf32> to vector<256x16xf32>
    %40 = vector.extract_strided_slice %37 {offsets = [0, 1, 0], sizes = [16, 16, 16], strides = [1, 1, 1]} : vector<18x18x16xf32> to vector<16x16x16xf32>
    %41 = vector.shape_cast %40 : vector<16x16x16xf32> to vector<256x16xf32>
    %42 = vector.extract_strided_slice %37 {offsets = [0, 2, 0], sizes = [16, 16, 16], strides = [1, 1, 1]} : vector<18x18x16xf32> to vector<16x16x16xf32>
    %43 = vector.shape_cast %42 : vector<16x16x16xf32> to vector<256x16xf32>
    %44 = vector.extract_strided_slice %37 {offsets = [1, 0, 0], sizes = [16, 16, 16], strides = [1, 1, 1]} : vector<18x18x16xf32> to vector<16x16x16xf32>
    %45 = vector.shape_cast %44 : vector<16x16x16xf32> to vector<256x16xf32>
    %46 = vector.extract_strided_slice %37 {offsets = [1, 1, 0], sizes = [16, 16, 16], strides = [1, 1, 1]} : vector<18x18x16xf32> to vector<16x16x16xf32>
    %47 = vector.shape_cast %46 : vector<16x16x16xf32> to vector<256x16xf32>
    %48 = vector.extract_strided_slice %37 {offsets = [1, 2, 0], sizes = [16, 16, 16], strides = [1, 1, 1]} : vector<18x18x16xf32> to vector<16x16x16xf32>
    %49 = vector.shape_cast %48 : vector<16x16x16xf32> to vector<256x16xf32>
    %50 = vector.extract_strided_slice %37 {offsets = [2, 0, 0], sizes = [16, 16, 16], strides = [1, 1, 1]} : vector<18x18x16xf32> to vector<16x16x16xf32>
    %51 = vector.shape_cast %50 : vector<16x16x16xf32> to vector<256x16xf32>
    %52 = vector.extract_strided_slice %37 {offsets = [2, 1, 0], sizes = [16, 16, 16], strides = [1, 1, 1]} : vector<18x18x16xf32> to vector<16x16x16xf32>
    %53 = vector.shape_cast %52 : vector<16x16x16xf32> to vector<256x16xf32>
    %54 = vector.extract_strided_slice %37 {offsets = [2, 2, 0], sizes = [16, 16, 16], strides = [1, 1, 1]} : vector<18x18x16xf32> to vector<16x16x16xf32>
    %55 = vector.shape_cast %54 : vector<16x16x16xf32> to vector<256x16xf32>
    %56 = tpu.concatenate %39, %41, %43, %45, %47, %49, %51, %53, %55 in 1 : vector<256x16xf32>, vector<256x16xf32>, vector<256x16xf32>, vector<256x16xf32>, vector<256x16xf32>, vector<256x16xf32>, vector<256x16xf32>, vector<256x16xf32>, vector<256x16xf32> -> vector<256x144xf32>
    %57 = arith.truncf %56 : vector<256x144xf32> to vector<256x144xbf16>
    %c0_26 = arith.constant 0 : index
    %c0_27 = arith.constant 0 : index
    %58 = vector.load %arg4[%c0_26, %c0_27] : memref<144x16xbf16, #tpu.memory_space<vmem>>, vector<144x16xbf16>
    %cst_28 = arith.constant dense<0.000000e+00> : vector<256x16xf32>
    %59 = tpu.matmul %57, %58, %cst_28 {dimension_numbers = #tpu.dot_dimension_numbers<[1], [0], [0], [1], [0, 0, 1, 1], [], []>} : vector<256x144xbf16>, vector<144x16xbf16>, vector<256x16xf32> -> vector<256x16xf32>
    %c0_29 = arith.constant 0 : index
    %c0_30 = arith.constant 0 : index
    %60 = vector.load %arg5[%c0_29, %c0_30] : memref<1x16xf32, #tpu.memory_space<vmem>>, vector<1x16xf32>
    %61 = vector.broadcast %60 : vector<1x16xf32> to vector<256x16xf32>
    %62 = arith.addf %59, %61 : vector<256x16xf32>
    %63 = vector.shape_cast %62 : vector<256x16xf32> to vector<16x16x16xf32>
    %c0_31 = arith.constant 0 : index
    %c0_32 = arith.constant 0 : index
    %c0_33 = arith.constant 0 : index
    %c0_34 = arith.constant 0 : index
    %64 = vector.load %arg6[%c0_31, %c0_32, %c0_33, %c0_34] : memref<1x16x16x16xf32, #tpu.memory_space<vmem>>, vector<1x16x16x16xf32>
    %65 = vector.shape_cast %64 : vector<1x16x16x16xf32> to vector<16x16x16xf32>
    %66 = vector.shape_cast %63 : vector<16x16x16xf32> to vector<1x16x16x16xf32>
    tpu.vector_store %arg6[%c0_31, %c0_32, %c0_33, %c0_34], %66 {strides = array<i32>} : memref<1x16x16x16xf32, #tpu.memory_space<vmem>>, vector<1x16x16x16xf32>,
    %cst_35 = arith.constant 0.000000e+00 : f32
    %67 = vector.broadcast %cst_35 : f32 to vector<1x10x16xf32>
    %cst_36 = arith.constant 0.000000e+00 : f32
    %68 = vector.broadcast %cst_36 : f32 to vector<10x1x16xf32>
    %c0_37 = arith.constant 0 : index
    %c0_38 = arith.constant 0 : index
    %c0_39 = arith.constant 0 : index
    %c0_40 = arith.constant 0 : index
    %69 = vector.load %arg7[%c0_37, %c0_38, %c0_39, %c0_40] : memref<1x10x10x16xf32, #tpu.memory_space<vmem>>, vector<1x1x10x16xf32>
    %70 = vector.shape_cast %69 : vector<1x1x10x16xf32> to vector<1x10x16xf32>
    %71 = vector.shape_cast %67 : vector<1x10x16xf32> to vector<1x1x10x16xf32>
    tpu.vector_store %arg7[%c0_37, %c0_38, %c0_39, %c0_40], %71 {strides = array<i32>} : memref<1x10x10x16xf32, #tpu.memory_space<vmem>>, vector<1x1x10x16xf32>,
    %c0_41 = arith.constant 0 : index
    %c9 = arith.constant 9 : index
    %c0_42 = arith.constant 0 : index
    %c0_43 = arith.constant 0 : index
    %72 = vector.load %arg7[%c0_41, %c9, %c0_42, %c0_43] : memref<1x10x10x16xf32, #tpu.memory_space<vmem>>, vector<1x1x10x16xf32>
    %73 = vector.shape_cast %72 : vector<1x1x10x16xf32> to vector<1x10x16xf32>
    %74 = vector.shape_cast %67 : vector<1x10x16xf32> to vector<1x1x10x16xf32>
    tpu.vector_store %arg7[%c0_41, %c9, %c0_42, %c0_43], %74 {strides = array<i32>} : memref<1x10x10x16xf32, #tpu.memory_space<vmem>>, vector<1x1x10x16xf32>,
    %c0_44 = arith.constant 0 : index
    %c0_45 = arith.constant 0 : index
    %c0_46 = arith.constant 0 : index
    %c0_47 = arith.constant 0 : index
    %75 = vector.load %arg7[%c0_44, %c0_45, %c0_46, %c0_47] : memref<1x10x10x16xf32, #tpu.memory_space<vmem>>, vector<1x10x1x16xf32>
    %76 = vector.shape_cast %75 : vector<1x10x1x16xf32> to vector<10x1x16xf32>
    %77 = vector.shape_cast %68 : vector<10x1x16xf32> to vector<1x10x1x16xf32>
    tpu.vector_store %arg7[%c0_44, %c0_45, %c0_46, %c0_47], %77 {strides = array<i32>} : memref<1x10x10x16xf32, #tpu.memory_space<vmem>>, vector<1x10x1x16xf32>,
    %c0_48 = arith.constant 0 : index
    %c0_49 = arith.constant 0 : index
    %c9_50 = arith.constant 9 : index
    %c0_51 = arith.constant 0 : index
    %78 = vector.load %arg7[%c0_48, %c0_49, %c9_50, %c0_51] : memref<1x10x10x16xf32, #tpu.memory_space<vmem>>, vector<1x10x1x16xf32>
    %79 = vector.shape_cast %78 : vector<1x10x1x16xf32> to vector<10x1x16xf32>
    %80 = vector.shape_cast %68 : vector<10x1x16xf32> to vector<1x10x1x16xf32>
    tpu.vector_store %arg7[%c0_48, %c0_49, %c9_50, %c0_51], %80 {strides = array<i32>} : memref<1x10x10x16xf32, #tpu.memory_space<vmem>>, vector<1x10x1x16xf32>,
    %c0_52 = arith.constant 0 : index
    %c0_53 = arith.constant 0 : index
    %c0_54 = arith.constant 0 : index
    %c0_55 = arith.constant 0 : index
    %81 = tpu.strided_load %arg6[%c0_52, %c0_53, %c0_54, %c0_55] {strides = array<i32: 1, 1, 2, 1>} : memref<1x16x16x16xf32, #tpu.memory_space<vmem>>, vector<1x16x8x16xf32>
    %82 = vector.shape_cast %81 : vector<1x16x8x16xf32> to vector<16x8x16xf32>
    %c0_56 = arith.constant 0 : index
    %c0_57 = arith.constant 0 : index
    %c1_58 = arith.constant 1 : index
    %c0_59 = arith.constant 0 : index
    %83 = tpu.strided_load %arg6[%c0_56, %c0_57, %c1_58, %c0_59] {strides = array<i32: 1, 1, 2, 1>} : memref<1x16x16x16xf32, #tpu.memory_space<vmem>>, vector<1x16x8x16xf32>
    %84 = vector.shape_cast %83 : vector<1x16x8x16xf32> to vector<16x8x16xf32>
    %85 = arith.maximumf %82, %84 : vector<16x8x16xf32>
    %86 = vector.shape_cast %85 : vector<16x8x16xf32> to vector<8x2x8x16xf32>
    %cst_60 = arith.constant dense<0xFF800000> : vector<8x8x16xf32>
    %87 = vector.multi_reduction <maximumf>, %86, %cst_60 [1] : vector<8x2x8x16xf32> to vector<8x8x16xf32>
    %c0_61 = arith.constant 0 : index
    %c1_62 = arith.constant 1 : index
    %c1_63 = arith.constant 1 : index
    %c0_64 = arith.constant 0 : index
    %88 = vector.load %arg7[%c0_61, %c1_62, %c1_63, %c0_64] : memref<1x10x10x16xf32, #tpu.memory_space<vmem>>, vector<1x8x8x16xf32>
    %89 = vector.shape_cast %88 : vector<1x8x8x16xf32> to vector<8x8x16xf32>
    %90 = vector.shape_cast %87 : vector<8x8x16xf32> to vector<1x8x8x16xf32>
    tpu.vector_store %arg7[%c0_61, %c1_62, %c1_63, %c0_64], %90 {strides = array<i32>} : memref<1x10x10x16xf32, #tpu.memory_space<vmem>>, vector<1x8x8x16xf32>,
    return
  }
  func.func @transform_0(%arg0: i32) -> (i32, i32, i32, i32) {
    %c0_i32 = arith.constant 0 : i32
    %c0_i32_0 = arith.constant 0 : i32
    %c0_i32_1 = arith.constant 0 : i32
    %c0_i32_2 = arith.constant 0 : i32
    return %arg0, %c0_i32, %c0_i32_0, %c0_i32_1 : i32, i32, i32, i32
  }
  func.func @transform_1(%arg0: i32) -> (i32, i32) {
    %c0_i32 = arith.constant 0 : i32
    %c0_i32_0 = arith.constant 0 : i32
    %c0_i32_1 = arith.constant 0 : i32
    return %c0_i32, %c0_i32_0 : i32, i32
  }
  func.func @transform_2(%arg0: i32) -> (i32, i32) {
    %c0_i32 = arith.constant 0 : i32
    %c0_i32_0 = arith.constant 0 : i32
    %c0_i32_1 = arith.constant 0 : i32
    return %c0_i32, %c0_i32_0 : i32, i32
  }
  func.func @transform_3(%arg0: i32) -> (i32, i32) {
    %c0_i32 = arith.constant 0 : i32
    %c0_i32_0 = arith.constant 0 : i32
    %c0_i32_1 = arith.constant 0 : i32
    return %c0_i32, %c0_i32_0 : i32, i32
  }
  func.func @transform_4(%arg0: i32) -> (i32, i32) {
    %c0_i32 = arith.constant 0 : i32
    %c0_i32_0 = arith.constant 0 : i32
    %c0_i32_1 = arith.constant 0 : i32
    return %c0_i32, %c0_i32_0 : i32, i32
  }
  func.func @transform_5(%arg0: i32) -> (i32, i32, i32, i32) {
    %c0_i32 = arith.constant 0 : i32
    %c0_i32_0 = arith.constant 0 : i32
    %c0_i32_1 = arith.constant 0 : i32
    %c0_i32_2 = arith.constant 0 : i32
    return %arg0, %c0_i32, %c0_i32_0, %c0_i32_1 : i32, i32, i32, i32
  }
  func.func @transform_6(%arg0: i32) -> (i32, i32, i32, i32) {
    %c0_i32 = arith.constant 0 : i32
    %c0_i32_0 = arith.constant 0 : i32
    %c0_i32_1 = arith.constant 0 : i32
    %c0_i32_2 = arith.constant 0 : i32
    return %arg0, %c0_i32, %c0_i32_0, %c0_i32_1 : i32, i32, i32, i32
  }
}

</mosaic_0001>

<bundles_post_ra>
// kernel: tpu_custom_call.1
= control target key start
LH: loop header
LB: loop body
LE: loop exit
PB: predicated region body
PF: predicated region fallthrough
CT: control target
= control target key end

     0   :  { %12 = vsyncpa [#allocation4], 0  ;;  %s8847_s0 = inlined_call_operand.hbm [shape: f32[2,18,18,4], index: 0, kind: input, shape index: {}]   ;;  %s8848_s1 = inlined_call_operand.hbm [shape: bf16[36,16], index: 1, kind: input, shape index: {}]   ;;  %s8849_s2 = inlined_call_operand.hbm [shape: f32[1,16], index: 2, kind: input, shape index: {}]   ;;  %s8850_s3 = inlined_call_operand.hbm [shape: bf16[144,16], index: 3, kind: input, shape index: {}]   ;;  %s8851_s4 = inlined_call_operand.hbm [shape: f32[1,16], index: 4, kind: input, shape index: {}]   ;;  %s8852_s5 = inlined_call_operand.hbm [shape: f32[2,16,16,16], index: 5, kind: output, shape index: {0}]   ;;  %s8853_s6 = inlined_call_operand.hbm [shape: f32[2,10,10,16], index: 6, kind: output, shape index: {1}]  }
   0x1   :  { %14 = vsyncpa [#allocation4 + $0x1], 0 }
   0x2   :  { %15 = vsyncpa [#allocation7], 0 }
   0x3   :  { %16 = vsyncpa [#allocation10], 0 }
   0x4   :  { %17 = vsyncpa [#allocation5], 0 }
   0x5   :  { %19 = vsyncpa [#allocation5 + $0x1], 0 }
   0x6   :  { %20 = vsyncpa [#allocation14], 0 }
   0x7   :  { %22 = vsyncpa [#allocation14 + $0x1], 0  ;;  %s5792_s21 = smov 0   ;;  %s5794_s22 = smov 0  }
   0x8   :  { %s5796_s23 = smov 0   ;;  %s5798_s24 = smov 0  }
   0x9 LB: > { %s5813_s25 = sadd.s32 4294967295, %s5728_s24   ;;  %s3913_s26 = sadd.s32 4294967294, %s5728_s24   ;;  %s5728_s24 = sphi %s5798_s24, %s9077_s24   ;;  %s5724_s23 = sphi %s5796_s23, %s9076_s23   ;;  %s5720_s22 = sphi %s5794_s22, %s9075_s22   ;;  %s5716_s21 = sphi %s5792_s21, %s9074_s21  }
   0xa   : > { %p48_p0 = scmp.ne.s32.totalorder %s5720_s22, %s5716_s21  ;;  %p8854_p1 = scmp.eq.s32.totalorder %s5813_s25, 0 }
   0xb   : > { %p162_p3 = scmp.eq.s32.totalorder %s3913_s26, 1  ;;  %p3914_p5 = scmp.ge.s32.totalorder %s5728_s24, 1 }
   0xc   : > { %p5822_p4 = por %p8854_p1, %p48_p0  ;;  %p195_p7 = scmp.lt.s32.totalorder %s5728_s24, 3 }
   0xd   : > { %p5827_p6 = por %p162_p3, %p48_p0  ;;  %s5730_s30 = smov [#allocation6]  }
   0xe   : > { %s8922_s27 = scalar_select %p5822_p4, 1, 0 }
   0xf   : > { %s8923_s28 = scalar_select %p5827_p6, 1, 0 }
  0x10   : > { %p5832_p8 = pnand %p3914_p5, %p195_p7  ;;  %s207_s7 = sshll.u32 %s5730_s30, 4  ;;  %s5836_s7 = int_to_ptr.vmem [resolvable:$true] %s207_s7 }
  0x11   : > { %s5731_s9 = smov [#allocation9]   ;;  %s5732_s11 = smov [#allocation8]  }
  0x12   : > { %s8924_s29 = scalar_select %p5832_p8, 1, 0 }
  0x13   : > { %p4124_p9 = pneg %p5832_p8  ;;  %s231_s10 = sshll.u32 %s5731_s9, 4  ;;  %s5847_s10 = int_to_ptr.vmem [resolvable:$true] %s231_s10 }
  0x14   : > { %s5849_s12 = sshll.u32 %s5732_s11, 4  ;;  %s5480_s15 = scalar_lea.hbm %s8848_s1, 320  ;;  %s222_s12 = int_to_ptr.vmem [resolvable:$true] %s5849_s12 }
  0x15   : > { %p5843_p11 = pnand %p4124_p9, %p8854_p1  ;;  %p5481_p12 = scmp.ne.s32.totalorder %s8848_s1, %s5480_s15 }
  0x16   : > { %p5487_p5 = scmp.lt.u32.totalorder %s5480_s15, %s8848_s1 }
  0x17   : > { %p5859_p13 = pneg %p5843_p11 }
  0x19   : > { %p5483_p0 = pnand %p5859_p13, %p5481_p12 }
  0x1b   : > { %p5484_p3 = pneg %p5483_p0 }
  0x1d   : > { %p5489_p7 = pnand %p5487_p5, %p5484_p3 }
  0x1f   : > { %5492 = shalt.err (!%p5489_p7)
}
  0x20   : > { %s5493_s26 = scalar_lea.vmem %s5836_s7, 320  ;;  %p5501_p2 = scmp.lt.s32.totalorder %s5836_s7, %s5836_s7 }
  0x21   : > { %p5494_p9 = scmp.ne.s32.totalorder %s5836_s7, %s5493_s26  ;;  %p5502_p6 = scmp.lt.s32.totalorder %s5493_s26, %s5493_s26 }
  0x23   : > { %p5496_p10 = pnand %p5494_p9, %p5859_p13  ;;  %p5503_p12 = por %p5502_p6, %p5501_p2 }
  0x25   : > { %p5497_p1 = pneg %p5496_p10 }
  0x27   : > { %p5504_p0 = pnand %p5503_p12, %p5497_p1 }
  0x29   : > { %5507 = shalt.err (!%p5504_p0)
}
  0x2a   : > { %s5733_s30 = smov 64   ;;  %s5734_s9 = smov 4  }
  0x2b   : > { %4127 = dma.hbm_to_vmem [thread:$0]  (!%p5843_p11), %s8848_s1, 320, %s5836_s7, [#allocation7], %s5733_s30, %s5733_s30, %s5734_s9  }
  0x2c   : > { %s5508_s16 = scalar_lea.hbm %s8850_s3, 1152 }
  0x2d   : > { %p5509_p2 = scmp.ne.s32.totalorder %s8850_s3, %s5508_s16  ;;  %p5515_p10 = scmp.lt.u32.totalorder %s5508_s16, %s8850_s3 }
  0x2f   : > { %p5511_p1 = pnand %p5509_p2, %p5859_p13 }
  0x31   : > { %p5512_p6 = pneg %p5511_p1 }
  0x33   : > { %p5517_p3 = pnand %p5515_p10, %p5512_p6 }
  0x35   : > { %5520 = shalt.err (!%p5517_p3)
}
  0x36   : > { %s5521_s7 = scalar_lea.vmem %s5847_s10, 1152  ;;  %p5529_p12 = scmp.lt.s32.totalorder %s5847_s10, %s5847_s10 }
  0x37   : > { %p5522_p5 = scmp.ne.s32.totalorder %s5847_s10, %s5521_s7  ;;  %p5530_p0 = scmp.lt.s32.totalorder %s5521_s7, %s5521_s7 }
  0x39   : > { %p5524_p7 = pnand %p5522_p5, %p5859_p13  ;;  %p5531_p2 = por %p5530_p0, %p5529_p12 }
  0x3b   : > { %p5525_p9 = pneg %p5524_p7 }
  0x3d   : > { %p5532_p1 = pnand %p5531_p2, %p5525_p9 }
  0x3f   : > { %5535 = shalt.err (!%p5532_p1)
}
  0x40   : > { %4133 = dma.hbm_to_vmem [thread:$0]  (!%p5843_p11), %s8850_s3, 1152, %s5847_s10, [#allocation10], %s5733_s30, %s5733_s30, %s5734_s9  }
  0x41   : > { %s5536_s16 = scalar_lea.hbm %s8849_s2, 16 }
  0x42   : > { %p5537_p6 = scmp.ne.s32.totalorder %s8849_s2, %s5536_s16  ;;  %p5543_p5 = scmp.lt.u32.totalorder %s5536_s16, %s8849_s2 }
  0x44   : > { %p5539_p10 = pnand %p5537_p6, %p5859_p13 }
  0x46   : > { %p5540_p3 = pneg %p5539_p10 }
  0x48   : > { %p5545_p7 = pnand %p5543_p5, %p5540_p3 }
  0x4a   : > { %5548 = shalt.err (!%p5545_p7)
}
  0x4b   : > { %s5549_s7 = scalar_lea.vmem %s222_s12, 16  ;;  %s5556_s10 = scalar_lea.vmem %s222_s12, 32 }
  0x4c   : > { %p5550_p9 = scmp.ne.s32.totalorder %s222_s12, %s5549_s7  ;;  %p5557_p2 = scmp.lt.s32.totalorder %s222_s12, %s222_s12 }
  0x4d   : > { %p5558_p1 = scmp.lt.s32.totalorder %s5556_s10, %s5549_s7 }
  0x4e   : > { %p5552_p12 = pnand %p5550_p9, %p5859_p13 }
  0x4f   : > { %p5559_p4 = por %p5558_p1, %p5557_p2 }
  0x50   : > { %p5553_p0 = pneg %p5552_p12 }
  0x52   : > { %p5560_p8 = pnand %p5559_p4, %p5553_p0 }
  0x54   : > { %5563 = shalt.err (!%p5560_p8)
}
  0x55   : > { %4130 = dma.hbm_to_vmem [thread:$0]  (!%p5843_p11), %s8849_s2, 16, %s222_s12, [#allocation7]  }
  0x56   : > { %s5735_s11 = smov [#allocation11]   ;;  %s5564_s16 = scalar_lea.hbm %s8851_s4, 16 }
  0x57   : > { %s245_s13 = sshll.u32 %s5735_s11, 4  ;;  %p5565_p6 = scmp.ne.s32.totalorder %s8851_s4, %s5564_s16  ;;  %s246_s13 = int_to_ptr.vmem [resolvable:$true] %s245_s13 }
  0x58   : > { %p5571_p10 = scmp.lt.u32.totalorder %s5564_s16, %s8851_s4 }
  0x59   : > { %p5567_p4 = pnand %p5565_p6, %p5859_p13 }
  0x5b   : > { %p5568_p8 = pneg %p5567_p4 }
  0x5d   : > { %p5573_p3 = pnand %p5571_p10, %p5568_p8 }
  0x5f   : > { %5576 = shalt.err (!%p5573_p3)
}
  0x60   : > { %s5577_s12 = scalar_lea.vmem %s246_s13, 16  ;;  %s5584_s7 = scalar_lea.vmem %s246_s13, 32 }
  0x61   : > { %p5578_p5 = scmp.ne.s32.totalorder %s246_s13, %s5577_s12  ;;  %p5585_p12 = scmp.lt.s32.totalorder %s246_s13, %s246_s13 }
  0x62   : > { %p5586_p0 = scmp.lt.s32.totalorder %s5584_s7, %s5577_s12 }
  0x63   : > { %p5580_p7 = pnand %p5578_p5, %p5859_p13 }
  0x64   : > { %p5587_p2 = por %p5586_p0, %p5585_p12 }
  0x65   : > { %p5581_p9 = pneg %p5580_p7 }
  0x67   : > { %p5588_p1 = pnand %p5587_p2, %p5581_p9 }
  0x69   : > { %5591 = shalt.err (!%p5588_p1)
}
  0x6a   : > { %4136 = dma.hbm_to_vmem [thread:$0]  (!%p5843_p11), %s8851_s4, 16, %s246_s13, [#allocation10]  }
  0x6b   : > { %s5941_s18 = sadd.s32 1, %s5728_s24   ;;  %s35_s9 = sadd.s32 1, %s5724_s23 }
  0x6c   : > { %s32_s8 = ssub.s32 %s5728_s24, %s5941_s18  ;;  %p42_p13 = scmp.ne.s32.totalorder %s5724_s23, %s5720_s22 }
  0x6d   : > { %p33_p6 = scmp.eq.s32.totalorder %s32_s8, 0  ;;  %p43_p4 = scmp.eq.s32.totalorder %s5728_s24, 0 }
  0x6e   : > { %p8927_p8 = scmp.eq.s32.totalorder %s5813_s25, 1  ;;  %p4152_p3 = scmp.lt.s32.totalorder %s5728_s24, 2 }
  0x6f   : > { %s5957_s14 = scalar_select %p33_p6, %s5724_s23, %s35_s9  }
  0x70   : > { %p5951_p10 = por %p8927_p8, %p42_p13  ;;  %p44_p5 = por %p43_p4, %p42_p13 }
  0x71   : > { %s256_s15 = sand.u32 1, %s5724_s23   ;;  %s4098_s13 = smul.u32 6912, %s5728_s24 }
  0x72   : > { %s4097_s16 = smul.u32 432, %s256_s15  ;;  %p5961_p11 = pnand %p4152_p3, %p44_p5 }
  0x73   : > { %s5968_s26 = scalar_lea.hbm %s8847_s0, %s4098_s13  ;;  %s5972_s10 = scalar_lea.sflag [#allocation4], %s256_s15 }
  0x74   : > { %s260_s12 = scalar_lea.vmem [#allocation3], %s4097_s16  ;;  %s5592_s30 = scalar_lea.hbm %s5968_s26, 6912 }
  0x75   : > { %s267_s7 = sshll.u32 %s260_s12, 4  ;;  %p5593_p7 = scmp.ne.s32.totalorder %s5968_s26, %s5592_s30  ;;  %s5970_s7 = int_to_ptr.vmem [resolvable:$true] %s267_s7 }
  0x76   : > { %p5594_p9 = pneg %p5961_p11  ;;  %s5597_s13 = scalar_lea.hbm %s8847_s0, 13824 }
  0x77   : > { %p5598_p2 = scmp.lt.u32.totalorder %s5968_s26, %s8847_s0  ;;  %p5599_p1 = scmp.lt.u32.totalorder %s5597_s13, %s5592_s30 }
  0x78   : > { %p5595_p12 = pnand %p5594_p9, %p5593_p7  ;;  %p5601_p6 = scmp.lt.u32.totalorder %s5592_s30, %s5968_s26 }
  0x79   : > { %p5600_p13 = por %p5599_p1, %p5598_p2 }
  0x7a   : > { %p5596_p0 = pneg %p5595_p12 }
  0x7b   : > { %p5602_p4 = por %p5601_p6, %p5600_p13 }
  0x7d   : > { %p5603_p8 = pnand %p5602_p4, %p5596_p0 }
  0x7f   : > { %5606 = shalt.err (!%p5603_p8)
}
  0x80   : > { %s5607_s15 = scalar_lea.vmem %s5970_s7, 6912  ;;  %s5736_s16 = smov [#allocation3]  }
  0x81   : > { %p5608_p3 = scmp.ne.s32.totalorder %s5970_s7, %s5607_s15  ;;  %s5612_s12 = sshll.u32 %s5736_s16, 4  ;;  %s5613_s12 = int_to_ptr.vmem [resolvable:$false] %s5612_s12 }
  0x82   : > { %s5614_s9 = scalar_lea.vmem %s5613_s12, 13824  ;;  %p5615_p12 = scmp.lt.s32.totalorder %s5970_s7, %s5613_s12 }
  0x83   : > { %p5610_p5 = pnand %p5608_p3, %p5594_p9  ;;  %p5616_p2 = scmp.lt.s32.totalorder %s5614_s9, %s5607_s15 }
  0x85   : > { %p5611_p7 = pneg %p5610_p5  ;;  %p5617_p1 = por %p5616_p2, %p5615_p12 }
  0x87   : > { %p5618_p13 = pnand %p5617_p1, %p5611_p7 }
  0x89   : > { %5621 = shalt.err (!%p5618_p13)
}
  0x8a   : > { %s5737_s30 = smov 128   ;;  %s5738_s8 = smov 8  }
  0x8b   : > { %4140 = dma.hbm_to_vmem [thread:$0]  (!%p5961_p11), %s5968_s26, 6912, %s5970_s7, %s5972_s10, %s5737_s30, %s5737_s30, %s5738_s8  }
  0x8c   : > { %p8930_p9 = scmp.ne.s32.totalorder %s8924_s29, 0 }
  0x8e   : > { %279 = sbr.rel (%p8930_p9) target bundleno = 1259 (0x4eb), region = 40 }
  0x95   : > { %s6003_s13 = sand.u32 1, %s5720_s22   ;;  %p8931_p0 = scmp.ne.s32.totalorder %s8922_s27, 0 }
  0x96   : > { %s4099_s19 = smul.u32 432, %s6003_s13  ;;  %s282_s20 = scalar_lea.sflag [#allocation4], %s6003_s13 }
  0x98   : > { %s6007_s15 = scalar_lea.vmem [#allocation3], %s4099_s19 }
  0x99   : > { %5695 = dma.done.wait (%p8931_p0), %s282_s20, 6912  }
  0x9a   : > { %5697 = vsyncadd (%p8931_p0), %s282_s20, 4294960384  ;;  %p8932_p11 = scmp.eq.s32.totalorder %s5813_s25, 0 }
  0x9c   : > { %5699 = dma.done.wait (%p8932_p11), [#allocation7], 336   ;;  %p8933_p6 = pmov %p8932_p11 }
  0x9e   : > { %5701 = vsyncadd (%p8933_p6), [#allocation7], 4294966960  ;;  %p8934_p4 = pmov %p8933_p6 }
  0xa0   : > { %5703 = dma.done.wait (%p8934_p4), [#allocation10], 1168   ;;  %p8935_p8 = pmov %p8934_p4 }
  0xa1   : > { %v6022_v0 = vld [vmem:[%s6007_s15 + $0x30] sm:$0xff]  ;;  %v6025_v1 = vld [vmem:[%s6007_s15 + $0x38] sm:$0xff]  ;;  %v6028_v2 = vld [vmem:[%s6007_s15 + $0x40] sm:$0x3]  ;;  %vm438_vm0 = vcmask 1046528   ;;  %s5739_s27 = smov 4  }
  0xa2   : > { %5705 = vsyncadd (%p8935_p8), [#allocation10], 4294966128  ;;  %v449_v3 = vrot.slane %v6022_v0, 1  ;;  %v450_v4 = vrot.slane %v6025_v1, 1  ;;  %v452_v5 = vrot.slane %v6028_v2, 1  ;;  %v6034_v6 = vld [vmem:[%s6007_s15] sm:$0xff] }
  0xa3   : > { %v6037_v7 = vld [vmem:[%s6007_s15 + $0x8] sm:$0xff]  ;;  %v6040_v8 = vld [vmem:[%s6007_s15 + $0x10] sm:$0x3]  ;;  %v439_v9 = vrot.slane %v6034_v6, 1  ;;  %v6054_v16 = vld [vmem:[%s6007_s15 + $0x58] sm:$0x3] }
  0xa4   : > { %v440_v10 = vrot.slane %v6037_v7, 1  ;;  %v6045_v11 = vld [vmem:[%s6007_s15 + $0x48] sm:$0xff]  ;;  %v6048_v12 = vld [vmem:[%s6007_s15 + $0x50] sm:$0xff]  ;;  %v451_v13 = vsel %vm438_vm0, %v449_v3, %v450_v4  ;;  %v453_v14 = vsel %vm438_vm0, %v450_v4, %v452_v5  ;;  %v442_v15 = vrot.slane %v6040_v8, 1  ;;  %v6057_v17 = vld [vmem:[%s6007_s15 + $0x18] sm:$0xff]  ;;  %s5740_s29 = smov 8  }
  0xa5   : > { %v6060_v18 = vld [vmem:[%s6007_s15 + $0x20] sm:$0xff]  ;;  %v6062_v19 = vpack.i.bf16 %v453_v14, %v451_v13  ;;  %v454_v21 = vrot.slane %v6045_v11, 1  ;;  %v455_v22 = vrot.slane %v6048_v12, 1  ;;  %v6068_v23 = vld [vmem:[%s6007_s15 + $0x28] sm:$0x3]  ;;  %v6071_v24 = vld [vmem:[%s6007_s15 + $0x78] sm:$0xff] }
  0xa6   : > { %v441_v20 = vsel %vm438_vm0, %v439_v9, %v440_v10  ;;  %v6074_v25 = vld [vmem:[%s6007_s15 + $0x80] sm:$0xff]  ;;  %v443_v26 = vsel %vm438_vm0, %v440_v10, %v442_v15  ;;  %v457_v27 = vrot.slane %v6054_v16, 1  ;;  %v444_v28 = vrot.slane %v6057_v17, 1  ;;  %v6081_v30 = vld [vmem:[%s6007_s15 + $0x88] sm:$0x3]  ;;  %v6105_v43 = vld [vmem:[%s6007_s15 + $0xb0] sm:$0xff] }
  0xa7   : > { %8936 = vst [vmem:[#allocation20_spill] sm:$0xff] %v6062_v19  ;;  %v445_v29 = vrot.slane %v6060_v18, 1  ;;  %v6084_v31 = vld [vmem:[%s6007_s15 + $0x60] sm:$0xff]  ;;  %4225 = vrot.lane.b32.xlu1 %v6062_v19, %s5739_s27  ;;  %v4214_v32 = vpack.i.bf16 %v443_v26, %v441_v20  ;;  %v456_v33 = vsel %vm438_vm0, %v454_v21, %v455_v22  ;;  %v447_v34 = vrot.slane %v6068_v23, 1  ;;  %v6092_v36 = vld [vmem:[%s6007_s15 + $0x68] sm:$0xff]  ;;  %v6117_v49 = vld [vmem:[%s6007_s15 + $0x90] sm:$0xff] }
  0xa8   : > { %v464_v35 = vrot.slane %v6071_v24, 1  ;;  %v6095_v37 = vld [vmem:[%s6007_s15 + $0x70] sm:$0x3]  ;;  %v458_v38 = vsel %vm438_vm0, %v455_v22, %v457_v27  ;;  %v465_v40 = vrot.slane %v6074_v25, 1  ;;  %v467_v41 = vrot.slane %v6081_v30, 1  ;;  %v6102_v42 = vld [vmem:[%s6007_s15 + $0xa8] sm:$0xff] }
  0xa9   : > { %v446_v39 = vsel %vm438_vm0, %v444_v28, %v445_v29  ;;  %4215 = vrot.lane.b32.xlu0 %v4214_v32, %s5739_s27  ;;  %v6108_v44 = vpack.i.bf16 %v458_v38, %v456_v33  ;;  %v448_v45 = vsel %vm438_vm0, %v445_v29, %v447_v34  ;;  %v459_v46 = vrot.slane %v6084_v31, 1  ;;  %v6114_v48 = vld [vmem:[%s6007_s15 + $0xb8] sm:$0x3]  ;;  %v6128_v55 = vld [vmem:[%s6007_s15 + $0xa0] sm:$0x3]  ;;  %v6154_v10 = vld [vmem:[%s6007_s15 + $0xc8] sm:$0xff] }
  0xaa   : > { %v460_v47 = vrot.slane %v6092_v36, 1  ;;  %v6120_v50 = vld [vmem:[%s6007_s15 + $0x98] sm:$0xff]  ;;  %v6122_v51 = vpack.i.bf16 %v448_v45, %v446_v39  ;;  %v466_v52 = vsel %vm438_vm0, %v464_v35, %v465_v40  ;;  %v468_v53 = vsel %vm438_vm0, %v465_v40, %v467_v41  ;;  %v6141_v61 = vld [vmem:[%s6007_s15 + $0xe0] sm:$0xff]  ;;  %v6144_v62 = vld [vmem:[%s6007_s15 + $0xe8] sm:$0x3]  ;;  %s5741_s17 = smov 12  }
  0xab   : > { %8937 = vst [vmem:[#allocation21_spill] sm:$0xff] %v6108_v44  ;;  %v462_v54 = vrot.slane %v6095_v37, 1  ;;  %v6131_v56 = vld [vmem:[%s6007_s15 + $0xd8] sm:$0xff]  ;;  %4230 = vrot.lane.b32.xlu1 %v6108_v44, %s5739_s27  ;;  %v6135_v57 = vpack.i.bf16 %v468_v53, %v466_v52  ;;  %v474_v59 = vrot.slane %v6102_v42, 1  ;;  %v475_v60 = vrot.slane %v6105_v43, 1  ;;  %v6151_v9 = vld [vmem:[%s6007_s15 + $0xc0] sm:$0xff] }
  0xac   : > { %8938 = vst [vmem:[#allocation22_spill] sm:$0xff] %v6122_v51  ;;  %v461_v58 = vsel %vm438_vm0, %v459_v46, %v460_v47  ;;  %v477_v3 = vrot.slane %v6114_v48, 1  ;;  %v469_v4 = vrot.slane %v6117_v49, 1  ;;  %v470_v5 = vrot.slane %v6120_v50, 1  ;;  %v6164_v21 = vld [vmem:[%s6007_s15 + $0xd0] sm:$0x3] }
  0xad   : > { %8939 = vst [vmem:[#allocation23_spill] sm:$0xff] %v6135_v57  ;;  %v463_v63 = vsel %vm438_vm0, %v460_v47, %v462_v54  ;;  %4220 = vrot.lane.b32.xlu0 %v6122_v51, %s5739_s27  ;;  %v476_v14 = vsel %vm438_vm0, %v474_v59, %v475_v60  ;;  %v472_v15 = vrot.slane %v6128_v55, 1  ;;  %v484_v20 = vrot.slane %v6131_v56, 1  ;;  %v6171_v29 = vld [vmem:[%s6007_s15 + $0x108] sm:$0xff]  ;;  %v6174_v32 = vld [vmem:[%s6007_s15 + $0x110] sm:$0xff]  ;;  %v6190_v41 = vld [vmem:[%s6007_s15 + $0xf8] sm:$0xff] }
  0xae   : > { %v6158_v13 = vpack.i.bf16 %v463_v63, %v461_v58  ;;  %v478_v22 = vsel %vm438_vm0, %v475_v60, %v477_v3  ;;  %v471_v26 = vsel %vm438_vm0, %v469_v4, %v470_v5  ;;  %v485_v27 = vrot.slane %v6141_v61, 1  ;;  %v6184_v39 = vld [vmem:[%s6007_s15 + $0x118] sm:$0x3]  ;;  %v6187_v40 = vld [vmem:[%s6007_s15 + $0xf0] sm:$0xff]  ;;  %v6196_v52 = vld [vmem:[%s6007_s15 + $0x100] sm:$0x3] }
  0xaf   : > { %v487_v28 = vrot.slane %v6144_v62, 1  ;;  %4240 = vrot.lane.b32.xlu1 %v6135_v57, %s5739_s27  ;;  %v6178_v33 = vpack.i.bf16 %v478_v22, %v476_v14  ;;  %v473_v34 = vsel %vm438_vm0, %v470_v5, %v472_v15  ;;  %v479_v35 = vrot.slane %v6151_v9, 1  ;;  %8942 = vst [vmem:[#allocation26_spill] sm:$0xff] %v6196_v52  ;;  %v6199_v53 = vld [vmem:[%s6007_s15 + $0x138] sm:$0xff]  ;;  %v6202_v54 = vld [vmem:[%s6007_s15 + $0x140] sm:$0xff]  ;;  %v6218_v5 = vld [vmem:[%s6007_s15 + $0x128] sm:$0xff] }
  0xb0   : > { %8940 = vst [vmem:[#allocation24_spill] sm:$0xff] %v6158_v13  ;;  %v480_v38 = vrot.slane %v6154_v10, 1  ;;  %v486_v45 = vsel %vm438_vm0, %v484_v20, %v485_v27  ;;  %v482_v47 = vrot.slane %v6164_v21, 1  ;;  %8943 = vst [vmem:[#allocation27_spill] sm:$0xff] %v6199_v53  ;;  %v6206_v58 = vpack.i.bf16 %v473_v34, %v471_v26  ;;  %v6212_v3 = vld [vmem:[%s6007_s15 + $0x148] sm:$0x3] }
  0xb1   : > { %8941 = vst [vmem:[#allocation25_spill] sm:$0xff] %v6178_v33  ;;  %v488_v46 = vsel %vm438_vm0, %v485_v27, %v487_v28  ;;  %4235 = vrot.lane.b32.xlu0 %v6158_v13, %s5739_s27  ;;  %v494_v60 = vrot.slane %v6171_v29, 1  ;;  %v495_v63 = vrot.slane %v6174_v32, 1  ;;  %8945 = vst [vmem:[#allocation29_spill] sm:$0xff] %v6212_v3  ;;  %v6215_v4 = vld [vmem:[%s6007_s15 + $0x120] sm:$0xff]  ;;  %v497_v15 = vrot.slane %v6184_v39, 1 }
  0xb2   : > { %8944 = vst [vmem:[#allocation28_spill] sm:$0xff] %v6206_v58  ;;  %v481_v59 = vsel %vm438_vm0, %v479_v35, %v480_v38  ;;  %v483_v14 = vsel %vm438_vm0, %v480_v38, %v482_v47  ;;  %v489_v20 = vrot.slane %v6187_v40, 1  ;;  %v490_v22 = vrot.slane %v6190_v41, 1  ;;  %v6225_v26 = vld [vmem:[%s6007_s15 + $0x130] sm:$0x3]  ;;  %v6228_v27 = vld [vmem:[%s6007_s15 + $0x168] sm:$0xff] }
  0xb3   : > { %4250 = vrot.lane.b32.xlu1 %v6178_v33, %s5739_s27  ;;  %v6232_v28 = vpack.i.bf16 %v488_v46, %v486_v45  ;;  %v496_v34 = vsel %vm438_vm0, %v494_v60, %v495_v63  ;;  %v492_v35 = vrot.slane %v6196_v52, 1  ;;  %v504_v38 = vrot.slane %v6199_v53, 1  ;;  %v6238_v47 = vld [vmem:[%s6007_s15 + $0x170] sm:$0xff]  ;;  %v6241_v57 = vld [vmem:[%s6007_s15 + $0x178] sm:$0x3]  ;;  %s5742_s26 = smov 16  }
  0xb4   : > { %8947 = vst [vmem:[#allocation31_spill] sm:$0xff] %v6241_v57  ;;  %v6244_v44 = vld [vmem:[%s6007_s15 + $0x150] sm:$0xff]  ;;  %v498_v13 = vsel %vm438_vm0, %v495_v63, %v497_v15  ;;  %v505_v51 = vrot.slane %v6202_v54, 1  ;;  %v507_v33 = vrot.slane %v6212_v3, 1  ;;  %v6250_v45 = vld [vmem:[%s6007_s15 + $0x160] sm:$0x3]  ;;  %v6254_v46 = vpack.i.bf16 %v483_v14, %v481_v59 }
  0xb5   : > { %8946 = vst [vmem:[#allocation30_spill] sm:$0xff] %v6232_v28  ;;  %4245 = vrot.lane.b32.xlu0 %v6206_v58, %s5739_s27  ;;  %v491_v60 = vsel %vm438_vm0, %v489_v20, %v490_v22  ;;  %v499_v19 = vrot.slane %v6215_v4, 1  ;;  %v6259_v53 = vld [vmem:[%s6007_s15 + $0x158] sm:$0xff]  ;;  %v6261_v52 = vpack.i.bf16 %v498_v13, %v496_v34  ;;  %v493_v63 = vsel %vm438_vm0, %v490_v22, %v492_v35  ;;  %s5743_s7 = smov 20   ;;  %s5744_s10 = smov 24  }
  0xb6   : > { %8948 = vst [vmem:[#allocation32_spill] sm:$0xff] %v6254_v46  ;;  %8949 = vst [vmem:[#allocation33_spill] sm:$0xff] %v6259_v53  ;;  %v500_v15 = vrot.slane %v6218_v5, 1  ;;  %v502_v3 = vrot.slane %v6225_v26, 1  ;;  %v506_v59 = vsel %vm438_vm0, %v504_v38, %v505_v51  ;;  %v508_v14 = vsel %vm438_vm0, %v505_v51, %v507_v33  ;;  %s5745_s16 = smov 28   ;;  %s5746_s12 = smov 32  }
  0xb7   : > { %4260 = vrot.lane.b32.xlu1 %v6232_v28, %s5739_s27  ;;  %v514_v20 = vrot.slane %v6228_v27, 1  ;;  %v515_v58 = vrot.slane %v6238_v47, 1  ;;  %v517_v13 = vrot.slane %v6241_v57, 1  ;;  %v509_v34 = vrot.slane %v6244_v44, 1  ;;  %s4100_s9 = smul.u32 160, %s6003_s13  ;;  %s5749_s8 = smov 48  }
  0xb8   : > { %v510_v22 = vrot.slane %v6259_v53, 1  ;;  %v6277_v35 = vpack.i.bf16 %v493_v63, %v491_v60  ;;  %v512_v28 = vrot.slane %v6250_v45, 1  ;;  %vm519_vm1 = vcmask 1045504   ;;  %s5750_s19 = smov 96   ;;  %s5751_s20 = smov 112  }
  0xb9   : > { %4255 = vrot.lane.b32.xlu0 %v6254_v46, %s5739_s27  ;;  %v6280_v38 = vpack.i.bf16 %v508_v14, %v506_v59  ;;  %v501_v51 = vsel %vm438_vm0, %v499_v19, %v500_v15  ;;  %v503_v33 = vsel %vm438_vm0, %v500_v15, %v502_v3  ;;  %v525_v57 = vrot.slane %v6057_v17, 2  ;;  %s7422_s30 = scalar_lea.vmem [#allocation13], %s4100_s9 }
  0xba   : > { %v516_v53 = vsel %vm438_vm0, %v514_v20, %v515_v58  ;;  %v518_v46 = vsel %vm438_vm0, %v515_v58, %v517_v13  ;;  %v526_v60 = vrot.slane %v6060_v18, 2  ;;  %v528_v63 = vrot.slane %v6068_v23, 2 }
  0xbb   : > { %8950 = vst [vmem:[#allocation34_spill] sm:$0xff] %v6280_v38  ;;  %4270 = vrot.lane.b32.xlu1 %v6261_v52, %s5739_s27  ;;  %v511_v59 = vsel %vm438_vm0, %v509_v34, %v510_v22  ;;  %v513_v14 = vsel %vm438_vm0, %v510_v22, %v512_v28  ;;  %v520_v19 = vrot.slane %v6034_v6, 2  ;;  %v521_v3 = vrot.slane %v6037_v7, 2 }
  0xbc   : > { %v523_v15 = vrot.slane %v6040_v8, 2  ;;  %v6298_v20 = vpack.i.bf16 %v503_v33, %v501_v51  ;;  %v535_v58 = vrot.slane %v6045_v11, 2  ;;  %v536_v13 = vrot.slane %v6048_v12, 2 }
  0xbd   : > { %4265 = vrot.lane.b32.xlu0 %v6277_v35, %s5739_s27  ;;  %v538_v23 = vrot.slane %v6054_v16, 2  ;;  %v533_v34 = vrot.slane %v6028_v2, 2  ;;  %v6306_v6 = vpack.i.bf16 %v518_v46, %v516_v53  ;;  %v6308_v7 = vpack.i.bf16 %v513_v14, %v511_v59 }
  0xbe   : > { %v527_v8 = vsel %vm519_vm1, %v525_v57, %v526_v60  ;;  %v529_v28 = vsel %vm519_vm1, %v526_v60, %v528_v63  ;;  %v522_v22 = vsel %vm519_vm1, %v520_v19, %v521_v3  ;;  %v530_v51 = vrot.slane %v6022_v0, 2 }
  0xbf   : > { %4280 = vrot.lane.b32.xlu1 %v6280_v38, %s5739_s27  ;;  %8951 = vst [vmem:[#allocation35_spill] sm:$0xff] %v6306_v6  ;;  %v531_v33 = vrot.slane %v6025_v1, 2  ;;  %v524_v2 = vsel %vm519_vm1, %v521_v3, %v523_v15  ;;  %v545_v16 = vrot.slane %v6071_v24, 2  ;;  %v546_v53 = vrot.slane %v6074_v25, 2 }
  0xc0   : > { %v548_v46 = vrot.slane %v6081_v30, 2  ;;  %v537_v57 = vsel %vm519_vm1, %v535_v58, %v536_v13  ;;  %v539_v60 = vsel %vm519_vm1, %v536_v13, %v538_v23  ;;  %v6325_v63 = vpack.i.bf16 %v529_v28, %v527_v8 }
  0xc1   : > { %4275 = vrot.lane.b32.xlu0 %v6298_v20, %s5739_s27  ;;  %v540_v59 = vrot.slane %v6084_v31, 2  ;;  %v541_v14 = vrot.slane %v6092_v36, 2  ;;  %v543_v19 = vrot.slane %v6095_v37, 2  ;;  %v4294_v3 = vpack.i.bf16 %v524_v2, %v522_v22 }
  0xc2   : > { %8952 = vst [vmem:[#allocation36_spill] sm:$0xff] %v6325_v63  ;;  %v532_v15 = vsel %vm519_vm1, %v530_v51, %v531_v33  ;;  %v6333_v30 = vpack.i.bf16 %v539_v60, %v537_v57  ;;  %v534_v58 = vsel %vm519_vm1, %v531_v33, %v533_v34  ;;  %v547_v13 = vsel %vm519_vm1, %v545_v16, %v546_v53 }
  0xc3   : > { %4290 = vrot.lane.b32.xlu1 %v6306_v6, %s5739_s27  ;;  %v549_v23 = vsel %vm519_vm1, %v546_v53, %v548_v46  ;;  %v555_v8 = vrot.slane %v6102_v42, 2  ;;  %v556_v28 = vrot.slane %v6105_v43, 2  ;;  %v558_v37 = vrot.slane %v6114_v48, 2 }
  0xc4   : > { %8953 = vst [vmem:[#allocation37_spill] sm:$0xff] %v6333_v30  ;;  %v550_v22 = vrot.slane %v6117_v49, 2  ;;  %v542_v51 = vsel %vm519_vm1, %v540_v59, %v541_v14  ;;  %v544_v34 = vsel %vm519_vm1, %v541_v14, %v543_v19  ;;  %v551_v33 = vrot.slane %v6120_v50, 2 }
  0xc5   : > { %4285 = vrot.lane.b32.xlu0 %v6308_v7, %s5739_s27  ;;  %v553_v2 = vrot.slane %v6128_v55, 2  ;;  %v6349_v16 = vpack.i.bf16 %v534_v58, %v532_v15  ;;  %v6351_v53 = vpack.i.bf16 %v549_v23, %v547_v13  ;;  %v6353_v48 = vpack.i.bf16 %v544_v34, %v542_v51  ;;  %v8956_v51 = vld [vmem:[#allocation27_spill] sm:$0xff]  ;;  %s5753_s27 = smov 80  }
  0xc6   : > { %v557_v46 = vsel %vm519_vm1, %v555_v8, %v556_v28  ;;  %v559_v57 = vsel %vm519_vm1, %v556_v28, %v558_v37  ;;  %v565_v60 = vrot.slane %v6131_v56, 2  ;;  %v552_v59 = vsel %vm519_vm1, %v550_v22, %v551_v33 }
  0xc7   : > { %4300 = vrot.lane.b32.xlu1 %v6325_v63, %s5740_s29  ;;  %8954 = vst [vmem:[#allocation38_spill] sm:$0xff] %v6349_v16  ;;  %v554_v55 = vsel %vm519_vm1, %v551_v33, %v553_v2  ;;  %v566_v14 = vrot.slane %v6141_v61, 2  ;;  %v568_v19 = vrot.slane %v6144_v62, 2  ;;  %v561_v15 = vrot.slane %v6154_v10, 2  ;;  %v8955_v62 = vld [vmem:[#allocation26_spill] sm:$0xff] }
  0xc8   : > { %v563_v58 = vrot.slane %v6164_v21, 2  ;;  %v575_v13 = vrot.slane %v6171_v29, 2  ;;  %v576_v23 = vrot.slane %v6174_v32, 2  ;;  %v578_v8 = vrot.slane %v6184_v39, 2  ;;  %v8957_v21 = vld [vmem:[#allocation29_spill] sm:$0xff] }
  0xc9   : > { %4295 = vrot.lane.b32.xlu0 %v4294_v3, %s5740_s29  ;;  %v560_v3 = vrot.slane %v6151_v9, 2  ;;  %v570_v28 = vrot.slane %v6187_v40, 2  ;;  %v571_v37 = vrot.slane %v6190_v41, 2  ;;  %v573_v22 = vrot.slane %v8955_v62, 2 }
  0xca   : > { %v585_v34 = vrot.slane %v8956_v51, 2  ;;  %v586_v33 = vrot.slane %v6202_v54, 2  ;;  %v588_v2 = vrot.slane %v8957_v21, 2  ;;  %v6382_v63 = vpack.i.bf16 %v554_v55, %v552_v59 }
  0xcb   : > { %4310 = vrot.lane.b32.xlu1 %v6333_v30, %s5740_s29  ;;  %v6380_v30 = vpack.i.bf16 %v559_v57, %v557_v46  ;;  %v567_v39 = vsel %vm519_vm1, %v565_v60, %v566_v14  ;;  %v562_v6 = vsel %vm519_vm1, %v560_v3, %v561_v15  ;;  %v564_v62 = vsel %vm519_vm1, %v561_v15, %v563_v58 }
  0xcc   : > { %v577_v21 = vsel %vm519_vm1, %v575_v13, %v576_v23  ;;  %v579_v38 = vsel %vm519_vm1, %v576_v23, %v578_v8  ;;  %v572_v46 = vsel %vm519_vm1, %v570_v28, %v571_v37  ;;  %v580_v57 = vrot.slane %v6215_v4, 2  ;;  %v8958_v28 = vld [vmem:[#allocation31_spill] sm:$0xff] }
  0xcd   : > { %4305 = vrot.lane.b32.xlu0 %v6349_v16, %s5740_s29  ;;  %v569_v16 = vsel %vm519_vm1, %v566_v14, %v568_v19  ;;  %v574_v59 = vsel %vm519_vm1, %v571_v37, %v573_v22  ;;  %v587_v60 = vsel %vm519_vm1, %v585_v34, %v586_v33  ;;  %v589_v55 = vsel %vm519_vm1, %v586_v33, %v588_v2  ;;  %v8960_v22 = vld [vmem:[#allocation33_spill] sm:$0xff]  ;;  %v6428_v2 = vld [vmem:[%s6007_s15 + $0x180] sm:$0xff] }
  0xce   : > { %v581_v14 = vrot.slane %v6218_v5, 2  ;;  %v6400_v19 = vpack.i.bf16 %v569_v16, %v567_v39  ;;  %v6402_v3 = vpack.i.bf16 %v564_v62, %v562_v6  ;;  %v6404_v15 = vpack.i.bf16 %v579_v38, %v577_v21  ;;  %v6431_v39 = vld [vmem:[%s6007_s15 + $0x188] sm:$0xff] }
  0xcf   : > { %4320 = vrot.lane.b32.xlu1 %v6351_v53, %s5740_s29  ;;  %v583_v58 = vrot.slane %v6225_v26, 2  ;;  %v6409_v13 = vpack.i.bf16 %v574_v59, %v572_v46  ;;  %v6411_v23 = vpack.i.bf16 %v589_v55, %v587_v60  ;;  %v595_v8 = vrot.slane %v6228_v27, 2  ;;  %v6421_v26 = vld [vmem:[%s6007_s15 + $0x190] sm:$0x3] }
  0xd0   : > { %v596_v16 = vrot.slane %v6238_v47, 2  ;;  %v582_v6 = vsel %vm519_vm1, %v580_v57, %v581_v14  ;;  %v598_v37 = vrot.slane %v8958_v28, 2  ;;  %v590_v38 = vrot.slane %v6244_v44, 2  ;;  %8959 = vst [vmem:[#allocation26_spill] sm:$0xff] %v6421_v26 }
  0xd1   : > { %4315 = vrot.lane.b32.xlu0 %v6353_v48, %s5740_s29  ;;  %v591_v34 = vrot.slane %v8960_v22, 2  ;;  %v593_v33 = vrot.slane %v6250_v45, 2  ;;  %v584_v62 = vsel %vm519_vm1, %v581_v14, %v583_v58  ;;  %v603_v21 = vrot.slane %v6428_v2, 1 }
  0xd2   : > { %v604_v46 = vrot.slane %v6431_v39, 1  ;;  %v606_v57 = vrot.slane %v6421_v26, 1  ;;  %v597_v59 = vsel %vm519_vm1, %v595_v8, %v596_v16  ;;  %v599_v60 = vsel %vm519_vm1, %v596_v16, %v598_v37 }
  0xd3   : > { %4330 = vrot.lane.b32.xlu1 %v6380_v30, %s5740_s29  ;;  %v6445_v14 = vpack.i.bf16 %v584_v62, %v582_v6  ;;  %v592_v58 = vsel %vm519_vm1, %v590_v38, %v591_v34  ;;  %v594_v28 = vsel %vm519_vm1, %v591_v34, %v593_v33  ;;  %v6453_v8 = vpack.i.bf16 %v599_v60, %v597_v59  ;;  %v8969_v33 = vld [vmem:[#allocation32_spill] sm:$0xff]  ;;  %v8970_v62 = vld [vmem:[#allocation25_spill] sm:$0xff] }
  0xd4   : > { %v605_v45 = vsel %vm438_vm0, %v603_v21, %v604_v46  ;;  %v607_v55 = vsel %vm438_vm0, %v604_v46, %v606_v57  ;;  %v6457_v16 = vpack.i.bf16 %v594_v28, %v592_v58  ;;  %v6463_v6 = vpack.i.bf16 %v6025_v1, %v6022_v0  ;;  %v8971_v21 = vld [vmem:[#allocation30_spill] sm:$0xff]  ;;  %v5414_v28 = vld [vmem:[#allocation6] sm:$0xff]  }
  0xd5   : > { %4325 = vrot.lane.b32.xlu0 %v6382_v63, %s5740_s29  ;;  %v6449_v26 = vpack.i.bf16 %v607_v55, %v605_v45  ;;  %v4374_v37 = vpack.i.bf16 %v6060_v18, %v6057_v17  ;;  %v6472_v38 = vpack.i.bf16 %v6092_v36, %v6084_v31  ;;  %v6476_v34 = vpack.i.bf16 %v6048_v12, %v6045_v11  ;;  %v8976_v45 = vld [vmem:[#allocation34_spill] sm:$0xff] }
  0xd6   : > { %v6481_v0 = vpack.i.bf16 %v6120_v50, %v6117_v49  ;;  %v6486_v1 = vpack.i.bf16 %v6074_v25, %v6071_v24  ;;  %v6491_v17 = vpack.i.bf16 %v6154_v10, %v6151_v9  ;;  %v6496_v11 = vpack.i.bf16 %v6105_v43, %v6102_v42  ;;  %v8963_v49 = vld [vmem:[#allocation20_spill] sm:$0xff]  ;;  %v8964_v50 = vld [vmem:[#allocation22_spill] sm:$0xff]  ;;  %v8968_v10 = vld [vmem:[#allocation23_spill] sm:$0xff]  ;;  %4040 = vmatprep.subr.bf16.mxu0 %v5414_v28 }
  0xd7   : > { %4340 = vrot.lane.b32.xlu1 %v6400_v19, %s5740_s29  ;;  %8961 = vst [vmem:[#allocation27_spill] sm:$0xff] %v6449_v26  ;;  %v6501_v12 = vpack.i.bf16 %v6190_v41, %v6187_v40  ;;  %v6506_v18 = vpack.i.bf16 %v6141_v61, %v6131_v56  ;;  %v6511_v24 = vpack.i.bf16 %v6218_v5, %v6215_v4  ;;  %v8965_v56 = vld [vmem:[#allocation24_spill] sm:$0xff]  ;;  %v8966_v61 = vld [vmem:[#allocation21_spill] sm:$0xff]  ;;  %vm1750_vm2 = vcmask 1041408  }
  0xd8   : > { %v6516_v25 = vpack.i.bf16 %v6174_v32, %v6171_v29  ;;  %v6521_v31 = vpack.i.bf16 %v8960_v22, %v6244_v44  ;;  %v6526_v36 = vpack.i.bf16 %v6202_v54, %v8956_v51  ;;  %v6531_v42 = vpack.i.bf16 %v6431_v39, %v6428_v2  ;;  %v8967_v9 = vld [vmem:[#allocation28_spill] sm:$0xff]  ;;  %4041 = vmatpush3.bf16.msra.mxu0 %v5414_v28 }
  0xd9   : > { %4335 = vrot.lane.b32.xlu0 %v6402_v3, %s5740_s29  ;;  %v6536_v43 = vpack.i.bf16 %v6238_v47, %v6228_v27  ;;  %vm1394_vm3 = vcmask 31744   ;;  %vm1427_vm4 = vcmask 64512   ;;  %vm1460_vm5 = vcmask 97280  }
  0xda   : > { %8962 = vst [vmem:[#allocation29_spill] sm:$0xff] %v6531_v42  ;;  %vm1493_vm6 = vcmask 130048   ;;  %vm1526_vm7 = vcmask 162816   ;;  %vm1559_vm8 = vcmask 195584   ;;  %vm1592_vm9 = vcmask 228352  }
  0xdb   : > { %4350 = vrot.lane.b32.xlu1 %v6404_v15, %s5740_s29  ;;  %vm1625_vm10 = vcmask 261120   ;;  %vm1701_vm11 = vcmask 293888   ;;  %vm1949_vm12 = vcmask 123904   ;;  %vm1955_vm13 = vcmask 122880  }
  0xdc   : > { %vm3081_vm14 = vcmask 392192   ;;  %vm3114_vm15 = vcmask 523264  }
  0xdd   : > { %4345 = vrot.lane.b32.xlu0 %v6409_v13, %s5740_s29 }
  0xdf   : > { %4360 = vrot.lane.b32.xlu1 %v6411_v23, %s5740_s29 }
  0xe1   : > { %4355 = vrot.lane.b32.xlu0 %v6445_v14, %s5740_s29 }
  0xe3   : > { %4370 = vrot.lane.b32.xlu1 %v6453_v8, %s5740_s29 }
  0xe5   : > { %4365 = vrot.lane.b32.xlu0 %v6457_v16, %s5740_s29 }
  0xe7   : > { %4380 = vrot.lane.b32.xlu1 %v6463_v6, %s5741_s17 }
  0xe9   : > { %4375 = vrot.lane.b32.xlu0 %v4374_v37, %s5741_s17  ;;  %v8979_v37 = vld [vmem:[#allocation35_spill] sm:$0xff] }
  0xeb   : > { %4390 = vrot.lane.b32.xlu1 %v6472_v38, %s5741_s17 }
  0xed   : > { %4385 = vrot.lane.b32.xlu0 %v6476_v34, %s5741_s17 }
  0xef   : > { %4400 = vrot.lane.b32.xlu1 %v6481_v0, %s5741_s17 }
  0xf1   : > { %4395 = vrot.lane.b32.xlu0 %v6486_v1, %s5741_s17 }
  0xf3   : > { %4410 = vrot.lane.b32.xlu1 %v6491_v17, %s5741_s17 }
  0xf5   : > { %4405 = vrot.lane.b32.xlu0 %v6496_v11, %s5741_s17 }
  0xf7   : > { %4420 = vrot.lane.b32.xlu1 %v6501_v12, %s5741_s17 }
  0xf9   : > { %4415 = vrot.lane.b32.xlu0 %v6506_v18, %s5741_s17 }
  0xfb   : > { %4430 = vrot.lane.b32.xlu1 %v6511_v24, %s5741_s17 }
  0xfd   : > { %4425 = vrot.lane.b32.xlu0 %v6516_v25, %s5741_s17 }
  0xff   : > { %4440 = vrot.lane.b32.xlu1 %v6521_v31, %s5741_s17 }
 0x101   : > { %4435 = vrot.lane.b32.xlu0 %v6526_v36, %s5741_s17 }
 0x103   : > { %4450 = vrot.lane.b32.xlu1 %v6531_v42, %s5741_s17 }
 0x105   : > { %4445 = vrot.lane.b32.xlu0 %v6536_v43, %s5741_s17  ;;  %s3926_s17 = sshll.u32 %s6003_s13, 8 }
 0x107   : > { %4460 = vrot.lane.b32.xlu1 %v8963_v49, %s5742_s26 }
 0x109   : > { %4455 = vrot.lane.b32.xlu0 %v8964_v50, %s5742_s26 }
 0x10b   : > { %4470 = vrot.lane.b32.xlu1 %v8965_v56, %s5742_s26 }
 0x10d   : > { %4465 = vrot.lane.b32.xlu0 %v8966_v61, %s5742_s26 }
 0x10f   : > { %4480 = vrot.lane.b32.xlu1 %v8967_v9, %s5742_s26 }
 0x111   : > { %4475 = vrot.lane.b32.xlu0 %v8968_v10, %s5742_s26 }
 0x113   : > { %4490 = vrot.lane.b32.xlu1 %v8969_v33, %s5742_s26 }
 0x115   : > { %4485 = vrot.lane.b32.xlu0 %v8970_v62, %s5742_s26 }
 0x117   : > { %4500 = vrot.lane.b32.xlu1 %v6277_v35, %s5742_s26 }
 0x119   : > { %4495 = vrot.lane.b32.xlu0 %v8971_v21, %s5742_s26  ;;  %v6560_v46 = vpop.permute.xlu1 %4225 }
 0x11a   : > { %8972 = vst [vmem:[#allocation31_spill] sm:$0xff] %v6560_v46 }
 0x11b   : > { %v6562_v57 = vpop.permute.xlu0 %4215  ;;  %4510 = vrot.lane.b32.xlu1 %v6298_v20, %s5742_s26 }
 0x11c   : > { %8973 = vst [vmem:[#allocation33_spill] sm:$0xff] %v6562_v57 }
 0x11d   : > { %4505 = vrot.lane.b32.xlu0 %v6261_v52, %s5742_s26  ;;  %v6568_v59 = vpop.permute.xlu1 %4230 }
 0x11e   : > { %8974 = vst [vmem:[#allocation20_spill] sm:$0xff] %v6568_v59 }
 0x11f   : > { %v6570_v60 = vpop.permute.xlu0 %4220  ;;  %4520 = vrot.lane.b32.xlu1 %v6308_v7, %s5742_s26 }
 0x120   : > { %8975 = vst [vmem:[#allocation22_spill] sm:$0xff] %v6570_v60  ;;  %v8982_v60 = vld [vmem:[#allocation38_spill] sm:$0xff] }
 0x121   : > { %4515 = vrot.lane.b32.xlu0 %v8976_v45, %s5742_s26  ;;  %v6576_v55 = vpop.permute.xlu1 %4240 }
 0x122   : > { %8977 = vst [vmem:[#allocation24_spill] sm:$0xff] %v6576_v55  ;;  %v5415_v55 = vld [vmem:[#allocation6 + $0x8] sm:$0xff]  }
 0x123   : > { %v6578_v58 = vpop.permute.xlu0 %4235  ;;  %4530 = vrot.lane.b32.xlu1 %v6449_v26, %s5742_s26  ;;  %4042 = vmatprep.subr.bf16.mxu0 %v5415_v55 }
 0x124   : > { %8978 = vst [vmem:[#allocation21_spill] sm:$0xff] %v6578_v58  ;;  %v8983_v58 = vld [vmem:[#allocation36_spill] sm:$0xff]  ;;  %4043 = vmatpush3.bf16.msra.mxu0 %v5415_v55 }
 0x125   : > { %4525 = vrot.lane.b32.xlu0 %v8979_v37, %s5742_s26  ;;  %v6584_v50 = vpop.permute.xlu1 %4250 }
 0x126   : > { %8980 = vst [vmem:[#allocation28_spill] sm:$0xff] %v6584_v50  ;;  %v5416_v50 = vld [vmem:[#allocation6 + $0x10] ss:$0 sps:$4 sm:$0x33]  }
 0x127   : > { %v6586_v42 = vpop.permute.xlu0 %4245  ;;  %4540 = vrot.lane.b32.xlu1 %v8982_v60, %s5743_s7  ;;  %4096 = vmatprep.subr.msk.bf16.mxu0 %vm1750_vm2, %v5416_v50 }
 0x128   : > { %8981 = vst [vmem:[#allocation23_spill] sm:$0xff] %v6586_v42  ;;  %v8986_v42 = vld [vmem:[#allocation37_spill] sm:$0xff] }
 0x129   : > { %4535 = vrot.lane.b32.xlu0 %v8983_v58, %s5743_s7  ;;  %v6592_v59 = vpop.permute.xlu1 %4260  ;;  %v1752_v58 = vsel %vm1750_vm2, %v5416_v50, 0  ;;  %vm3147_vm2 = vcmask 654336  }
 0x12a   : > { %8984 = vst [vmem:[#allocation32_spill] sm:$0xff] %v6592_v59  ;;  %4045 = vmatpush3.bf16.msra.mxu0 %v1752_v58 }
 0x12b   : > { %v6594_v26 = vpop.permute.xlu0 %4255  ;;  %4550 = vrot.lane.b32.xlu1 %v6353_v48, %s5743_s7 }
 0x12c   : > { %8985 = vst [vmem:[#allocation25_spill] sm:$0xff] %v6594_v26 }
 0x12d   : > { %4545 = vrot.lane.b32.xlu0 %v8986_v42, %s5743_s7  ;;  %v4271_v57 = vpop.permute.xlu1 %4270 }
 0x12e   : > { %v4272_v50 = vunpack.i.l.bf16 %v4271_v57 }
 0x12f   : > { %v4266_v28 = vpop.permute.xlu0 %4265  ;;  %4560 = vrot.lane.b32.xlu1 %v6476_v34, %s5744_s10 }
 0x131   : > { %4555 = vrot.lane.b32.xlu0 %v6463_v6, %s5744_s10  ;;  %v4281_v26 = vpop.permute.xlu1 %4280 }
 0x133   : > { %v6604_v59 = vpop.permute.xlu0 %4275  ;;  %4570 = vrot.lane.b32.xlu1 %v8966_v61, %s5745_s16 }
 0x135   : > { %4565 = vrot.lane.b32.xlu0 %v8963_v49, %s5745_s16  ;;  %v6610_v55 = vpop.permute.xlu1 %4290 }
 0x137   : > { %v6612_v46 = vpop.permute.xlu0 %4285  ;;  %4580 = vrot.lane.b32.xlu1 %v8986_v42, %s5746_s12 }
 0x139   : > { %4575 = vrot.lane.b32.xlu0 %v8982_v60, %s5746_s12  ;;  %v6618_v6 = vpop.permute.xlu1 %4300 }
 0x13b   : > { %v6620_v34 = vpop.permute.xlu0 %4295  ;;  %4590 = vrot.lane.b32.xlu1 %v6486_v1, %s5744_s10 }
 0x13d   : > { %4585 = vrot.lane.b32.xlu0 %v6472_v38, %s5744_s10  ;;  %v6626_v49 = vpop.permute.xlu1 %4310 }
 0x13f   : > { %v6628_v61 = vpop.permute.xlu0 %4305  ;;  %4600 = vrot.lane.b32.xlu1 %v8968_v10, %s5745_s16  ;;  %v4273_v10 = vunpack.i.h.bf16 %v4271_v57  ;;  %v1417_v57 = vsel %vm1394_vm3, %v6171_v29, %v4272_v50 }
 0x140   : > { %8987 = vst [vmem:[#allocation30_spill] sm:$0xff] %v6628_v61 }
 0x141   : > { %4595 = vrot.lane.b32.xlu0 %v8965_v56, %s5745_s16  ;;  %v6634_v42 = vpop.permute.xlu1 %4320 }
 0x142   : > { %8988 = vst [vmem:[#allocation34_spill] sm:$0xff] %v6634_v42 }
 0x143   : > { %v6636_v60 = vpop.permute.xlu0 %4315  ;;  %4610 = vrot.lane.b32.xlu1 %v6351_v53, %s5746_s12 }
 0x144   : > { %8989 = vst [vmem:[#allocation35_spill] sm:$0xff] %v6636_v60  ;;  %v4267_v60 = vunpack.i.l.bf16 %v4266_v28 }
 0x145   : > { %4605 = vrot.lane.b32.xlu0 %v6353_v48, %s5746_s12  ;;  %v6642_v38 = vpop.permute.xlu1 %4330  ;;  %v4268_v48 = vunpack.i.h.bf16 %v4266_v28 }
 0x146   : > { %8990 = vst [vmem:[#allocation38_spill] sm:$0xff] %v6642_v38  ;;  %v1415_v29 = vsel %vm1394_vm3, %v6187_v40, %v4267_v60  ;;  %v4292_v60 = vunpack.i.l.bf16 %v6610_v55 }
 0x147   : > { %v6644_v1 = vpop.permute.xlu0 %4325  ;;  %4620 = vrot.lane.b32.xlu1 %v6382_v63, %s5743_s7 }
 0x148   : > { %8991 = vst [vmem:[#allocation36_spill] sm:$0xff] %v6644_v1 }
 0x149   : > { %4615 = vrot.lane.b32.xlu0 %v6351_v53, %s5743_s7  ;;  %v6650_v56 = vpop.permute.xlu1 %4340  ;;  %v1418_v53 = vsel %vm1394_vm3, %v6174_v32, %v4273_v10  ;;  %v1416_v32 = vsel %vm1394_vm3, %v6190_v41, %v4268_v48  ;;  %v4277_v10 = vunpack.i.l.bf16 %v6604_v59 }
 0x14a   : > { %8992 = vst [vmem:[#allocation37_spill] sm:$0xff] %v6650_v56  ;;  %v4282_v56 = vunpack.i.l.bf16 %v4281_v26 }
 0x14b   : > { %v6652_v58 = vpop.permute.xlu0 %4335  ;;  %4630 = vrot.lane.b32.xlu1 %v6496_v11, %s5744_s10 }
 0x14c   : > { %8993 = vst [vmem:[#allocation39_spill] sm:$0xff] %v6652_v58  ;;  %v4283_v58 = vunpack.i.h.bf16 %v4281_v26  ;;  %v4278_v26 = vunpack.i.h.bf16 %v6604_v59  ;;  %v1421_v40 = vsel %vm1394_vm3, %v8956_v51, %v4282_v56  ;;  %v4293_v59 = vunpack.i.h.bf16 %v6610_v55 }
 0x14d   : > { %4625 = vrot.lane.b32.xlu0 %v6481_v0, %s5744_s10  ;;  %v4351_v1 = vpop.permute.xlu1 %4350  ;;  %v1419_v51 = vsel %vm1394_vm3, %v6215_v4, %v4277_v10  ;;  %v4288_v55 = vunpack.i.h.bf16 %v6612_v46  ;;  %v4287_v56 = vunpack.i.l.bf16 %v6612_v46  ;;  %v1425_v4 = vsel %vm1394_vm3, %v6228_v27, %v4292_v60 }
 0x14e   : > { %v4353_v38 = vunpack.i.h.bf16 %v4351_v1  ;;  %v4352_v42 = vunpack.i.l.bf16 %v4351_v1  ;;  %v1422_v41 = vsel %vm1394_vm3, %v6202_v54, %v4283_v58  ;;  %v1420_v54 = vsel %vm1394_vm3, %v6218_v5, %v4278_v26 }
 0x14f   : > { %v4346_v61 = vpop.permute.xlu0 %4345  ;;  %4640 = vrot.lane.b32.xlu1 %v8970_v62, %s5745_s16  ;;  %v1426_v5 = vsel %vm1394_vm3, %v6238_v47, %v4293_v59 }
 0x150   : > { %v6665_v11 = vsel %vm1427_vm4, %v1418_v53, %v4353_v38  ;;  %v6668_v0 = vsel %vm1427_vm4, %v1417_v57, %v4352_v42  ;;  %v4348_v28 = vunpack.i.h.bf16 %v4346_v61  ;;  %v4347_v1 = vunpack.i.l.bf16 %v4346_v61 }
 0x151   : > { %4635 = vrot.lane.b32.xlu0 %v8967_v9, %s5745_s16  ;;  %v4361_v62 = vpop.permute.xlu1 %4360 }
 0x152   : > { %v6679_v38 = vsel %vm1427_vm4, %v1415_v29, %v4347_v1  ;;  %v6682_v42 = vsel %vm1427_vm4, %v1416_v32, %v4348_v28  ;;  %v4363_v61 = vunpack.i.h.bf16 %v4361_v62  ;;  %v4362_v50 = vunpack.i.l.bf16 %v4361_v62 }
 0x153   : > { %v4356_v9 = vpop.permute.xlu0 %4355  ;;  %4650 = vrot.lane.b32.xlu1 %v6380_v30, %s5746_s12 }
 0x154   : > { %v6693_v48 = vsel %vm1427_vm4, %v1422_v41, %v4363_v61  ;;  %v6696_v53 = vsel %vm1427_vm4, %v1421_v40, %v4362_v50  ;;  %v4358_v57 = vunpack.i.h.bf16 %v4356_v9  ;;  %v4357_v28 = vunpack.i.l.bf16 %v4356_v9 }
 0x155   : > { %4645 = vrot.lane.b32.xlu0 %v6382_v63, %s5746_s12  ;;  %v4371_v58 = vpop.permute.xlu1 %4370  ;;  %v1424_v50 = vsel %vm1394_vm3, %v8960_v22, %v4288_v55  ;;  %v1423_v41 = vsel %vm1394_vm3, %v6244_v44, %v4287_v56 }
 0x156   : > { %v1452_v1 = vsel %vm1427_vm4, %v1419_v51, %v4357_v28  ;;  %v1453_v32 = vsel %vm1427_vm4, %v1420_v54, %v4358_v57  ;;  %v4373_v29 = vunpack.i.h.bf16 %v4371_v58  ;;  %v4372_v62 = vunpack.i.l.bf16 %v4371_v58 }
 0x157   : > { %v4366_v26 = vpop.permute.xlu0 %4365  ;;  %4660 = vrot.lane.b32.xlu1 %v6402_v3, %s5743_s7 }
 0x158   : > { %v1459_v46 = vsel %vm1427_vm4, %v1426_v5, %v4373_v29  ;;  %v1458_v63 = vsel %vm1427_vm4, %v1425_v4, %v4372_v62  ;;  %v4368_v10 = vunpack.i.h.bf16 %v4366_v26  ;;  %v4367_v61 = vunpack.i.l.bf16 %v4366_v26 }
 0x159   : > { %4655 = vrot.lane.b32.xlu0 %v6380_v30, %s5743_s7  ;;  %v6722_v27 = vpop.permute.xlu1 %4380 }
 0x15a   : > { %v1456_v47 = vsel %vm1427_vm4, %v1423_v41, %v4367_v61  ;;  %v1457_v40 = vsel %vm1427_vm4, %v1424_v50, %v4368_v10 }
 0x15b   : > { %v6726_v59 = vpop.permute.xlu0 %4375  ;;  %4670 = vrot.lane.b32.xlu1 %v6506_v18, %s5744_s10 }
 0x15d   : > { %4665 = vrot.lane.b32.xlu0 %v6491_v17, %s5744_s10  ;;  %v6732_v22 = vpop.permute.xlu1 %4390 }
 0x15f   : > { %v6734_v44 = vpop.permute.xlu0 %4385  ;;  %4680 = vrot.lane.b32.xlu1 %v8971_v21, %s5745_s16 }
 0x161   : > { %4675 = vrot.lane.b32.xlu0 %v8969_v33, %s5745_s16  ;;  %v6740_v30 = vpop.permute.xlu1 %4400 }
 0x163   : > { %v6742_v60 = vpop.permute.xlu0 %4395  ;;  %4690 = vrot.lane.b32.xlu1 %v6400_v19, %s5746_s12 }
 0x165   : > { %4685 = vrot.lane.b32.xlu0 %v6402_v3, %s5746_s12  ;;  %v6748_v17 = vpop.permute.xlu1 %4410 }
 0x167   : > { %v6750_v18 = vpop.permute.xlu0 %4405  ;;  %4700 = vrot.lane.b32.xlu1 %v6409_v13, %s5743_s7 }
 0x169   : > { %4695 = vrot.lane.b32.xlu0 %v6400_v19, %s5743_s7  ;;  %v6756_v33 = vpop.permute.xlu1 %4420 }
 0x16b   : > { %v6758_v21 = vpop.permute.xlu0 %4415  ;;  %4710 = vrot.lane.b32.xlu1 %v6516_v25, %s5744_s10 }
 0x16d   : > { %4705 = vrot.lane.b32.xlu0 %v6501_v12, %s5744_s10  ;;  %v4431_v3 = vpop.permute.xlu1 %4430 }
 0x16e   : > { %v4433_v9 = vunpack.i.h.bf16 %v4431_v3  ;;  %v4432_v57 = vunpack.i.l.bf16 %v4431_v3  ;;  %v9003_v3 = vld [vmem:[#allocation26_spill] sm:$0xff] }
 0x16f   : > { %v4426_v28 = vpop.permute.xlu0 %4425  ;;  %4720 = vrot.lane.b32.xlu1 %v6261_v52, %s5745_s16 }
 0x170   : > { %v6768_v19 = vsel %vm1460_vm5, %v6668_v0, %v4432_v57  ;;  %v6772_v54 = vsel %vm1460_vm5, %v6665_v11, %v4433_v9  ;;  %v4428_v25 = vunpack.i.h.bf16 %v4426_v28  ;;  %v4427_v51 = vunpack.i.l.bf16 %v4426_v28 }
 0x171   : > { %4715 = vrot.lane.b32.xlu0 %v6277_v35, %s5745_s16  ;;  %v4441_v12 = vpop.permute.xlu1 %4440  ;;  %v611_v9 = vrot.slane %v9003_v3, 2 }
 0x172   : > { %v6778_v55 = vsel %vm1460_vm5, %v6679_v38, %v4427_v51  ;;  %v6782_v52 = vsel %vm1460_vm5, %v6682_v42, %v4428_v25  ;;  %v4443_v0 = vunpack.i.h.bf16 %v4441_v12  ;;  %v4442_v56 = vunpack.i.l.bf16 %v4441_v12  ;;  %v387_v25 = vld [vmem:[%s6007_s15 + $0x198] sm:$0xff]  ;;  %v389_v51 = vld [vmem:[%s6007_s15 + $0x1a8] sm:$0x3] }
 0x173   : > { %8994 = vst [vmem:[#allocation40_spill] sm:$0xff] %v6782_v52  ;;  %v4436_v58 = vpop.permute.xlu0 %4435  ;;  %4730 = vrot.lane.b32.xlu1 %v6404_v15, %s5746_s12 }
 0x174   : > { %v6788_v11 = vsel %vm1460_vm5, %v6696_v53, %v4442_v56  ;;  %v6792_v35 = vsel %vm1460_vm5, %v6693_v48, %v4443_v0  ;;  %v4438_v38 = vunpack.i.h.bf16 %v4436_v58  ;;  %v4437_v29 = vunpack.i.l.bf16 %v4436_v58  ;;  %v9006_v58 = vld [vmem:[#allocation31_spill] sm:$0xff] }
 0x175   : > { %8995 = vst [vmem:[#allocation41_spill] sm:$0xff] %v6788_v11  ;;  %8996 = vst [vmem:[#allocation42_spill] sm:$0xff] %v6792_v35  ;;  %4725 = vrot.lane.b32.xlu0 %v6409_v13, %s5746_s12  ;;  %v4451_v42 = vpop.permute.xlu1 %4450  ;;  %v616_v0 = vrot.slane %v387_v25, 1  ;;  %v619_v56 = vrot.slane %v389_v51, 1  ;;  %v4378_v35 = vunpack.i.h.bf16 %v6726_v59 }
 0x176   : > { %v6797_v62 = vsel %vm1460_vm5, %v1452_v1, %v4437_v29  ;;  %v6800_v5 = vsel %vm1460_vm5, %v1453_v32, %v4438_v38  ;;  %v4453_v4 = vunpack.i.h.bf16 %v4451_v42  ;;  %v4452_v26 = vunpack.i.l.bf16 %v4451_v42 }
 0x177   : > { %8997 = vst [vmem:[#allocation43_spill] sm:$0xff] %v6797_v62  ;;  %8998 = vst [vmem:[#allocation44_spill] sm:$0xff] %v6800_v5  ;;  %v4446_v53 = vpop.permute.xlu0 %4445  ;;  %4740 = vrot.lane.b32.xlu1 %v6445_v14, %s5743_s7  ;;  %v4228_v38 = vunpack.i.h.bf16 %v9006_v58  ;;  %v4227_v29 = vunpack.i.l.bf16 %v9006_v58  ;;  %v9011_v58 = vld [vmem:[#allocation24_spill] sm:$0xff]  ;;  %v9017_v62 = vld [vmem:[#allocation27_spill] sm:$0xff] }
 0x178   : > { %v6805_v48 = vsel %vm1460_vm5, %v1458_v63, %v4452_v26  ;;  %v6808_v10 = vsel %vm1460_vm5, %v1459_v46, %v4453_v4  ;;  %v4448_v13 = vunpack.i.h.bf16 %v4446_v53  ;;  %v4447_v61 = vunpack.i.l.bf16 %v4446_v53  ;;  %v9007_v4 = vld [vmem:[#allocation33_spill] sm:$0xff]  ;;  %v9008_v53 = vld [vmem:[#allocation20_spill] sm:$0xff] }
 0x179   : > { %8999 = vst [vmem:[#allocation45_spill] sm:$0xff] %v6805_v48  ;;  %9000 = vst [vmem:[#allocation46_spill] sm:$0xff] %v6808_v10  ;;  %4735 = vrot.lane.b32.xlu0 %v6404_v15, %s5743_s7  ;;  %v6812_v1 = vpop.permute.xlu1 %4460  ;;  %v4218_v26 = vunpack.i.h.bf16 %v9007_v4  ;;  %v5426_v10 = vld [vmem:[%s6007_s15 + $0x38] sm:$0xff] }
 0x17a   : > { %v6815_v32 = vsel %vm1460_vm5, %v1456_v47, %v4447_v61  ;;  %v6818_v50 = vsel %vm1460_vm5, %v1457_v40, %v4448_v13  ;;  %v608_v40 = vrot.slane %v6428_v2, 2  ;;  %v4233_v13 = vunpack.i.h.bf16 %v9008_v53 }
 0x17b   : > { %9001 = vst [vmem:[#allocation47_spill] sm:$0xff] %v6815_v32  ;;  %9002 = vst [vmem:[#allocation48_spill] sm:$0xff] %v6818_v50  ;;  %v6820_v41 = vpop.permute.xlu0 %4455  ;;  %4750 = vrot.lane.b32.xlu1 %v6526_v36, %s5744_s10  ;;  %v4232_v61 = vunpack.i.l.bf16 %v9008_v53  ;;  %v624_v32 = vrot.slane %v389_v51, 2 }
 0x17d   : > { %4745 = vrot.lane.b32.xlu0 %v6511_v24, %s5744_s10  ;;  %v6826_v46 = vpop.permute.xlu1 %4470 }
 0x17f   : > { %v6828_v63 = vpop.permute.xlu0 %4465  ;;  %4760 = vrot.lane.b32.xlu1 %v8976_v45, %s5745_s16 }
 0x181   : > { %4755 = vrot.lane.b32.xlu0 %v6298_v20, %s5745_s16  ;;  %v6834_v15 = vpop.permute.xlu1 %4480 }
 0x183   : > { %v6836_v47 = vpop.permute.xlu0 %4475  ;;  %4770 = vrot.lane.b32.xlu1 %v6411_v23, %s5746_s12 }
 0x185   : > { %4765 = vrot.lane.b32.xlu0 %v6445_v14, %s5746_s12  ;;  %v6842_v24 = vpop.permute.xlu1 %4490  ;;  %v609_v14 = vrot.slane %v6431_v39, 2  ;;  %v388_v39 = vld [vmem:[%s6007_s15 + $0x1a0] sm:$0xff] }
 0x186   : > { %v4829_v42 = vpack.i.bf16 %v388_v39, %v387_v25 }
 0x187   : > { %v6844_v36 = vpop.permute.xlu0 %4485  ;;  %4780 = vrot.lane.b32.xlu1 %v6457_v16, %s5743_s7 }
 0x189   : > { %4775 = vrot.lane.b32.xlu0 %v6411_v23, %s5743_s7  ;;  %v6850_v20 = vpop.permute.xlu1 %4500  ;;  %v610_v23 = vsel %vm519_vm1, %v608_v40, %v609_v14  ;;  %v9010_v40 = vld [vmem:[#allocation22_spill] sm:$0xff] }
 0x18a   : > { %v4223_v3 = vunpack.i.h.bf16 %v9010_v40 }
 0x18b   : > { %v6852_v45 = vpop.permute.xlu0 %4495  ;;  %4790 = vrot.lane.b32.xlu1 %v6536_v43, %s5744_s10  ;;  %v612_v43 = vsel %vm519_vm1, %v609_v14, %v611_v9  ;;  %v4222_v9 = vunpack.i.l.bf16 %v9010_v40  ;;  %v1400_v40 = vsel %vm1394_vm3, %v5426_v10, %v4228_v38 }
 0x18c   : > { %v6880_v12 = vpack.i.bf16 %v612_v43, %v610_v23  ;;  %v622_v23 = vrot.slane %v388_v39, 2  ;;  %v621_v43 = vrot.slane %v387_v25, 2  ;;  %v4242_v25 = vunpack.i.l.bf16 %v9011_v58 }
 0x18d   : > { %4785 = vrot.lane.b32.xlu0 %v6521_v31, %s5744_s10  ;;  %v6861_v57 = vpop.permute.xlu1 %4510 }
 0x18f   : > { %v6863_v28 = vpop.permute.xlu0 %4505  ;;  %4800 = vrot.lane.b32.xlu1 %v8979_v37, %s5745_s16  ;;  %v617_v37 = vrot.slane %v388_v39, 1  ;;  %v5427_v39 = vld [vmem:[%s6007_s15 + $0x30] sm:$0xff] }
 0x190   : > { %v6906_v48 = vsel %vm1394_vm3, %v5427_v39, %v4227_v29  ;;  %v5432_v29 = vld [vmem:[%s6007_s15 + $0x20] sm:$0xff]  ;;  %v5433_v39 = vld [vmem:[%s6007_s15 + $0x18] sm:$0xff] }
 0x191   : > { %4795 = vrot.lane.b32.xlu0 %v6308_v7, %s5745_s16  ;;  %v6874_v2 = vpop.permute.xlu1 %4520  ;;  %v4217_v7 = vunpack.i.l.bf16 %v9007_v4  ;;  %v4243_v4 = vunpack.i.h.bf16 %v9011_v58  ;;  %v620_v53 = vsel %vm438_vm0, %v617_v37, %v619_v56  ;;  %v5431_v56 = vld [vmem:[%s6007_s15 + $0x48] sm:$0xff]  ;;  %v1398_v58 = vsel %vm1394_vm3, %v5432_v29, %v4223_v3 }
 0x192   : > { %9004 = vst [vmem:[#allocation26_spill] sm:$0xff] %v6874_v2  ;;  %v1401_v38 = vsel %vm1394_vm3, %v5431_v56, %v4232_v61  ;;  %v625_v61 = vsel %vm519_vm1, %v622_v23, %v624_v32  ;;  %v4298_v29 = vunpack.i.h.bf16 %v6620_v34  ;;  %v9014_v32 = vld [vmem:[#allocation29_spill] sm:$0xff]  ;;  %v9016_v56 = vld [vmem:[#allocation28_spill] sm:$0xff] }
 0x193   : > { %v6876_v31 = vpop.permute.xlu0 %4515  ;;  %4810 = vrot.lane.b32.xlu1 %v6453_v8, %s5746_s12 }
 0x194   : > { %9005 = vst [vmem:[#allocation49_spill] sm:$0xff] %v6876_v31 }
 0x195   : > { %4805 = vrot.lane.b32.xlu0 %v6457_v16, %s5746_s12  ;;  %v6890_v14 = vpop.permute.xlu1 %4530  ;;  %v618_v16 = vsel %vm438_vm0, %v616_v0, %v617_v37  ;;  %v5429_v0 = vld [vmem:[%s6007_s15] sm:$0xff]  ;;  %v5430_v37 = vld [vmem:[%s6007_s15 + $0x50] sm:$0xff] }
 0x196   : > { %9009 = vst [vmem:[#allocation31_spill] sm:$0xff] %v6890_v14  ;;  %v1395_v5 = vsel %vm1394_vm3, %v5429_v0, %v4217_v7  ;;  %v1402_v51 = vsel %vm1394_vm3, %v5430_v37, %v4233_v13  ;;  %v5434_v7 = vld [vmem:[%s6007_s15 + $0x80] sm:$0xff]  ;;  %v5435_v37 = vld [vmem:[%s6007_s15 + $0x78] sm:$0xff] }
 0x197   : > { %v6895_v50 = vpop.permute.xlu0 %4525  ;;  %4820 = vrot.lane.b32.xlu1 %v6880_v12, %s5743_s7  ;;  %v6926_v0 = vsel %vm1394_vm3, %v5434_v7, %v4243_v4  ;;  %v6935_v3 = vsel %vm1394_vm3, %v5435_v37, %v4242_v25  ;;  %v4297_v4 = vunpack.i.l.bf16 %v6620_v34  ;;  %v4382_v7 = vunpack.i.l.bf16 %v6722_v27 }
 0x198   : > { %9012 = vst [vmem:[#allocation33_spill] sm:$0xff] %v6895_v50  ;;  %v5428_v50 = vld [vmem:[%s6007_s15 + $0x8] sm:$0xff]  ;;  %v4383_v34 = vunpack.i.h.bf16 %v6722_v27 }
 0x199   : > { %v1396_v14 = vsel %vm1394_vm3, %v5428_v50, %v4218_v26  ;;  %4815 = vrot.lane.b32.xlu0 %v6453_v8, %s5743_s7  ;;  %v6916_v10 = vpop.permute.xlu1 %4540  ;;  %v1397_v50 = vsel %vm1394_vm3, %v5433_v39, %v4222_v9  ;;  %v4839_v26 = vpack.i.bf16 %v620_v53, %v618_v16  ;;  %v623_v8 = vsel %vm519_vm1, %v621_v43, %v622_v23  ;;  %v9013_v53 = vld [vmem:[#allocation21_spill] sm:$0xff]  ;;  %v9015_v39 = vld [vmem:[#allocation30_spill] sm:$0xff]  ;;  %s4020_s7 = sshll.u32 %s5813_s25, 12 }
 0x19a   : > { %v4303_v9 = vunpack.i.h.bf16 %v6618_v6  ;;  %v4302_v16 = vunpack.i.l.bf16 %v6618_v6  ;;  %v4312_v43 = vunpack.i.l.bf16 %v6626_v49  ;;  %v4308_v6 = vunpack.i.h.bf16 %v9015_v39  ;;  %s8743_s9 = scalar_lea.hbm %s8852_s5, %s4020_s7 }
 0x19b   : > { %v6928_v13 = vpop.permute.xlu0 %4535  ;;  %4830 = vrot.lane.b32.xlu1 %v4829_v42, %s5744_s10  ;;  %v4313_v42 = vunpack.i.h.bf16 %v6626_v49  ;;  %v4849_v37 = vpack.i.bf16 %v625_v61, %v623_v8  ;;  %v4377_v49 = vunpack.i.l.bf16 %v6726_v59  ;;  %v1428_v8 = vsel %vm1427_vm4, %v1395_v5, %v4297_v4 }
 0x19c   : > { %v1430_v25 = vsel %vm1427_vm4, %v1397_v50, %v4302_v16  ;;  %v1431_v31 = vsel %vm1427_vm4, %v1398_v58, %v4303_v9  ;;  %v1429_v27 = vsel %vm1427_vm4, %v1396_v14, %v4298_v29  ;;  %v6967_v59 = vsel %vm1427_vm4, %v1401_v38, %v4312_v43 }
 0x19d   : > { %4825 = vrot.lane.b32.xlu0 %v9014_v32, %s5744_s10  ;;  %v6946_v23 = vpop.permute.xlu1 %4550  ;;  %v6964_v61 = vsel %vm1427_vm4, %v1402_v51, %v4313_v42  ;;  %v6973_v58 = vsel %vm1427_vm4, %v1400_v40, %v4308_v6  ;;  %v1463_v5 = vsel %vm1460_vm5, %v1430_v25, %v4382_v7  ;;  %v4463_v14 = vunpack.i.h.bf16 %v6812_v1 }
 0x19e   : > { %v4462_v51 = vunpack.i.l.bf16 %v6812_v1  ;;  %v1464_v50 = vsel %vm1460_vm5, %v1431_v31, %v4383_v34  ;;  %v1461_v38 = vsel %vm1460_vm5, %v1428_v8, %v4377_v49  ;;  %v1462_v9 = vsel %vm1460_vm5, %v1429_v27, %v4378_v35 }
 0x19f   : > { %v6955_v11 = vpop.permute.xlu0 %4545  ;;  %4840 = vrot.lane.b32.xlu1 %v4839_v26, %s5745_s16  ;;  %v4393_v16 = vunpack.i.h.bf16 %v6732_v22  ;;  %v4458_v40 = vunpack.i.h.bf16 %v6820_v41  ;;  %v4457_v4 = vunpack.i.l.bf16 %v6820_v41  ;;  %v4543_v29 = vunpack.i.h.bf16 %v6916_v10 }
 0x1a0   : > { %v4542_v42 = vunpack.i.l.bf16 %v6916_v10  ;;  %v4392_v1 = vunpack.i.l.bf16 %v6732_v22  ;;  %v4388_v31 = vunpack.i.h.bf16 %v6734_v44  ;;  %v4538_v43 = vunpack.i.h.bf16 %v6928_v13 }
 0x1a1   : > { %4835 = vrot.lane.b32.xlu0 %v9017_v62, %s5745_s16  ;;  %v4561_v32 = vpop.permute.xlu1 %4560  ;;  %v4537_v35 = vunpack.i.l.bf16 %v6928_v13  ;;  %v1496_v6 = vsel %vm1493_vm6, %v1463_v5, %v4462_v51  ;;  %v1497_v41 = vsel %vm1493_vm6, %v1464_v50, %v4463_v14  ;;  %v1494_v27 = vsel %vm1493_vm6, %v1461_v38, %v4457_v4 }
 0x1a2   : > { %v4563_v7 = vunpack.i.h.bf16 %v4561_v32  ;;  %v1495_v13 = vsel %vm1493_vm6, %v1462_v9, %v4458_v40  ;;  %v1529_v26 = vsel %vm1526_vm7, %v1496_v6, %v4542_v42 }
 0x1a3   : > { %v4556_v62 = vpop.permute.xlu0 %4555  ;;  %4850 = vrot.lane.b32.xlu1 %v4849_v37, %s5746_s12  ;;  %v4562_v37 = vunpack.i.l.bf16 %v4561_v32  ;;  %v1527_v5 = vsel %vm1526_vm7, %v1494_v27, %v4537_v35  ;;  %v1528_v14 = vsel %vm1526_vm7, %v1495_v13, %v4538_v43  ;;  %v1468_v27 = vsel %vm1460_vm5, %v6964_v61, %v4393_v16 }
 0x1a4   : > { %v4558_v10 = vunpack.i.h.bf16 %v4556_v62  ;;  %v4557_v34 = vunpack.i.l.bf16 %v4556_v62 }
 0x1a5   : > { %4845 = vrot.lane.b32.xlu0 %v6880_v12, %s5746_s12  ;;  %v4571_v25 = vpop.permute.xlu1 %4570  ;;  %v1530_v12 = vsel %vm1526_vm7, %v1497_v41, %v4543_v29  ;;  %v1562_v62 = vsel %vm1559_vm8, %v1529_v26, %v4562_v37  ;;  %v4387_v26 = vunpack.i.l.bf16 %v6734_v44  ;;  %v4473_v41 = vunpack.i.h.bf16 %v6826_v46 }
 0x1a6   : > { %v4573_v22 = vunpack.i.h.bf16 %v4571_v25  ;;  %v4572_v49 = vunpack.i.l.bf16 %v4571_v25  ;;  %v1563_v25 = vsel %vm1559_vm8, %v1530_v12, %v4563_v7  ;;  %v1560_v4 = vsel %vm1559_vm8, %v1527_v5, %v4557_v34 }
 0x1a7   : > { %v4566_v8 = vpop.permute.xlu0 %4565  ;;  %v1561_v29 = vsel %vm1559_vm8, %v1528_v14, %v4558_v10  ;;  %v1467_v44 = vsel %vm1460_vm5, %v6967_v59, %v4392_v1  ;;  %v4467_v5 = vunpack.i.l.bf16 %v6828_v63  ;;  %v4553_v14 = vunpack.i.h.bf16 %v6946_v23 }
 0x1a8   : > { %v4568_v51 = vunpack.i.h.bf16 %v4566_v8  ;;  %v4567_v32 = vunpack.i.l.bf16 %v4566_v8  ;;  %v1595_v38 = vsel %vm1592_vm9, %v1562_v62, %v4572_v49  ;;  %v1596_v9 = vsel %vm1592_vm9, %v1563_v25, %v4573_v22 }
 0x1a9   : > { %v4581_v50 = vpop.permute.xlu1 %4580  ;;  %v4472_v49 = vunpack.i.l.bf16 %v6826_v46  ;;  %v4468_v46 = vunpack.i.h.bf16 %v6828_v63  ;;  %v4548_v59 = vunpack.i.h.bf16 %v6955_v11  ;;  %v4547_v1 = vunpack.i.l.bf16 %v6955_v11 }
 0x1aa   : > { %v4583_v2 = vunpack.i.h.bf16 %v4581_v50  ;;  %v4582_v52 = vunpack.i.l.bf16 %v4581_v50  ;;  %v1593_v37 = vsel %vm1592_vm9, %v1560_v4, %v4567_v32  ;;  %v1594_v22 = vsel %vm1592_vm9, %v1561_v29, %v4568_v51 }
 0x1ab   : > { %v4576_v40 = vpop.permute.xlu0 %4575  ;;  %v4552_v51 = vunpack.i.l.bf16 %v6946_v23  ;;  %v1500_v16 = vsel %vm1493_vm6, %v1467_v44, %v4472_v49  ;;  %v1501_v63 = vsel %vm1493_vm6, %v1468_v27, %v4473_v41  ;;  %v9019_v27 = vld [vmem:[#allocation34_spill] sm:$0xff] }
 0x1ac   : > { %v1628_v42 = vsel %vm1625_vm10, %v1595_v38, %v4582_v52  ;;  %v1629_v43 = vsel %vm1625_vm10, %v1596_v9, %v4583_v2  ;;  %v4578_v35 = vunpack.i.h.bf16 %v4576_v40  ;;  %v4577_v6 = vunpack.i.l.bf16 %v4576_v40 }
 0x1ad   : > { %v4591_v7 = vpop.permute.xlu1 %4590  ;;  %v1659_v52 = vpack.c.bf16 %v1629_v43, %v1628_v42  ;;  %v9018_v2 = vunpack.i.l.bf16 %v9015_v39  ;;  %v1533_v9 = vsel %vm1526_vm7, %v1500_v16, %v4552_v51  ;;  %v1534_v40 = vsel %vm1526_vm7, %v1501_v63, %v4553_v14  ;;  %v9020_v51 = vld [vmem:[#allocation35_spill] sm:$0xff] }
 0x1ae   : > { %v1626_v34 = vsel %vm1625_vm10, %v1593_v37, %v4577_v6  ;;  %v1627_v10 = vsel %vm1625_vm10, %v1594_v22, %v4578_v35  ;;  %v4593_v32 = vunpack.i.h.bf16 %v4591_v7  ;;  %v4592_v50 = vunpack.i.l.bf16 %v4591_v7 }
 0x1af   : > { %v1432_v8 = vsel %vm1427_vm4, %v6906_v48, %v9018_v2  ;;  %v4586_v13 = vpop.permute.xlu0 %4585  ;;  %v1658_v12 = vpack.c.bf16 %v1627_v10, %v1626_v34  ;;  %v1466_v48 = vsel %vm1460_vm5, %v6973_v58, %v4388_v31  ;;  %v4403_v16 = vunpack.i.h.bf16 %v6740_v30 }
 0x1b0   : > { %v1465_v39 = vsel %vm1460_vm5, %v1432_v8, %v4387_v26  ;;  %v4588_v23 = vunpack.i.h.bf16 %v4586_v13  ;;  %v4587_v62 = vunpack.i.l.bf16 %v4586_v13  ;;  %v1499_v11 = vsel %vm1493_vm6, %v1466_v48, %v4468_v46 }
 0x1b1   : > { %4046 = vmatprep.mubr.msk.bf16.mxu0 %vm1701_vm11, %v1658_v12  ;;  %v4601_v61 = vpop.permute.xlu1 %4600  ;;  %v1498_v31 = vsel %vm1493_vm6, %v1465_v39, %v4467_v5  ;;  %v1532_v29 = vsel %vm1526_vm7, %v1499_v11, %v4548_v59  ;;  %v1566_v6 = vsel %vm1559_vm8, %v1533_v9, %v4592_v50  ;;  %v1567_v26 = vsel %vm1559_vm8, %v1534_v40, %v4593_v32  ;;  %v5438_v11 = vld [vmem:[%s6007_s15 + $0xb0] sm:$0xff] }
 0x1b2   : > { %4047 = vmatmul.mubr.msk.bf16.vlgmr.msra.gmra.mrb[0].mxu0 %vm1701_vm11, %v1659_v52  ;;  %v4603_v25 = vunpack.i.h.bf16 %v4601_v61  ;;  %v4602_v38 = vunpack.i.l.bf16 %v4601_v61  ;;  %v1531_v4 = vsel %vm1526_vm7, %v1498_v31, %v4547_v1  ;;  %v1565_v22 = vsel %vm1559_vm8, %v1532_v29, %v4588_v23  ;;  %v5436_v23 = vld [vmem:[%s6007_s15 + $0x68] sm:$0xff] }
 0x1b3   : > { %v4596_v58 = vpop.permute.xlu0 %4595  ;;  %v1564_v37 = vsel %vm1559_vm8, %v1531_v4, %v4587_v62  ;;  %v4323_v13 = vunpack.i.h.bf16 %v9019_v27  ;;  %v4322_v12 = vunpack.i.l.bf16 %v9019_v27  ;;  %v4318_v39 = vunpack.i.h.bf16 %v9020_v51  ;;  %v5439_v4 = vld [vmem:[%s6007_s15 + $0xa8] sm:$0xff] }
 0x1b4   : > { %v4598_v42 = vunpack.i.h.bf16 %v4596_v58  ;;  %v4597_v43 = vunpack.i.l.bf16 %v4596_v58  ;;  %v1599_v49 = vsel %vm1592_vm9, %v1566_v6, %v4602_v38  ;;  %v1600_v34 = vsel %vm1592_vm9, %v1567_v26, %v4603_v25  ;;  %v5437_v38 = vld [vmem:[%s6007_s15 + $0x60] sm:$0xff] }
 0x1b5   : > { %v4611_v35 = vpop.permute.xlu1 %4610  ;;  %v4317_v61 = vunpack.i.l.bf16 %v9020_v51  ;;  %v4402_v63 = vunpack.i.l.bf16 %v6740_v30  ;;  %v9021_v62 = vunpack.i.h.bf16 %v9013_v53  ;;  %v9022_v58 = vunpack.i.l.bf16 %v9013_v53 }
 0x1b6   : > { %v4613_v41 = vunpack.i.h.bf16 %v4611_v35  ;;  %v4612_v7 = vunpack.i.l.bf16 %v4611_v35  ;;  %v1597_v46 = vsel %vm1592_vm9, %v1564_v37, %v4597_v43  ;;  %v1598_v5 = vsel %vm1592_vm9, %v1565_v22, %v4598_v42  ;;  %v9025_v42 = vld [vmem:[#allocation23_spill] sm:$0xff] }
 0x1b7   : > { %v4606_v10 = vpop.permute.xlu0 %4605  ;;  %v1404_v25 = vsel %vm1394_vm3, %v5436_v23, %v9021_v62  ;;  %v1403_v31 = vsel %vm1394_vm3, %v5437_v38, %v9022_v58  ;;  %v9023_v9 = vunpack.i.h.bf16 %v9016_v56  ;;  %v9024_v30 = vunpack.i.l.bf16 %v9016_v56 }
 0x1b8   : > { %v1632_v52 = vsel %vm1625_vm10, %v1599_v49, %v4612_v7  ;;  %v1633_v2 = vsel %vm1625_vm10, %v1600_v34, %v4613_v41  ;;  %v4608_v8 = vunpack.i.h.bf16 %v4606_v10  ;;  %v4607_v44 = vunpack.i.l.bf16 %v4606_v10 }
 0x1b9   : > { %v4621_v14 = vpop.permute.xlu1 %4620  ;;  %v1661_v1 = vpack.c.bf16 %v1633_v2, %v1632_v52  ;;  %v7073_v40 = vsel %vm1394_vm3, %v5438_v11, %v9023_v9  ;;  %v7079_v29 = vsel %vm1394_vm3, %v5439_v4, %v9024_v30  ;;  %v4248_v43 = vunpack.i.h.bf16 %v9025_v42 }
 0x1ba   : > { %v1630_v48 = vsel %vm1625_vm10, %v1597_v46, %v4607_v44  ;;  %v1631_v59 = vsel %vm1625_vm10, %v1598_v5, %v4608_v8  ;;  %v4247_v35 = vunpack.i.l.bf16 %v9025_v42  ;;  %v4398_v53 = vunpack.i.h.bf16 %v6742_v60 }
 0x1bb   : > { %v4616_v32 = vpop.permute.xlu0 %4615  ;;  %v1660_v50 = vpack.c.bf16 %v1631_v59, %v1630_v48  ;;  %v4397_v6 = vunpack.i.l.bf16 %v6742_v60  ;;  %v1439_v41 = vsel %vm1427_vm4, %v6926_v0, %v4323_v13  ;;  %v1438_v56 = vsel %vm1427_vm4, %v6935_v3, %v4322_v12 }
 0x1bc   : > { %v4483_v7 = vunpack.i.h.bf16 %v6834_v15  ;;  %v4482_v37 = vunpack.i.l.bf16 %v6834_v15  ;;  %v1436_v22 = vsel %vm1427_vm4, %v1403_v31, %v4317_v61  ;;  %v1437_v49 = vsel %vm1427_vm4, %v1404_v25, %v4318_v39 }
 0x1bd   : > { %4050 = vmatprep.mubr.msk.bf16.mxu0 %vm1701_vm11, %v1660_v50  ;;  %v4631_v26 = vpop.permute.xlu1 %4630  ;;  %v1471_v60 = vsel %vm1460_vm5, %v1438_v56, %v4402_v63  ;;  %v1472_v34 = vsel %vm1460_vm5, %v1439_v41, %v4403_v16  ;;  %v4478_v0 = vunpack.i.h.bf16 %v6836_v47  ;;  %v4477_v52 = vunpack.i.l.bf16 %v6836_v47 }
 0x1be   : > { %4051 = vmatmul.mubr.msk.bf16.gmra.mrb[4].mxu0 %vm1701_vm11, %v1661_v1  ;;  %v4623_v3 = vunpack.i.h.bf16 %v4621_v14  ;;  %v4622_v2 = vunpack.i.l.bf16 %v4621_v14  ;;  %v1469_v8 = vsel %vm1460_vm5, %v1436_v22, %v4397_v6  ;;  %v1470_v15 = vsel %vm1460_vm5, %v1437_v49, %v4398_v53 }
 0x1bf   : > { %v4626_v10 = vpop.permute.xlu0 %4625  ;;  %v4618_v44 = vunpack.i.h.bf16 %v4616_v32  ;;  %v4617_v27 = vunpack.i.l.bf16 %v4616_v32  ;;  %v1504_v12 = vsel %vm1493_vm6, %v1471_v60, %v4482_v37  ;;  %v1505_v46 = vsel %vm1493_vm6, %v1472_v34, %v4483_v7  ;;  %v9026_v37 = vld [vmem:[#allocation38_spill] sm:$0xff] }
 0x1c0   : > { %v4633_v5 = vunpack.i.h.bf16 %v4631_v26  ;;  %v4632_v51 = vunpack.i.l.bf16 %v4631_v26  ;;  %v4628_v39 = vunpack.i.h.bf16 %v4626_v10  ;;  %v4627_v48 = vunpack.i.l.bf16 %v4626_v10 }
 0x1c1   : > { %v4641_v13 = vpop.permute.xlu1 %4640  ;;  %v1502_v14 = vsel %vm1493_vm6, %v1469_v8, %v4477_v52  ;;  %v1503_v61 = vsel %vm1493_vm6, %v1470_v15, %v4478_v0  ;;  %v1537_v16 = vsel %vm1526_vm7, %v1504_v12, %v4622_v2  ;;  %v1538_v63 = vsel %vm1526_vm7, %v1505_v46, %v4623_v3  ;;  %v9027_v0 = vld [vmem:[#allocation36_spill] sm:$0xff]  ;;  %v5440_v46 = vld [vmem:[%s6007_s15 + $0x98] sm:$0xff] }
 0x1c2   : > { %v4643_v59 = vunpack.i.h.bf16 %v4641_v13  ;;  %v4642_v1 = vunpack.i.l.bf16 %v4641_v13  ;;  %v1535_v32 = vsel %vm1526_vm7, %v1502_v14, %v4617_v27  ;;  %v1536_v50 = vsel %vm1526_vm7, %v1503_v61, %v4618_v44 }
 0x1c3   : > { %v4636_v47 = vpop.permute.xlu0 %4635  ;;  %v1570_v38 = vsel %vm1559_vm8, %v1537_v16, %v4632_v51  ;;  %v1571_v58 = vsel %vm1559_vm8, %v1538_v63, %v4633_v5  ;;  %v1568_v9 = vsel %vm1559_vm8, %v1535_v32, %v4627_v48  ;;  %v1569_v4 = vsel %vm1559_vm8, %v1536_v50, %v4628_v39  ;;  %v5441_v51 = vld [vmem:[%s6007_s15 + $0x90] sm:$0xff] }
 0x1c4   : > { %v4638_v23 = vunpack.i.h.bf16 %v4636_v47  ;;  %v4637_v62 = vunpack.i.l.bf16 %v4636_v47  ;;  %v1603_v30 = vsel %vm1592_vm9, %v1570_v38, %v4642_v1  ;;  %v1604_v53 = vsel %vm1592_vm9, %v1571_v58, %v4643_v59  ;;  %v9028_v48 = vld [vmem:[#allocation32_spill] sm:$0xff]  ;;  %v9029_v47 = vld [vmem:[#allocation25_spill] sm:$0xff] }
 0x1c5   : > { %v4651_v25 = vpop.permute.xlu1 %4650  ;;  %v4333_v22 = vunpack.i.h.bf16 %v9026_v37  ;;  %v4332_v49 = vunpack.i.l.bf16 %v9026_v37  ;;  %v4328_v52 = vunpack.i.h.bf16 %v9027_v0  ;;  %v4327_v15 = vunpack.i.l.bf16 %v9027_v0 }
 0x1c6   : > { %v4653_v31 = vunpack.i.h.bf16 %v4651_v25  ;;  %v4652_v11 = vunpack.i.l.bf16 %v4651_v25  ;;  %v1601_v60 = vsel %vm1592_vm9, %v1568_v9, %v4637_v62  ;;  %v1602_v34 = vsel %vm1592_vm9, %v1569_v4, %v4638_v23 }
 0x1c7   : > { %v4646_v6 = vpop.permute.xlu0 %4645  ;;  %v4413_v44 = vunpack.i.h.bf16 %v6748_v17  ;;  %v4412_v27 = vunpack.i.l.bf16 %v6748_v17  ;;  %v1408_v5 = vsel %vm1394_vm3, %v5440_v46, %v4248_v43  ;;  %v1407_v39 = vsel %vm1394_vm3, %v5441_v51, %v4247_v35 }
 0x1c8   : > { %v1636_v26 = vsel %vm1625_vm10, %v1603_v30, %v4652_v11  ;;  %v1637_v41 = vsel %vm1625_vm10, %v1604_v53, %v4653_v31  ;;  %v4648_v56 = vunpack.i.h.bf16 %v4646_v6  ;;  %v4647_v7 = vunpack.i.l.bf16 %v4646_v6 }
 0x1c9   : > { %v4661_v10 = vpop.permute.xlu1 %4660  ;;  %v1663_v8 = vpack.c.bf16 %v1637_v41, %v1636_v26  ;;  %v4263_v59 = vunpack.i.h.bf16 %v9028_v48  ;;  %v4262_v1 = vunpack.i.l.bf16 %v9028_v48  ;;  %v4258_v14 = vunpack.i.h.bf16 %v9029_v47 }
 0x1ca   : > { %v1634_v3 = vsel %vm1625_vm10, %v1601_v60, %v4647_v7  ;;  %v1635_v2 = vsel %vm1625_vm10, %v1602_v34, %v4648_v56  ;;  %v4257_v17 = vunpack.i.l.bf16 %v9029_v47  ;;  %v4408_v61 = vunpack.i.h.bf16 %v6750_v18 }
 0x1cb   : > { %v4656_v13 = vpop.permute.xlu0 %4655  ;;  %v1662_v12 = vpack.c.bf16 %v1635_v2, %v1634_v3  ;;  %v4407_v16 = vunpack.i.l.bf16 %v6750_v18  ;;  %v1443_v42 = vsel %vm1427_vm4, %v7073_v40, %v4333_v22  ;;  %v1442_v35 = vsel %vm1427_vm4, %v7079_v29, %v4332_v49 }
 0x1cc   : > { %v4493_v63 = vunpack.i.h.bf16 %v6842_v24  ;;  %v4492_v32 = vunpack.i.l.bf16 %v6842_v24  ;;  %v1440_v50 = vsel %vm1427_vm4, %v1407_v39, %v4327_v15  ;;  %v1441_v23 = vsel %vm1427_vm4, %v1408_v5, %v4328_v52 }
 0x1cd   : > { %4054 = vmatprep.mubr.msk.bf16.mxu0 %vm1701_vm11, %v1662_v12  ;;  %v4671_v43 = vpop.permute.xlu1 %4670  ;;  %v1475_v18 = vsel %vm1460_vm5, %v1442_v35, %v4412_v27  ;;  %v1476_v62 = vsel %vm1460_vm5, %v1443_v42, %v4413_v44  ;;  %v4488_v40 = vunpack.i.h.bf16 %v6844_v36  ;;  %v4487_v38 = vunpack.i.l.bf16 %v6844_v36  ;;  %v9030_v42 = vld [vmem:[#allocation37_spill] sm:$0xff] }
 0x1ce   : > { %4055 = vmatmul.mubr.msk.bf16.gmra.mrb[8].mxu0 %vm1701_vm11, %v1663_v8  ;;  %v4663_v29 = vunpack.i.h.bf16 %v4661_v10  ;;  %v4662_v58 = vunpack.i.l.bf16 %v4661_v10  ;;  %v1473_v31 = vsel %vm1460_vm5, %v1440_v50, %v4407_v16  ;;  %v1474_v24 = vsel %vm1460_vm5, %v1441_v23, %v4408_v61 }
 0x1cf   : > { %v4666_v25 = vpop.permute.xlu0 %4665  ;;  %v4658_v11 = vunpack.i.h.bf16 %v4656_v13  ;;  %v4657_v9 = vunpack.i.l.bf16 %v4656_v13  ;;  %v1508_v30 = vsel %vm1493_vm6, %v1475_v18, %v4492_v32  ;;  %v1509_v53 = vsel %vm1493_vm6, %v1476_v62, %v4493_v63  ;;  %v9031_v18 = vld [vmem:[#allocation39_spill] sm:$0xff] }
 0x1d0   : > { %v4673_v6 = vunpack.i.h.bf16 %v4671_v43  ;;  %v4672_v26 = vunpack.i.l.bf16 %v4671_v43  ;;  %v4668_v41 = vunpack.i.h.bf16 %v4666_v25  ;;  %v4667_v56 = vunpack.i.l.bf16 %v4666_v25 }
 0x1d1   : > { %v4681_v4 = vpop.permute.xlu1 %4680  ;;  %v1506_v22 = vsel %vm1493_vm6, %v1473_v31, %v4487_v38  ;;  %v1507_v49 = vsel %vm1493_vm6, %v1474_v24, %v4488_v40  ;;  %v1541_v60 = vsel %vm1526_vm7, %v1508_v30, %v4662_v58  ;;  %v1542_v34 = vsel %vm1526_vm7, %v1509_v53, %v4663_v29  ;;  %v5443_v30 = vld [vmem:[%s6007_s15 + $0xd8] sm:$0xff] }
 0x1d2   : > { %v4683_v7 = vunpack.i.h.bf16 %v4681_v4  ;;  %v4682_v37 = vunpack.i.l.bf16 %v4681_v4  ;;  %v1539_v10 = vsel %vm1526_vm7, %v1506_v22, %v4657_v9  ;;  %v1540_v0 = vsel %vm1526_vm7, %v1507_v49, %v4658_v11  ;;  %v5442_v9 = vld [vmem:[%s6007_s15 + $0xe0] sm:$0xff] }
 0x1d3   : > { %v4676_v36 = vpop.permute.xlu0 %4675  ;;  %v1574_v8 = vsel %vm1559_vm8, %v1541_v60, %v4672_v26  ;;  %v1575_v15 = vsel %vm1559_vm8, %v1542_v34, %v4673_v6  ;;  %v1572_v13 = vsel %vm1559_vm8, %v1539_v10, %v4667_v56  ;;  %v1573_v12 = vsel %vm1559_vm8, %v1540_v0, %v4668_v41  ;;  %v5444_v6 = vld [vmem:[%s6007_s15 + $0xc8] sm:$0xff]  ;;  %v5445_v41 = vld [vmem:[%s6007_s15 + $0xc0] sm:$0xff]  ;;  %s5752_s15 = smov 64  }
 0x1d4   : > { %v4678_v52 = vunpack.i.h.bf16 %v4676_v36  ;;  %v4677_v3 = vunpack.i.l.bf16 %v4676_v36  ;;  %v1607_v46 = vsel %vm1592_vm9, %v1574_v8, %v4682_v37  ;;  %v1608_v5 = vsel %vm1592_vm9, %v1575_v15, %v4683_v7 }
 0x1d5   : > { %v4691_v2 = vpop.permute.xlu1 %4690  ;;  %v4343_v35 = vunpack.i.h.bf16 %v9030_v42  ;;  %v4342_v63 = vunpack.i.l.bf16 %v9030_v42  ;;  %v4338_v62 = vunpack.i.h.bf16 %v9031_v18  ;;  %v4337_v29 = vunpack.i.l.bf16 %v9031_v18 }
 0x1d6   : > { %v4693_v44 = vunpack.i.h.bf16 %v4691_v2  ;;  %v4692_v27 = vunpack.i.l.bf16 %v4691_v2  ;;  %v1605_v32 = vsel %vm1592_vm9, %v1572_v13, %v4677_v3  ;;  %v1606_v50 = vsel %vm1592_vm9, %v1573_v12, %v4678_v52 }
 0x1d7   : > { %v4686_v51 = vpop.permute.xlu0 %4685  ;;  %v4423_v58 = vunpack.i.h.bf16 %v6756_v33  ;;  %v4422_v31 = vunpack.i.l.bf16 %v6756_v33  ;;  %v1414_v4 = vsel %vm1394_vm3, %v5442_v9, %v4263_v59  ;;  %v1413_v53 = vsel %vm1394_vm3, %v5443_v30, %v4262_v1 }
 0x1d8   : > { %v1640_v39 = vsel %vm1625_vm10, %v1607_v46, %v4692_v27  ;;  %v1641_v61 = vsel %vm1625_vm10, %v1608_v5, %v4693_v44  ;;  %v4688_v16 = vunpack.i.h.bf16 %v4686_v51  ;;  %v4687_v43 = vunpack.i.l.bf16 %v4686_v51 }
 0x1d9   : > { %v4701_v23 = vpop.permute.xlu1 %4700  ;;  %v1665_v38 = vpack.c.bf16 %v1641_v61, %v1640_v39  ;;  %v1412_v26 = vsel %vm1394_vm3, %v5444_v6, %v4258_v14  ;;  %v1411_v33 = vsel %vm1394_vm3, %v5445_v41, %v4257_v17  ;;  %v4418_v56 = vunpack.i.h.bf16 %v6758_v21 }
 0x1da   : > { %v1638_v25 = vsel %vm1625_vm10, %v1605_v32, %v4687_v43  ;;  %v1639_v40 = vsel %vm1625_vm10, %v1606_v50, %v4688_v16  ;;  %v4417_v7 = vunpack.i.l.bf16 %v6758_v21  ;;  %v1447_v48 = vsel %vm1427_vm4, %v1414_v4, %v4343_v35 }
 0x1db   : > { %v4696_v24 = vpop.permute.xlu0 %4695  ;;  %v1664_v11 = vpack.c.bf16 %v1639_v40, %v1638_v25  ;;  %v1446_v1 = vsel %vm1427_vm4, %v1413_v53, %v4342_v63  ;;  %v4503_v37 = vunpack.i.h.bf16 %v6850_v20  ;;  %v4502_v14 = vunpack.i.l.bf16 %v6850_v20 }
 0x1dc   : > { %v1444_v47 = vsel %vm1427_vm4, %v1411_v33, %v4337_v29  ;;  %v1445_v17 = vsel %vm1427_vm4, %v1412_v26, %v4338_v62  ;;  %v1479_v36 = vsel %vm1460_vm5, %v1446_v1, %v4422_v31  ;;  %v1480_v21 = vsel %vm1460_vm5, %v1447_v48, %v4423_v58 }
 0x1dd   : > { %4058 = vmatprep.mubr.msk.bf16.mxu0 %vm1701_vm11, %v1664_v11  ;;  %v4711_v59 = vpop.permute.xlu1 %4710  ;;  %v4498_v49 = vunpack.i.h.bf16 %v6852_v45  ;;  %v4497_v60 = vunpack.i.l.bf16 %v6852_v45  ;;  %v4703_v34 = vunpack.i.h.bf16 %v4701_v23  ;;  %v4702_v10 = vunpack.i.l.bf16 %v4701_v23 }
 0x1de   : > { %4059 = vmatmul.mubr.msk.bf16.gmra.mrb[12].mxu0 %vm1701_vm11, %v1665_v38  ;;  %v1477_v0 = vsel %vm1460_vm5, %v1444_v47, %v4417_v7  ;;  %v1478_v20 = vsel %vm1460_vm5, %v1445_v17, %v4418_v56  ;;  %v4698_v52 = vunpack.i.h.bf16 %v4696_v24  ;;  %v4697_v3 = vunpack.i.l.bf16 %v4696_v24 }
 0x1df   : > { %v4706_v22 = vpop.permute.xlu0 %4705  ;;  %v1512_v8 = vsel %vm1493_vm6, %v1479_v36, %v4502_v14  ;;  %v1513_v15 = vsel %vm1493_vm6, %v1480_v21, %v4503_v37  ;;  %v4713_v44 = vunpack.i.h.bf16 %v4711_v59  ;;  %v4712_v27 = vunpack.i.l.bf16 %v4711_v59 }
 0x1e0   : > { %v4708_v13 = vunpack.i.h.bf16 %v4706_v22  ;;  %v4707_v12 = vunpack.i.l.bf16 %v4706_v22  ;;  %v1510_v51 = vsel %vm1493_vm6, %v1477_v0, %v4497_v60  ;;  %v1511_v39 = vsel %vm1493_vm6, %v1478_v20, %v4498_v49 }
 0x1e1   : > { %v4721_v2 = vpop.permute.xlu1 %4720  ;;  %v1545_v61 = vsel %vm1526_vm7, %v1512_v8, %v4702_v10  ;;  %v1546_v16 = vsel %vm1526_vm7, %v1513_v15, %v4703_v34  ;;  %v1543_v43 = vsel %vm1526_vm7, %v1510_v51, %v4697_v3  ;;  %v1544_v42 = vsel %vm1526_vm7, %v1511_v39, %v4698_v52 }
 0x1e2   : > { %v4723_v46 = vunpack.i.h.bf16 %v4721_v2  ;;  %v4722_v5 = vunpack.i.l.bf16 %v4721_v2  ;;  %v1578_v50 = vsel %vm1559_vm8, %v1545_v61, %v4712_v27  ;;  %v1579_v23 = vsel %vm1559_vm8, %v1546_v16, %v4713_v44  ;;  %v9032_v2 = vld [vmem:[#allocation40_spill] sm:$0xff] }
 0x1e3   : > { %v4716_v45 = vpop.permute.xlu0 %4715  ;;  %v1576_v25 = vsel %vm1559_vm8, %v1543_v43, %v4707_v12  ;;  %v1577_v40 = vsel %vm1559_vm8, %v1544_v42, %v4708_v13  ;;  %v4513_v59 = vunpack.i.h.bf16 %v6861_v57  ;;  %v4512_v48 = vunpack.i.l.bf16 %v6861_v57 }
 0x1e4   : > { %v4718_v35 = vunpack.i.h.bf16 %v4716_v45  ;;  %v4717_v63 = vunpack.i.l.bf16 %v4716_v45  ;;  %v1611_v38 = vsel %vm1592_vm9, %v1578_v50, %v4722_v5  ;;  %v1612_v29 = vsel %vm1592_vm9, %v1579_v23, %v4723_v46 }
 0x1e5   : > { %v4731_v32 = vpop.permute.xlu1 %4730  ;;  %v4508_v37 = vunpack.i.h.bf16 %v6863_v28  ;;  %v4507_v14 = vunpack.i.l.bf16 %v6863_v28  ;;  %v1516_v49 = vsel %vm1493_vm6, %v6768_v19, %v4512_v48  ;;  %v1517_v60 = vsel %vm1493_vm6, %v6772_v54, %v4513_v59  ;;  %v9035_v59 = vld [vmem:[#allocation41_spill] sm:$0xff] }
 0x1e6   : > { %v4733_v18 = vunpack.i.h.bf16 %v4731_v32  ;;  %v4732_v62 = vunpack.i.l.bf16 %v4731_v32  ;;  %v1609_v4 = vsel %vm1592_vm9, %v1576_v25, %v4717_v63  ;;  %v1610_v30 = vsel %vm1592_vm9, %v1577_v40, %v4718_v35 }
 0x1e7   : > { %v4726_v58 = vpop.permute.xlu0 %4725  ;;  %v1514_v28 = vsel %vm1493_vm6, %v6778_v55, %v4507_v14  ;;  %v1515_v8 = vsel %vm1493_vm6, %v9032_v2, %v4508_v37  ;;  %vm3180_vm3 = vcmask 785408   ;;  %vm3213_vm4 = vcmask 916480  }
 0x1e8   : > { %v1644_v31 = vsel %vm1625_vm10, %v1611_v38, %v4732_v62  ;;  %v1645_v24 = vsel %vm1625_vm10, %v1612_v29, %v4733_v18  ;;  %v4728_v11 = vunpack.i.h.bf16 %v4726_v58  ;;  %v4727_v9 = vunpack.i.l.bf16 %v4726_v58 }
 0x1e9   : > { %v4741_v53 = vpop.permute.xlu1 %4740  ;;  %v1667_v41 = vpack.c.bf16 %v1645_v24, %v1644_v31  ;;  %v9033_v31 = vld [vmem:[#allocation26_spill] sm:$0xff] }
 0x1ea   : > { %v1642_v6 = vsel %vm1625_vm10, %v1609_v4, %v4727_v9  ;;  %v1643_v26 = vsel %vm1625_vm10, %v1610_v30, %v4728_v11  ;;  %v4743_v47 = vunpack.i.h.bf16 %v4741_v53  ;;  %v4742_v17 = vunpack.i.l.bf16 %v4741_v53  ;;  %v9034_v4 = vld [vmem:[#allocation49_spill] sm:$0xff] }
 0x1eb   : > { %v4736_v33 = vpop.permute.xlu0 %4735  ;;  %v1666_v56 = vpack.c.bf16 %v1643_v26, %v1642_v6  ;;  %v4523_v24 = vunpack.i.h.bf16 %v9033_v31  ;;  %v4522_v11 = vunpack.i.l.bf16 %v9033_v31  ;;  %v4518_v30 = vunpack.i.h.bf16 %v9034_v4 }
 0x1ec   : > { %v4738_v36 = vunpack.i.h.bf16 %v4736_v33  ;;  %v4737_v21 = vunpack.i.l.bf16 %v4736_v33  ;;  %v1549_v15 = vsel %vm1526_vm7, %v1516_v49, %v4742_v17  ;;  %v1550_v19 = vsel %vm1526_vm7, %v1517_v60, %v4743_v47  ;;  %v9037_v60 = vld [vmem:[#allocation43_spill] sm:$0xff] }
 0x1ed   : > { %4062 = vmatprep.mubr.msk.bf16.mxu0 %vm1701_vm11, %v1666_v56  ;;  %v4751_v7 = vpop.permute.xlu1 %4750  ;;  %v4517_v53 = vunpack.i.l.bf16 %v9034_v4  ;;  %v1520_v48 = vsel %vm1493_vm6, %v9035_v59, %v4522_v11 }
 0x1ee   : > { %4063 = vmatmul.mubr.msk.bf16.gmra.mrb[16].mxu0 %vm1701_vm11, %v1667_v41  ;;  %v4753_v34 = vunpack.i.h.bf16 %v4751_v7  ;;  %v4752_v57 = vunpack.i.l.bf16 %v4751_v7  ;;  %v1547_v44 = vsel %vm1526_vm7, %v1514_v28, %v4737_v21  ;;  %v1548_v54 = vsel %vm1526_vm7, %v1515_v8, %v4738_v36 }
 0x1ef   : > { %v4746_v1 = vpop.permute.xlu0 %4745  ;;  %v5747_v41 = vmov 0.0  }
 0x1f0   : > { %v4748_v10 = vunpack.i.h.bf16 %v4746_v1  ;;  %v4747_v0 = vunpack.i.l.bf16 %v4746_v1  ;;  %v1582_v46 = vsel %vm1559_vm8, %v1549_v15, %v4752_v57  ;;  %v1583_v5 = vsel %vm1559_vm8, %v1550_v19, %v4753_v34  ;;  %1947 = vst.msk [vmem:[#allocation2] sm:$0xff] %vm1493_vm6, %v5747_v41  ;;  %1948 = vst.msk [vmem:[#allocation2 + $0x8] sm:$0xff] %vm1493_vm6, %v5747_v41  ;;  %v9036_v1 = vld [vmem:[#allocation42_spill] sm:$0xff]  ;;  %v9038_v57 = vld [vmem:[#allocation44_spill] sm:$0xff] }
 0x1f1   : > { %v4761_v22 = vpop.permute.xlu1 %4760  ;;  %1950 = vst.msk [vmem:[#allocation2 + $0x10] sm:$0x3] %vm1949_vm12, %v5747_v41  ;;  %1954 = vst.msk [vmem:[#allocation2 + $0x1a8] sm:$0x3] %vm1949_vm12, %v5747_v41  ;;  %v1521_v37 = vsel %vm1493_vm6, %v9036_v1, %v4523_v24  ;;  %v1518_v34 = vsel %vm1493_vm6, %v9037_v60, %v4517_v53  ;;  %v9040_v53 = vld [vmem:[#allocation33_spill] sm:$0xff] }
 0x1f2   : > { %v4763_v20 = vunpack.i.h.bf16 %v4761_v22  ;;  %v4762_v52 = vunpack.i.l.bf16 %v4761_v22  ;;  %v1580_v51 = vsel %vm1559_vm8, %v1547_v44, %v4747_v0  ;;  %v1581_v39 = vsel %vm1559_vm8, %v1548_v54, %v4748_v10  ;;  %1952 = vst.msk [vmem:[#allocation2 + $0x198] sm:$0xff] %vm1493_vm6, %v5747_v41  ;;  %1953 = vst.msk [vmem:[#allocation2 + $0x1a0] sm:$0xff] %vm1493_vm6, %v5747_v41 }
 0x1f3   : > { %v4756_v3 = vpop.permute.xlu0 %4755  ;;  %1956 = vst.msk [vmem:[#allocation2] sm:$0x1] %vm1955_vm13, %v5747_v41  ;;  %1974 = vst.msk [vmem:[#allocation2 + $0x11] sm:$0x1] %vm1955_vm13, %v5747_v41  ;;  %v1519_v10 = vsel %vm1493_vm6, %v9038_v57, %v4518_v30 }
 0x1f4   : > { %v4758_v27 = vunpack.i.h.bf16 %v4756_v3  ;;  %v4757_v13 = vunpack.i.l.bf16 %v4756_v3  ;;  %v1615_v61 = vsel %vm1592_vm9, %v1582_v46, %v4762_v52  ;;  %v1616_v16 = vsel %vm1592_vm9, %v1583_v5, %v4763_v20  ;;  %1957 = vst.msk [vmem:[#allocation2 + $0x18] sm:$0x1] %vm1955_vm13, %v5747_v41  ;;  %1958 = vst.msk [vmem:[#allocation2 + $0x30] sm:$0x1] %vm1955_vm13, %v5747_v41 }
 0x1f5   : > { %v4771_v12 = vpop.permute.xlu1 %4770  ;;  %1959 = vst.msk [vmem:[#allocation2 + $0x48] sm:$0x1] %vm1955_vm13, %v5747_v41  ;;  %1960 = vst.msk [vmem:[#allocation2 + $0x60] sm:$0x1] %vm1955_vm13, %v5747_v41 }
 0x1f6   : > { %v4773_v45 = vunpack.i.h.bf16 %v4771_v12  ;;  %v4772_v55 = vunpack.i.l.bf16 %v4771_v12  ;;  %v1613_v50 = vsel %vm1592_vm9, %v1580_v51, %v4757_v13  ;;  %v1614_v23 = vsel %vm1592_vm9, %v1581_v39, %v4758_v27  ;;  %1961 = vst.msk [vmem:[#allocation2 + $0x78] sm:$0x1] %vm1955_vm13, %v5747_v41  ;;  %1962 = vst.msk [vmem:[#allocation2 + $0x90] sm:$0x1] %vm1955_vm13, %v5747_v41 }
 0x1f7   : > { %v4766_v43 = vpop.permute.xlu0 %4765  ;;  %1963 = vst.msk [vmem:[#allocation2 + $0xa8] sm:$0x1] %vm1955_vm13, %v5747_v41  ;;  %1964 = vst.msk [vmem:[#allocation2 + $0xc0] sm:$0x1] %vm1955_vm13, %v5747_v41 }
 0x1f8   : > { %v1648_v42 = vsel %vm1625_vm10, %v1615_v61, %v4772_v55  ;;  %v1649_v35 = vsel %vm1625_vm10, %v1616_v16, %v4773_v45  ;;  %v4768_v63 = vunpack.i.h.bf16 %v4766_v43  ;;  %v4767_v32 = vunpack.i.l.bf16 %v4766_v43  ;;  %1965 = vst.msk [vmem:[#allocation2 + $0xd8] sm:$0x1] %vm1955_vm13, %v5747_v41  ;;  %1966 = vst.msk [vmem:[#allocation2 + $0xf0] sm:$0x1] %vm1955_vm13, %v5747_v41  ;;  %v7395_v61 = vld [vmem:[#allocation2 + $0x8] sm:$0xff] }
 0x1f9   : > { %v7263_v18 = vpop.permute.xlu1 %4780  ;;  %v1669_v62 = vpack.c.bf16 %v1649_v35, %v1648_v42  ;;  %1967 = vst.msk [vmem:[#allocation2 + $0x108] sm:$0x1] %vm1955_vm13, %v5747_v41  ;;  %1968 = vst.msk [vmem:[#allocation2 + $0x120] sm:$0x1] %vm1955_vm13, %v5747_v41  ;;  %v2208_v4 = vrot.slane %v7395_v61, 2 }
 0x1fa   : > { %v1646_v25 = vsel %vm1625_vm10, %v1613_v50, %v4767_v32  ;;  %v1647_v40 = vsel %vm1625_vm10, %v1614_v23, %v4768_v63  ;;  %v4783_v6 = vunpack.i.h.bf16 %v7263_v18  ;;  %v4782_v26 = vunpack.i.l.bf16 %v7263_v18  ;;  %1969 = vst.msk [vmem:[#allocation2 + $0x138] sm:$0x1] %vm1955_vm13, %v5747_v41  ;;  %1970 = vst.msk [vmem:[#allocation2 + $0x150] sm:$0x1] %vm1955_vm13, %v5747_v41  ;;  %v2025_v63 = vld [vmem:[#allocation2] sm:$0xff] }
 0x1fb   : > { %v7267_v38 = vpop.permute.xlu0 %4775  ;;  %v1668_v29 = vpack.c.bf16 %v1647_v40, %v1646_v25  ;;  %1971 = vst.msk [vmem:[#allocation2 + $0x168] sm:$0x1] %vm1955_vm13, %v5747_v41  ;;  %1972 = vst.msk [vmem:[#allocation2 + $0x180] sm:$0x1] %vm1955_vm13, %v5747_v41  ;;  %v2027_v32 = vld [vmem:[#allocation2 + $0x10] sm:$0x3] }
 0x1fc   : > { %v4778_v33 = vunpack.i.h.bf16 %v7267_v38  ;;  %v4777_v56 = vunpack.i.l.bf16 %v7267_v38  ;;  %1975 = vst.msk [vmem:[#allocation2 + $0x29] sm:$0x1] %vm1955_vm13, %v5747_v41  ;;  %1976 = vst.msk [vmem:[#allocation2 + $0x41] sm:$0x1] %vm1955_vm13, %v5747_v41  ;;  %v1553_v0 = vsel %vm1526_vm7, %v1520_v48, %v4782_v26  ;;  %v1554_v20 = vsel %vm1526_vm7, %v1521_v37, %v4783_v6  ;;  %v9041_v37 = vld [vmem:[#allocation45_spill] sm:$0xff] }
 0x1fd   : > { %4066 = vmatprep.mubr.msk.bf16.mxu0 %vm1701_vm11, %v1668_v29  ;;  %v7270_v58 = vpop.permute.xlu1 %4790  ;;  %1977 = vst.msk [vmem:[#allocation2 + $0x59] sm:$0x1] %vm1955_vm13, %v5747_v41  ;;  %1978 = vst.msk [vmem:[#allocation2 + $0x71] sm:$0x1] %vm1955_vm13, %v5747_v41  ;;  %v2128_v50 = vrot.slane %v7395_v61, 1  ;;  %v2127_v40 = vrot.slane %v2025_v63, 1  ;;  %v4528_v6 = vunpack.i.h.bf16 %v9040_v53 }
 0x1fe   : > { %4067 = vmatmul.mubr.msk.bf16.gmra.mrb[20].mxu0 %vm1701_vm11, %v1669_v62  ;;  %v4793_v14 = vunpack.i.h.bf16 %v7270_v58  ;;  %v4792_v47 = vunpack.i.l.bf16 %v7270_v58  ;;  %1979 = vst.msk [vmem:[#allocation2 + $0x89] sm:$0x1] %vm1955_vm13, %v5747_v41  ;;  %1980 = vst.msk [vmem:[#allocation2 + $0xa1] sm:$0x1] %vm1955_vm13, %v5747_v41  ;;  %v1551_v52 = vsel %vm1526_vm7, %v1518_v34, %v4777_v56  ;;  %v1552_v3 = vsel %vm1526_vm7, %v1519_v10, %v4778_v33  ;;  %v9039_v29 = vld [vmem:[#allocation31_spill] sm:$0xff] }
 0x1ff   : > { %v7275_v9 = vpop.permute.xlu0 %4785  ;;  %1981 = vst.msk [vmem:[#allocation2 + $0xb9] sm:$0x1] %vm1955_vm13, %v5747_v41  ;;  %1982 = vst.msk [vmem:[#allocation2 + $0xd1] sm:$0x1] %vm1955_vm13, %v5747_v41  ;;  %v2130_v38 = vrot.slane %v2027_v32, 1  ;;  %v4532_v58 = vunpack.i.l.bf16 %v9039_v29  ;;  %v2129_v24 = vsel %vm438_vm0, %v2127_v40, %v2128_v50  ;;  %v4533_v30 = vunpack.i.h.bf16 %v9039_v29  ;;  %v5417_v29 = vld [vmem:[#allocation9] sm:$0xff]  }
 0x200   : > { %1983 = vst.msk [vmem:[#allocation2 + $0xe9] sm:$0x1] %vm1955_vm13, %v5747_v41  ;;  %1984 = vst.msk [vmem:[#allocation2 + $0x101] sm:$0x1] %vm1955_vm13, %v5747_v41  ;;  %v4788_v17 = vunpack.i.h.bf16 %v7275_v9  ;;  %v4787_v36 = vunpack.i.l.bf16 %v7275_v9  ;;  %v1586_v15 = vsel %vm1559_vm8, %v1553_v0, %v4792_v47  ;;  %v1587_v19 = vsel %vm1559_vm8, %v1554_v20, %v4793_v14 }
 0x201   : > { %v7295_v7 = vpop.permute.xlu1 %4800  ;;  %1985 = vst.msk [vmem:[#allocation2 + $0x119] sm:$0x1] %vm1955_vm13, %v5747_v41  ;;  %1986 = vst.msk [vmem:[#allocation2 + $0x131] sm:$0x1] %vm1955_vm13, %v5747_v41  ;;  %v2131_v11 = vsel %vm438_vm0, %v2128_v50, %v2130_v38  ;;  %v2207_v9 = vrot.slane %v2025_v63, 2  ;;  %v2210_v56 = vrot.slane %v2027_v32, 2  ;;  %v1524_v14 = vsel %vm1493_vm6, %v9041_v37, %v4532_v58 }
 0x202   : > { %1987 = vst.msk [vmem:[#allocation2 + $0x149] sm:$0x1] %vm1955_vm13, %v5747_v41  ;;  %1988 = vst.msk [vmem:[#allocation2 + $0x161] sm:$0x1] %vm1955_vm13, %v5747_v41  ;;  %v4803_v21 = vunpack.i.h.bf16 %v7295_v7  ;;  %v4802_v22 = vunpack.i.l.bf16 %v7295_v7  ;;  %v1584_v27 = vsel %vm1559_vm8, %v1551_v52, %v4787_v36  ;;  %v1585_v13 = vsel %vm1559_vm8, %v1552_v3, %v4788_v17  ;;  %v7532_v38 = vld [vmem:[#allocation8] ss:$0 sm:$0xff] }
 0x203   : > { %1989 = vst.msk [vmem:[#allocation2 + $0x179] sm:$0x1] %vm1955_vm13, %v5747_v41  ;;  %1990 = vst.msk [vmem:[#allocation2 + $0x191] sm:$0x1] %vm1955_vm13, %v5747_v41  ;;  %v4796_v49 = vpop.permute.xlu0 %4795  ;;  %v4854_v33 = vpack.i.bf16 %v2131_v11, %v2129_v24  ;;  %v4527_v7 = vunpack.i.l.bf16 %v9040_v53  ;;  %v2209_v1 = vsel %vm519_vm1, %v2207_v9, %v2208_v4  ;;  %v5748_v58 = vmov 0  }
 0x204   : > { %1973 = vst.msk [vmem:[#allocation2 + $0x198] sm:$0x1] %vm1955_vm13, %v5747_v41  ;;  %1991 = vst.msk [vmem:[#allocation2 + $0x1a9] sm:$0x1] %vm1955_vm13, %v5747_v41  ;;  %v4798_v28 = vunpack.i.h.bf16 %v4796_v49  ;;  %v4797_v2 = vunpack.i.l.bf16 %v4796_v49  ;;  %v1619_v12 = vsel %vm1592_vm9, %v1586_v15, %v4802_v22  ;;  %v1620_v46 = vsel %vm1592_vm9, %v1587_v19, %v4803_v21  ;;  %v9042_v22 = vld [vmem:[#allocation46_spill] sm:$0xff]  ;;  %3405 = vmatprep.subr.bf16.mxu0 %v5748_v58 }
 0x205   : > { %v4811_v8 = vpop.permute.xlu1 %4810  ;;  %3599 = vst.msk [vmem:[%s7422_s30 + $0x8] sm:$0x3] %vm1949_vm12, %v5747_v41  ;;  %3974 = vst.msk [vmem:[%s7422_s30 + $0x98] sm:$0x3] %vm1949_vm12, %v5747_v41  ;;  %4855 = vrot.lane.b32.xlu0 %v4854_v33, %s5742_s26  ;;  %v2211_v21 = vsel %vm519_vm1, %v2208_v4, %v2210_v56  ;;  %v1525_v49 = vsel %vm1493_vm6, %v9042_v22, %v4533_v30  ;;  %4078 = vmatprep.subr.bf16.mxu1 %v5748_v58  ;;  %v5418_v56 = vld [vmem:[#allocation9 + $0x8] sm:$0xff]  }
 0x206   : > { %v4813_v44 = vunpack.i.h.bf16 %v4811_v8  ;;  %v4812_v54 = vunpack.i.l.bf16 %v4811_v8  ;;  %v1617_v16 = vsel %vm1592_vm9, %v1584_v27, %v4797_v2  ;;  %v1618_v43 = vsel %vm1592_vm9, %v1585_v13, %v4798_v28  ;;  %3598 = vst.msk [vmem:[%s7422_s30] sm:$0xff] %vm1493_vm6, %v5747_v41  ;;  %3973 = vst.msk [vmem:[%s7422_s30 + $0x90] sm:$0xff] %vm1493_vm6, %v5747_v41  ;;  %v9043_v28 = vld [vmem:[#allocation47_spill] sm:$0xff]  ;;  %v9044_v2 = vld [vmem:[#allocation48_spill] sm:$0xff]  ;;  %3406 = vmatpush1.bf16.msra.mxu0 %v5417_v29 }
 0x207   : > { %v4806_v5 = vpop.permute.xlu0 %4805  ;;  %3604 = vst.msk [vmem:[%s7422_s30 + $0x10] sm:$0x1] %vm1955_vm13, %v5747_v41  ;;  %3605 = vst.msk [vmem:[%s7422_s30 + $0x20] sm:$0x1] %vm1955_vm13, %v5747_v41  ;;  %v4859_v3 = vpack.i.bf16 %v2211_v21, %v2209_v1  ;;  %v1523_v8 = vsel %vm1493_vm6, %v9044_v2, %v4528_v6  ;;  %4087 = vmatpush1.bf16.msra.mxu1 %v5417_v29  ;;  %3407 = vmatprep.subr.bf16.mxu0 %v5748_v58 }
 0x208   : > { %v1652_v45 = vsel %vm1625_vm10, %v1619_v12, %v4812_v54  ;;  %v1653_v55 = vsel %vm1625_vm10, %v1620_v46, %v4813_v44  ;;  %v4808_v51 = vunpack.i.h.bf16 %v4806_v5  ;;  %v4807_v39 = vunpack.i.l.bf16 %v4806_v5  ;;  %3606 = vst.msk [vmem:[%s7422_s30 + $0x30] sm:$0x1] %vm1955_vm13, %v5747_v41  ;;  %3607 = vst.msk [vmem:[%s7422_s30 + $0x40] sm:$0x1] %vm1955_vm13, %v5747_v41  ;;  %4079 = vmatprep.subr.bf16.mxu1 %v5748_v58 }
 0x209   : > { %v7399_v42 = vpop.permute.xlu1 %4820  ;;  %v1671_v35 = vpack.c.bf16 %v1653_v55, %v1652_v45  ;;  %3608 = vst.msk [vmem:[%s7422_s30 + $0x50] sm:$0x1] %vm1955_vm13, %v5747_v41  ;;  %3609 = vst.msk [vmem:[%s7422_s30 + $0x60] sm:$0x1] %vm1955_vm13, %v5747_v41  ;;  %4860 = vrot.lane.b32.xlu0 %v4859_v3, %s5746_s12 }
 0x20a   : > { %v1650_v23 = vsel %vm1625_vm10, %v1617_v16, %v4807_v39  ;;  %v1651_v18 = vsel %vm1625_vm10, %v1618_v43, %v4808_v51  ;;  %v4823_v59 = vunpack.i.h.bf16 %v7399_v42  ;;  %v4822_v48 = vunpack.i.l.bf16 %v7399_v42  ;;  %3610 = vst.msk [vmem:[%s7422_s30 + $0x70] sm:$0x1] %vm1955_vm13, %v5747_v41  ;;  %3611 = vst.msk [vmem:[%s7422_s30 + $0x80] sm:$0x1] %vm1955_vm13, %v5747_v41  ;;  %3408 = vmatpush1.bf16.msra.mxu0 %v5418_v56 }
 0x20b   : > { %v7404_v62 = vpop.permute.xlu0 %4815  ;;  %v1670_v25 = vpack.c.bf16 %v1651_v18, %v1650_v23  ;;  %3614 = vst.msk [vmem:[%s7422_s30 + $0x19] sm:$0x1] %vm1955_vm13, %v5747_v41  ;;  %3615 = vst.msk [vmem:[%s7422_s30 + $0x29] sm:$0x1] %vm1955_vm13, %v5747_v41  ;;  %4088 = vmatpush1.bf16.msra.mxu1 %v5418_v56  ;;  %3409 = vmatprep.subr.bf16.mxu0 %v5748_v58 }
 0x20c   : > { %3616 = vst.msk [vmem:[%s7422_s30 + $0x39] sm:$0x1] %vm1955_vm13, %v5747_v41  ;;  %3617 = vst.msk [vmem:[%s7422_s30 + $0x49] sm:$0x1] %vm1955_vm13, %v5747_v41  ;;  %v4818_v47 = vunpack.i.h.bf16 %v7404_v62  ;;  %v4817_v17 = vunpack.i.l.bf16 %v7404_v62  ;;  %v1557_v15 = vsel %vm1526_vm7, %v1524_v14, %v4822_v48  ;;  %v1558_v19 = vsel %vm1526_vm7, %v1525_v49, %v4823_v59  ;;  %4080 = vmatprep.subr.bf16.mxu1 %v5748_v58  ;;  %v5419_v48 = vld [vmem:[#allocation9 + $0x10] sm:$0xff]  }
 0x20d   : > { %4070 = vmatprep.mubr.msk.bf16.mxu0 %vm1701_vm11, %v1670_v25  ;;  %v7408_v31 = vpop.permute.xlu1 %4830  ;;  %3618 = vst.msk [vmem:[%s7422_s30 + $0x59] sm:$0x1] %vm1955_vm13, %v5747_v41  ;;  %3619 = vst.msk [vmem:[%s7422_s30 + $0x69] sm:$0x1] %vm1955_vm13, %v5747_v41 }
 0x20e   : > { %4071 = vmatmul.mubr.msk.bf16.gmra.mrb[24].mxu0 %vm1701_vm11, %v1671_v35  ;;  %3620 = vst.msk [vmem:[%s7422_s30 + $0x79] sm:$0x1] %vm1955_vm13, %v5747_v41  ;;  %3621 = vst.msk [vmem:[%s7422_s30 + $0x89] sm:$0x1] %vm1955_vm13, %v5747_v41  ;;  %v4833_v60 = vunpack.i.h.bf16 %v7408_v31  ;;  %v4832_v34 = vunpack.i.l.bf16 %v7408_v31  ;;  %v1556_v54 = vsel %vm1526_vm7, %v1523_v8, %v4818_v47 }
 0x20f   : > { %v7417_v26 = vpop.permute.xlu0 %4825  ;;  %3613 = vst.msk [vmem:[%s7422_s30 + $0x9] sm:$0x1] %vm1955_vm13, %v5747_v41  ;;  %3622 = vst.msk [vmem:[%s7422_s30 + $0x99] sm:$0x1] %vm1955_vm13, %v5747_v41  ;;  %3410 = vmatpush1.bf16.msra.mxu0 %v5419_v48  ;;  %4089 = vmatpush1.bf16.msra.mxu1 %v5419_v48 }
 0x210   : > { %3603 = vst.msk [vmem:[%s7422_s30] sm:$0x1] %vm1955_vm13, %v5747_v41  ;;  %3612 = vst.msk [vmem:[%s7422_s30 + $0x90] sm:$0x1] %vm1955_vm13, %v5747_v41  ;;  %v4828_v57 = vunpack.i.h.bf16 %v7417_v26  ;;  %v4827_v10 = vunpack.i.l.bf16 %v7417_v26  ;;  %v1522_v41 = vsel %vm1493_vm6, %v9043_v28, %v4527_v7  ;;  %v1590_v46 = vsel %vm1559_vm8, %v1557_v15, %v4832_v34  ;;  %3411 = vmatprep.subr.bf16.mxu0 %v5748_v58 }
 0x211   : > { %v4841_v36 = vpop.permute.xlu1 %4840  ;;  %v1555_v44 = vsel %vm1526_vm7, %v1522_v41, %v4817_v17  ;;  %v1591_v5 = vsel %vm1559_vm8, %v1558_v19, %v4833_v60  ;;  %v5420_v60 = vld [vmem:[#allocation9 + $0x18] sm:$0xff]   ;;  %4081 = vmatprep.subr.bf16.mxu1 %v5748_v58 }
 0x212   : > { %v4843_v0 = vunpack.i.h.bf16 %v4841_v36  ;;  %v4842_v20 = vunpack.i.l.bf16 %v4841_v36  ;;  %v1588_v51 = vsel %vm1559_vm8, %v1555_v44, %v4827_v10  ;;  %v1589_v39 = vsel %vm1559_vm8, %v1556_v54, %v4828_v57 }
 0x213   : > { %v4836_v52 = vpop.permute.xlu0 %4835  ;;  %3412 = vmatpush1.bf16.msra.mxu0 %v5420_v60  ;;  %4090 = vmatpush1.bf16.msra.mxu1 %v5420_v60 }
 0x214   : > { %v4838_v27 = vunpack.i.h.bf16 %v4836_v52  ;;  %v4837_v13 = vunpack.i.l.bf16 %v4836_v52  ;;  %v1623_v61 = vsel %vm1592_vm9, %v1590_v46, %v4842_v20  ;;  %v1624_v16 = vsel %vm1592_vm9, %v1591_v5, %v4843_v0  ;;  %v5421_v46 = vld [vmem:[#allocation9 + $0x20] sm:$0xff]   ;;  %3413 = vmatprep.subr.bf16.mxu0 %v5748_v58  ;;  %4082 = vmatprep.subr.bf16.mxu1 %v5748_v58 }
 0x215   : > { %v4851_v12 = vpop.permute.xlu1 %4850 }
 0x216   : > { %v4853_v45 = vunpack.i.h.bf16 %v4851_v12  ;;  %v4852_v55 = vunpack.i.l.bf16 %v4851_v12  ;;  %v1621_v50 = vsel %vm1592_vm9, %v1588_v51, %v4837_v13  ;;  %v1622_v23 = vsel %vm1592_vm9, %v1589_v39, %v4838_v27 }
 0x217   : > { %v4846_v43 = vpop.permute.xlu0 %4845  ;;  %3414 = vmatpush1.bf16.msra.mxu0 %v5421_v46  ;;  %4091 = vmatpush1.bf16.msra.mxu1 %v5421_v46 }
 0x218   : > { %v1656_v42 = vsel %vm1625_vm10, %v1623_v61, %v4852_v55  ;;  %v1657_v35 = vsel %vm1625_vm10, %v1624_v16, %v4853_v45  ;;  %v4848_v63 = vunpack.i.h.bf16 %v4846_v43  ;;  %v4847_v32 = vunpack.i.l.bf16 %v4846_v43  ;;  %3415 = vmatprep.subr.bf16.mxu0 %v5748_v58  ;;  %4083 = vmatprep.subr.bf16.mxu1 %v5748_v58 }
 0x219   : > { %v1673_v18 = vpack.c.bf16 %v1657_v35, %v1656_v42 }
 0x21a   : > { %v1654_v62 = vsel %vm1625_vm10, %v1621_v50, %v4847_v32  ;;  %v1655_v25 = vsel %vm1625_vm10, %v1622_v23, %v4848_v63  ;;  %v5422_v63 = vld [vmem:[#allocation9 + $0x28] sm:$0xff]  }
 0x21b   : > { %v1672_v40 = vpack.c.bf16 %v1655_v25, %v1654_v62  ;;  %3416 = vmatpush1.bf16.msra.mxu0 %v5422_v63  ;;  %4092 = vmatpush1.bf16.msra.mxu1 %v5422_v63 }
 0x21c   : > { %3417 = vmatprep.subr.bf16.mxu0 %v5748_v58  ;;  %4084 = vmatprep.subr.bf16.mxu1 %v5748_v58 }
 0x21d   : > { %4074 = vmatprep.mubr.msk.bf16.mxu0 %vm1701_vm11, %v1672_v40 }
 0x21e   : > { %4075 = vmatmul.mubr.msk.bf16.gmra.mrb[28].mxu0 %vm1701_vm11, %v1673_v18 }
 0x285   : > { %v4048_v31 = vpop.f32.mrb[0].mxu0 }
 0x286   : > { %v1797_v24 = vadd.f32 %v4048_v31, %v7532_v38  ;;  %v1788_v11 = vpop.f32.mrb[1].mxu0 }
 0x287   : > { %v1789_v9 = vadd.f32 %v7532_v38, %v1788_v11  ;;  %v4049_v4 = vpop.f32.mrb[2].mxu0 }
 0x288   : > { %v1917_v30 = vmax.f32 %v1797_v24, 0.0  ;;  %v1800_v53 = vadd.f32 %v4049_v4, %v7532_v38  ;;  %v1791_v6 = vpop.f32.mrb[3].mxu0 }
 0x289   : > { %v1915_v26 = vmax.f32 %v1789_v9, 0.0  ;;  %v1792_v33 = vadd.f32 %v7532_v38, %v1791_v6 }
 0x28a   : > { %1995 = vst.msk [vmem:[#allocation2 + $0x31] sm:$0xff] %vm1493_vm6, %v1917_v30  ;;  %v1918_v7 = vmax.f32 %v1800_v53, 0.0  ;;  %v5423_v53 = vld [vmem:[#allocation9 + $0x30] sm:$0xff]  }
 0x28b   : > { %1993 = vst.msk [vmem:[#allocation2 + $0x19] sm:$0xff] %vm1493_vm6, %v1915_v26  ;;  %v1916_v59 = vmax.f32 %v1792_v33, 0.0  ;;  %3418 = vmatpush1.bf16.msra.mxu0 %v5423_v53  ;;  %4093 = vmatpush1.bf16.msra.mxu1 %v5423_v53 }
 0x28c   : > { %1996 = vst.msk [vmem:[#allocation2 + $0x39] sm:$0xff] %vm1493_vm6, %v1918_v7  ;;  %3419 = vmatprep.subr.bf16.mxu0 %v5748_v58  ;;  %4085 = vmatprep.subr.bf16.mxu1 %v5748_v58 }
 0x28d   : > { %1994 = vst.msk [vmem:[#allocation2 + $0x21] sm:$0xff] %vm1493_vm6, %v1916_v59 }
 0x291   : > { %v4052_v1 = vpop.f32.mrb[4].mxu0  ;;  %v2031_v37 = vld [vmem:[#allocation2 + $0x30] sm:$0xff] }
 0x292   : > { %v1813_v14 = vadd.f32 %v4052_v1, %v7532_v38  ;;  %v1804_v47 = vpop.f32.mrb[5].mxu0  ;;  %v2217_v49 = vrot.slane %v2031_v37, 2  ;;  %v2137_v8 = vrot.slane %v2031_v37, 1  ;;  %v7560_v13 = vld [vmem:[#allocation2 + $0x18] sm:$0xff] }
 0x293   : > { %v1805_v17 = vadd.f32 %v7532_v38, %v1804_v47  ;;  %v4053_v36 = vpop.f32.mrb[6].mxu0  ;;  %v2032_v21 = vld [vmem:[#allocation2 + $0x38] sm:$0xff]  ;;  %v2033_v22 = vld [vmem:[#allocation2 + $0x40] sm:$0x3]  ;;  %v2132_v43 = vrot.slane %v7560_v13, 1  ;;  %v2212_v23 = vrot.slane %v7560_v13, 2 }
 0x294   : > { %v1921_v34 = vmax.f32 %v1813_v14, 0.0  ;;  %v1816_v57 = vadd.f32 %v4053_v36, %v7532_v38  ;;  %v1807_v10 = vpop.f32.mrb[7].mxu0  ;;  %v4869_v0 = vpack.i.bf16 %v2032_v21, %v2031_v37  ;;  %v2218_v3 = vrot.slane %v2032_v21, 2  ;;  %v2029_v41 = vld [vmem:[#allocation2 + $0x20] sm:$0xff]  ;;  %v2030_v12 = vld [vmem:[#allocation2 + $0x28] sm:$0x3] }
 0x295   : > { %v1919_v20 = vmax.f32 %v1805_v17, 0.0  ;;  %v1808_v52 = vadd.f32 %v7532_v38, %v1807_v10  ;;  %v2220_v28 = vrot.slane %v2033_v22, 2  ;;  %v2138_v15 = vrot.slane %v2032_v21, 1 }
 0x296   : > { %1999 = vst.msk [vmem:[#allocation2 + $0x61] sm:$0xff] %vm1493_vm6, %v1921_v34  ;;  %v1922_v2 = vmax.f32 %v1816_v57, 0.0  ;;  %4870 = vrot.lane.b32.xlu0 %v4869_v0, %s5749_s8  ;;  %4865 = vrot.lane.b32.xlu1 %v4869_v0, %s5750_s19  ;;  %v2140_v19 = vrot.slane %v2033_v22, 1  ;;  %v2219_v54 = vsel %vm519_vm1, %v2217_v49, %v2218_v3  ;;  %v4874_v51 = vpack.i.bf16 %v2029_v41, %v7560_v13  ;;  %v5424_v0 = vld [vmem:[#allocation9 + $0x38] sm:$0xff]  }
 0x297   : > { %1997 = vst.msk [vmem:[#allocation2 + $0x49] sm:$0xff] %vm1493_vm6, %v1919_v20  ;;  %v1920_v44 = vmax.f32 %v1808_v52, 0.0  ;;  %v2221_v27 = vsel %vm519_vm1, %v2218_v3, %v2220_v28  ;;  %v2139_v45 = vsel %vm438_vm0, %v2137_v8, %v2138_v15  ;;  %v2133_v61 = vrot.slane %v2029_v41, 1  ;;  %3420 = vmatpush1.bf16.msra.mxu0 %v5424_v0  ;;  %4094 = vmatpush1.bf16.msra.mxu1 %v5424_v0 }
 0x298   : > { %2000 = vst.msk [vmem:[#allocation2 + $0x69] sm:$0xff] %vm1493_vm6, %v1922_v2  ;;  %v3247_v5 = vpack.c.bf16 %v2221_v27, %v2219_v54  ;;  %v2141_v55 = vsel %vm438_vm0, %v2138_v15, %v2140_v19  ;;  %v2135_v16 = vrot.slane %v2030_v12, 1  ;;  %v2213_v42 = vrot.slane %v2029_v41, 2  ;;  %v5425_v41 = vld [vmem:[#allocation9 + $0x40] sm:$0xff]   ;;  %3421 = vmatprep.subr.bf16.mxu0 %v5748_v58  ;;  %4086 = vmatprep.subr.bf16.mxu1 %v5748_v58 }
 0x299   : > { %1998 = vst.msk [vmem:[#allocation2 + $0x51] sm:$0xff] %vm1493_vm6, %v1920_v44  ;;  %v4879_v39 = vpack.i.bf16 %v2141_v55, %v2139_v45  ;;  %v2215_v35 = vrot.slane %v2030_v12, 2  ;;  %v2134_v32 = vsel %vm438_vm0, %v2132_v43, %v2133_v61  ;;  %v4894_v26 = vpack.i.bf16 %v2221_v27, %v2219_v54 }
 0x29a   : > { %3957 = vmatprep.mubr.msk.bf16.mxu0 %vm1493_vm6, %v3247_v5  ;;  %4875 = vrot.lane.b32.xlu1 %v4874_v51, %s5749_s8  ;;  %v2136_v50 = vsel %vm438_vm0, %v2133_v61, %v2135_v16  ;;  %v2214_v62 = vsel %vm519_vm1, %v2212_v23, %v2213_v42 }
 0x29b   : > { %4880 = vrot.lane.b32.xlu0 %v4879_v39, %s5742_s26  ;;  %v4904_v31 = vpack.i.bf16 %v2136_v50, %v2134_v32  ;;  %v2216_v24 = vsel %vm519_vm1, %v2213_v42, %v2215_v35  ;;  %3422 = vmatpush1.bf16.msra.mxu0 %v5425_v41 }
 0x29c   : > { %v4909_v47 = vpack.i.bf16 %v2216_v24, %v2214_v62  ;;  %4095 = vmatpush1.bf16.msra.mxu1 %v5425_v41 }
 0x29d   : > { %v2037_v25 = vld [vmem:[#allocation2 + $0x60] sm:$0xff] }
 0x29e   : > { %4885 = vrot.lane.b32.xlu1 %v4879_v39, %s5751_s20  ;;  %v7579_v18 = vld [vmem:[#allocation2 + $0x48] sm:$0xff]  ;;  %v2147_v1 = vrot.slane %v2037_v25, 1 }
 0x29f   : > { %4890 = vrot.lane.b32.xlu0 %v4879_v39, %s5752_s15  ;;  %v7583_v40 = vld [vmem:[#allocation2 + $0x68] sm:$0xff]  ;;  %v2039_v29 = vld [vmem:[#allocation2 + $0x70] sm:$0x3]  ;;  %v2142_v33 = vrot.slane %v7579_v18, 1 }
 0x2a0   : > { %v7586_v11 = vld [vmem:[#allocation2 + $0x50] sm:$0xff]  ;;  %v2148_v9 = vrot.slane %v7583_v40, 1  ;;  %v2150_v4 = vrot.slane %v2039_v29, 1  ;;  %v7589_v30 = vld [vmem:[#allocation2 + $0x58] sm:$0x3] }
 0x2a1   : > { %v4056_v6 = vpop.f32.mrb[8].mxu0  ;;  %v2143_v56 = vrot.slane %v7586_v11, 1  ;;  %v2145_v7 = vrot.slane %v7589_v30, 1  ;;  %v4924_v2 = vpack.i.bf16 %v7586_v11, %v7579_v18 }
 0x2a2   : > { %v1829_v59 = vadd.f32 %v4056_v6, %v7532_v38  ;;  %v1820_v48 = vpop.f32.mrb[9].mxu0  ;;  %4905 = vrot.lane.b32.xlu1 %v4904_v31, %s5742_s26  ;;  %v2149_v60 = vsel %vm438_vm0, %v2147_v1, %v2148_v9  ;;  %v2151_v34 = vsel %vm438_vm0, %v2148_v9, %v2150_v4 }
 0x2a3   : > { %4895 = vrot.lane.b32.xlu0 %v4894_v26, %s5753_s27  ;;  %v1821_v37 = vadd.f32 %v7532_v38, %v1820_v48  ;;  %v4057_v14 = vpop.f32.mrb[10].mxu0  ;;  %v2144_v17 = vsel %vm438_vm0, %v2142_v33, %v2143_v56  ;;  %v2146_v36 = vsel %vm438_vm0, %v2143_v56, %v2145_v7  ;;  %v7614_v28 = vpack.i.bf16 %v2151_v34, %v2149_v60 }
 0x2a4   : > { %v1925_v21 = vmax.f32 %v1829_v59, 0.0  ;;  %v1832_v22 = vadd.f32 %v4057_v14, %v7532_v38  ;;  %v1823_v49 = vpop.f32.mrb[11].mxu0  ;;  %v7610_v52 = vpack.i.bf16 %v2146_v36, %v2144_v17 }
 0x2a5   : > { %v1923_v57 = vmax.f32 %v1821_v37, 0.0  ;;  %v1824_v10 = vadd.f32 %v7532_v38, %v1823_v49 }
 0x2a6   : > { %2003 = vst.msk [vmem:[#allocation2 + $0x91] sm:$0xff] %vm1493_vm6, %v1925_v21  ;;  %v1926_v20 = vmax.f32 %v1832_v22, 0.0  ;;  %4910 = vrot.lane.b32.xlu1 %v4909_v47, %s5746_s12 }
 0x2a7   : > { %2001 = vst.msk [vmem:[#allocation2 + $0x79] sm:$0xff] %vm1493_vm6, %v1923_v57  ;;  %v1924_v3 = vmax.f32 %v1824_v10, 0.0  ;;  %4900 = vrot.lane.b32.xlu0 %v4894_v26, %s5746_s12 }
 0x2a8   : > { %2004 = vst.msk [vmem:[#allocation2 + $0x99] sm:$0xff] %vm1493_vm6, %v1926_v20 }
 0x2a9   : > { %2002 = vst.msk [vmem:[#allocation2 + $0x81] sm:$0xff] %vm1493_vm6, %v1924_v3 }
 0x2aa   : > { %4915 = vrot.lane.b32.xlu1 %v4904_v31, %s5752_s15 }
 0x2ab   : > { %4925 = vrot.lane.b32.xlu0 %v4924_v2, %s5750_s19 }
 0x2ad   : > { %v2043_v8 = vld [vmem:[#allocation2 + $0x90] sm:$0xff] }
 0x2ae   : > { %4920 = vrot.lane.b32.xlu1 %v4909_v47, %s5753_s27  ;;  %v2157_v44 = vrot.slane %v2043_v8, 1  ;;  %v7626_v54 = vld [vmem:[#allocation2 + $0x78] sm:$0xff]  ;;  %v2237_v55 = vrot.slane %v2043_v8, 2 }
 0x2af   : > { %4930 = vrot.lane.b32.xlu0 %v4924_v2, %s5749_s8  ;;  %v2044_v15 = vld [vmem:[#allocation2 + $0x98] sm:$0xff]  ;;  %v2045_v19 = vld [vmem:[#allocation2 + $0xa0] sm:$0x3]  ;;  %v2152_v42 = vrot.slane %v7626_v54, 1  ;;  %v2232_v35 = vrot.slane %v7626_v54, 2 }
 0x2b0   : > { %v2158_v27 = vrot.slane %v2044_v15, 1  ;;  %v2160_v12 = vrot.slane %v2045_v19, 1  ;;  %v2238_v46 = vrot.slane %v2044_v15, 2  ;;  %v7628_v5 = vld [vmem:[#allocation2 + $0x80] sm:$0xff]  ;;  %v2042_v58 = vld [vmem:[#allocation2 + $0x88] sm:$0x3]  ;;  %v4949_v23 = vpack.i.bf16 %v2044_v15, %v2043_v8 }
 0x2b1   : > { %v4060_v45 = vpop.f32.mrb[12].mxu0  ;;  %v2240_v51 = vrot.slane %v2045_v19, 2  ;;  %v2153_v39 = vrot.slane %v7628_v5, 1  ;;  %v2155_v61 = vrot.slane %v2042_v58, 1  ;;  %v2233_v63 = vrot.slane %v7628_v5, 2 }
 0x2b2   : > { %v1845_v16 = vadd.f32 %v4060_v45, %v7532_v38  ;;  %v1836_v43 = vpop.f32.mrb[13].mxu0  ;;  %4940 = vrot.lane.b32.xlu1 %v7610_v52, %s5742_s26  ;;  %v2159_v62 = vsel %vm438_vm0, %v2157_v44, %v2158_v27  ;;  %v2161_v25 = vsel %vm438_vm0, %v2158_v27, %v2160_v12  ;;  %v7644_v9 = vsel %vm519_vm1, %v2237_v55, %v2238_v46 }
 0x2b3   : > { %v1837_v32 = vadd.f32 %v7532_v38, %v1836_v43  ;;  %4935 = vrot.lane.b32.xlu0 %v7614_v28, %s5742_s26  ;;  %v4061_v50 = vpop.f32.mrb[14].mxu0  ;;  %9045 = vst [vmem:[#allocation20_spill] sm:$0xff] %v7644_v9  ;;  %v2154_v4 = vsel %vm438_vm0, %v2152_v42, %v2153_v39  ;;  %v7649_v26 = vsel %vm519_vm1, %v2238_v46, %v2240_v51  ;;  %v2235_v59 = vrot.slane %v2042_v58, 2 }
 0x2b4   : > { %v1929_v29 = vmax.f32 %v1845_v16, 0.0  ;;  %v1848_v31 = vadd.f32 %v4061_v50, %v7532_v38  ;;  %v1839_v24 = vpop.f32.mrb[15].mxu0  ;;  %9046 = vst [vmem:[#allocation22_spill] sm:$0xff] %v7649_v26  ;;  %v2156_v33 = vsel %vm438_vm0, %v2153_v39, %v2155_v61  ;;  %v7655_v7 = vsel %vm519_vm1, %v2232_v35, %v2233_v63 }
 0x2b5   : > { %v1927_v53 = vmax.f32 %v1837_v32, 0.0  ;;  %v1840_v6 = vadd.f32 %v7532_v38, %v1839_v24  ;;  %9047 = vst [vmem:[#allocation24_spill] sm:$0xff] %v7655_v7  ;;  %v7660_v1 = vpack.i.bf16 %v2156_v33, %v2154_v4  ;;  %v4964_v37 = vpack.i.bf16 %v7649_v26, %v7644_v9  ;;  %v5447_v26 = vld [vmem:[#allocation2] sm:$0xff] }
 0x2b6   : > { %2007 = vst.msk [vmem:[#allocation2 + $0xc1] sm:$0xff] %vm1493_vm6, %v1929_v29  ;;  %v1930_v56 = vmax.f32 %v1848_v31, 0.0  ;;  %4950 = vrot.lane.b32.xlu1 %v4949_v23, %s5749_s8  ;;  %v7666_v14 = vsel %vm519_vm1, %v2233_v63, %v2235_v59  ;;  %v7668_v47 = vpack.i.bf16 %v2161_v25, %v2159_v62 }
 0x2b7   : > { %2005 = vst.msk [vmem:[#allocation2 + $0xa9] sm:$0xff] %vm1493_vm6, %v1927_v53  ;;  %v1928_v48 = vmax.f32 %v1840_v6, 0.0  ;;  %4945 = vrot.lane.b32.xlu0 %v7610_v52, %s5751_s20  ;;  %9048 = vst [vmem:[#allocation21_spill] sm:$0xff] %v7666_v14  ;;  %v7673_v17 = vpack.i.bf16 %v7666_v14, %v7655_v7  ;;  %v5446_v6 = vld [vmem:[#allocation2 + $0x8] sm:$0xff] }
 0x2b8   : > { %2008 = vst.msk [vmem:[#allocation2 + $0xc9] sm:$0xff] %vm1493_vm6, %v1930_v56 }
 0x2b9   : > { %2006 = vst.msk [vmem:[#allocation2 + $0xb1] sm:$0xff] %vm1493_vm6, %v1928_v48 }
 0x2ba   : > { %4965 = vrot.lane.b32.xlu1 %v4964_v37, %s5753_s27 }
 0x2bb   : > { %4955 = vrot.lane.b32.xlu0 %v7668_v47, %s5742_s26 }
 0x2bd   : > { %v2049_v49 = vld [vmem:[#allocation2 + $0xc0] sm:$0xff] }
 0x2be   : > { %4975 = vrot.lane.b32.xlu1 %v7660_v1, %s5742_s26  ;;  %v2046_v22 = vld [vmem:[#allocation2 + $0xa8] sm:$0xff]  ;;  %v2167_v27 = vrot.slane %v2049_v49, 1  ;;  %v2247_v12 = vrot.slane %v2049_v49, 2 }
 0x2bf   : > { %4960 = vrot.lane.b32.xlu0 %v7668_v47, %s5752_s15  ;;  %v2050_v60 = vld [vmem:[#allocation2 + $0xc8] sm:$0xff]  ;;  %v2051_v34 = vld [vmem:[#allocation2 + $0xd0] sm:$0x3]  ;;  %v2242_v2 = vrot.slane %v2046_v22, 2  ;;  %v2162_v33 = vrot.slane %v2046_v22, 1 }
 0x2c0   : > { %v4989_v57 = vpack.i.bf16 %v2050_v60, %v2049_v49  ;;  %v2047_v10 = vld [vmem:[#allocation2 + $0xb0] sm:$0xff]  ;;  %v2048_v0 = vld [vmem:[#allocation2 + $0xb8] sm:$0x3]  ;;  %v2168_v20 = vrot.slane %v2050_v60, 1  ;;  %v2170_v3 = vrot.slane %v2051_v34, 1  ;;  %v2248_v50 = vrot.slane %v2050_v60, 2 }
 0x2c1   : > { %v4064_v41 = vpop.f32.mrb[16].mxu0  ;;  %v2243_v8 = vrot.slane %v2047_v10, 2  ;;  %v2245_v15 = vrot.slane %v2048_v0, 2  ;;  %v4999_v51 = vpack.i.bf16 %v2047_v10, %v2046_v22  ;;  %v2250_v62 = vrot.slane %v2051_v34, 2 }
 0x2c2   : > { %v1861_v19 = vadd.f32 %v4064_v41, %v7532_v38  ;;  %v1852_v44 = vpop.f32.mrb[17].mxu0  ;;  %4990 = vrot.lane.b32.xlu1 %v4989_v57, %s5749_s8  ;;  %v2169_v43 = vsel %vm438_vm0, %v2167_v27, %v2168_v20  ;;  %v2171_v42 = vsel %vm438_vm0, %v2168_v20, %v2170_v3  ;;  %v7709_v29 = vsel %vm519_vm1, %v2247_v12, %v2248_v50 }
 0x2c3   : > { %v1853_v46 = vadd.f32 %v7532_v38, %v1852_v44  ;;  %4970 = vrot.lane.b32.xlu0 %v4964_v37, %s5746_s12  ;;  %v4065_v58 = vpop.f32.mrb[18].mxu0  ;;  %v7691_v45 = vsel %vm519_vm1, %v2242_v2, %v2243_v8  ;;  %v7694_v55 = vsel %vm519_vm1, %v2243_v8, %v2245_v15  ;;  %v5009_v31 = vpack.i.bf16 %v2171_v42, %v2169_v43 }
 0x2c4   : > { %v1933_v39 = vmax.f32 %v1861_v19, 0.0  ;;  %v1864_v61 = vadd.f32 %v4065_v58, %v7532_v38  ;;  %v1855_v16 = vpop.f32.mrb[19].mxu0  ;;  %v3257_v32 = vpack.c.bf16 %v7694_v55, %v7691_v45  ;;  %v7713_v24 = vsel %vm519_vm1, %v2248_v50, %v2250_v62 }
 0x2c5   : > { %v1931_v35 = vmax.f32 %v1853_v46, 0.0  ;;  %v1856_v63 = vadd.f32 %v7532_v38, %v1855_v16  ;;  %v2165_v4 = vrot.slane %v2048_v0, 1  ;;  %v2163_v53 = vrot.slane %v2047_v10, 1 }
 0x2c6   : > { %2011 = vst.msk [vmem:[#allocation2 + $0xf1] sm:$0xff] %vm1493_vm6, %v1933_v39  ;;  %v1934_v23 = vmax.f32 %v1864_v61, 0.0  ;;  %5000 = vrot.lane.b32.xlu1 %v4999_v51, %s5749_s8  ;;  %3962 = vmatprep.mubr.msk.bf16.mxu1 %vm1493_vm6, %v3257_v32  ;;  %v5019_v56 = vpack.i.bf16 %v7713_v24, %v7709_v29  ;;  %v5044_v32 = vpack.i.bf16 %v7694_v55, %v7691_v45 }
 0x2c7   : > { %2009 = vst.msk [vmem:[#allocation2 + $0xd9] sm:$0xff] %vm1493_vm6, %v1931_v35  ;;  %v1932_v25 = vmax.f32 %v1856_v63, 0.0  ;;  %4980 = vrot.lane.b32.xlu0 %v7673_v17, %s5746_s12  ;;  %v2164_v59 = vsel %vm438_vm0, %v2162_v33, %v2163_v53  ;;  %v2166_v48 = vsel %vm438_vm0, %v2163_v53, %v2165_v4 }
 0x2c8   : > { %2012 = vst.msk [vmem:[#allocation2 + $0xf9] sm:$0xff] %vm1493_vm6, %v1934_v23  ;;  %v5029_v34 = vpack.i.bf16 %v2166_v48, %v2164_v59 }
 0x2c9   : > { %2010 = vst.msk [vmem:[#allocation2 + $0xe1] sm:$0xff] %vm1493_vm6, %v1932_v25 }
 0x2ca   : > { %5010 = vrot.lane.b32.xlu1 %v5009_v31, %s5751_s20 }
 0x2cb   : > { %4985 = vrot.lane.b32.xlu0 %v4989_v57, %s5750_s19 }
 0x2cd   : > { %v2055_v37 = vld [vmem:[#allocation2 + $0xf0] sm:$0xff] }
 0x2ce   : > { %5020 = vrot.lane.b32.xlu1 %v5019_v56, %s5753_s27  ;;  %v2257_v3 = vrot.slane %v2055_v37, 2  ;;  %v7730_v8 = vld [vmem:[#allocation2 + $0xd8] sm:$0xff]  ;;  %v2177_v55 = vrot.slane %v2055_v37, 1 }
 0x2cf   : > { %4995 = vrot.lane.b32.xlu0 %v4999_v51, %s5750_s19  ;;  %v2056_v49 = vld [vmem:[#allocation2 + $0xf8] sm:$0xff]  ;;  %v2057_v60 = vld [vmem:[#allocation2 + $0x100] sm:$0x3]  ;;  %v2252_v16 = vrot.slane %v7730_v8, 2 }
 0x2d0   : > { %v2258_v0 = vrot.slane %v2056_v49, 2  ;;  %v2260_v20 = vrot.slane %v2057_v60, 2  ;;  %v7732_v15 = vld [vmem:[#allocation2 + $0xe0] sm:$0xff]  ;;  %v7741_v58 = vld [vmem:[#allocation2 + $0xe8] sm:$0x3]  ;;  %v5059_v25 = vpack.i.bf16 %v2056_v49, %v2055_v37  ;;  %v2180_v45 = vrot.slane %v2057_v60, 1 }
 0x2d1   : > { %v4068_v10 = vpop.f32.mrb[20].mxu0  ;;  %v2253_v43 = vrot.slane %v7732_v15, 2  ;;  %v2255_v35 = vrot.slane %v7741_v58, 2  ;;  %v5069_v33 = vpack.i.bf16 %v7732_v15, %v7730_v8 }
 0x2d2   : > { %v1877_v22 = vadd.f32 %v4068_v10, %v7532_v38  ;;  %v1868_v57 = vpop.f32.mrb[21].mxu0  ;;  %5030 = vrot.lane.b32.xlu1 %v5029_v34, %s5742_s26  ;;  %v7736_v12 = vsel %vm519_vm1, %v2257_v3, %v2258_v0  ;;  %v7739_v46 = vsel %vm519_vm1, %v2258_v0, %v2260_v20 }
 0x2d3   : > { %v1869_v41 = vadd.f32 %v7532_v38, %v1868_v57  ;;  %5005 = vrot.lane.b32.xlu0 %v5009_v31, %s5742_s26  ;;  %v4069_v2 = vpop.f32.mrb[22].mxu0  ;;  %v7757_v50 = vsel %vm519_vm1, %v2252_v16, %v2253_v43  ;;  %v7761_v23 = vsel %vm519_vm1, %v2253_v43, %v2255_v35  ;;  %v2173_v57 = vrot.slane %v7732_v15, 1 }
 0x2d4   : > { %v1937_v19 = vmax.f32 %v1877_v22, 0.0  ;;  %v1880_v44 = vadd.f32 %v4069_v2, %v7532_v38  ;;  %v1871_v27 = vpop.f32.mrb[23].mxu0 }
 0x2d5   : > { %v1935_v51 = vmax.f32 %v1869_v41, 0.0  ;;  %v1872_v39 = vadd.f32 %v7532_v38, %v1871_v27 }
 0x2d6   : > { %2015 = vst.msk [vmem:[#allocation2 + $0x121] sm:$0xff] %vm1493_vm6, %v1937_v19  ;;  %v1938_v61 = vmax.f32 %v1880_v44, 0.0  ;;  %5035 = vrot.lane.b32.xlu1 %v5029_v34, %s5751_s20 }
 0x2d7   : > { %2013 = vst.msk [vmem:[#allocation2 + $0x109] sm:$0xff] %vm1493_vm6, %v1935_v51  ;;  %v1936_v42 = vmax.f32 %v1872_v39, 0.0  ;;  %5015 = vrot.lane.b32.xlu0 %v5009_v31, %s5752_s15  ;;  %v2178_v31 = vrot.slane %v2056_v49, 1  ;;  %v2175_v39 = vrot.slane %v7741_v58, 1 }
 0x2d8   : > { %2016 = vst.msk [vmem:[#allocation2 + $0x129] sm:$0xff] %vm1493_vm6, %v1938_v61 }
 0x2d9   : > { %2014 = vst.msk [vmem:[#allocation2 + $0x111] sm:$0xff] %vm1493_vm6, %v1936_v42  ;;  %v2181_v49 = vsel %vm438_vm0, %v2178_v31, %v2180_v45  ;;  %v2172_v45 = vrot.slane %v7730_v8, 1 }
 0x2da   : > { %5045 = vrot.lane.b32.xlu1 %v5044_v32, %s5753_s27 }
 0x2db   : > { %5025 = vrot.lane.b32.xlu0 %v5019_v56, %s5746_s12  ;;  %v2179_v56 = vsel %vm438_vm0, %v2177_v55, %v2178_v31  ;;  %v5089_v55 = vpack.i.bf16 %v7739_v46, %v7736_v12 }
 0x2dc   : > { %v5079_v51 = vpack.i.bf16 %v2181_v49, %v2179_v56  ;;  %v2174_v49 = vsel %vm438_vm0, %v2172_v45, %v2173_v57 }
 0x2dd   : > { %v7775_v59 = vld [vmem:[#allocation2 + $0x120] sm:$0xff] }
 0x2de   : > { %5060 = vrot.lane.b32.xlu1 %v5059_v25, %s5749_s8  ;;  %v7782_v37 = vld [vmem:[#allocation2 + $0x108] sm:$0xff]  ;;  %v2267_v41 = vrot.slane %v7775_v59, 2 }
 0x2df   : > { %5040 = vrot.lane.b32.xlu0 %v5029_v34, %s5752_s15  ;;  %v7769_v4 = vld [vmem:[#allocation2 + $0x128] sm:$0xff]  ;;  %v7771_v53 = vld [vmem:[#allocation2 + $0x130] sm:$0x3]  ;;  %v2262_v15 = vrot.slane %v7782_v37, 2 }
 0x2e0   : > { %v2268_v60 = vrot.slane %v7769_v4, 2  ;;  %v2270_v0 = vrot.slane %v7771_v53, 2  ;;  %v7788_v3 = vld [vmem:[#allocation2 + $0x110] sm:$0xff]  ;;  %v7791_v2 = vld [vmem:[#allocation2 + $0x118] sm:$0x3]  ;;  %v2190_v45 = vrot.slane %v7771_v53, 1 }
 0x2e1   : > { %v4072_v48 = vpop.f32.mrb[24].mxu0  ;;  %v2265_v58 = vrot.slane %v7791_v2, 2 }
 0x2e2   : > { %v1893_v10 = vadd.f32 %v4072_v48, %v7532_v38  ;;  %v1884_v34 = vpop.f32.mrb[25].mxu0  ;;  %5070 = vrot.lane.b32.xlu1 %v5069_v33, %s5749_s8  ;;  %v7797_v43 = vsel %vm519_vm1, %v2267_v41, %v2268_v60  ;;  %v7803_v35 = vsel %vm519_vm1, %v2268_v60, %v2270_v0  ;;  %v2176_v60 = vsel %vm438_vm0, %v2173_v57, %v2175_v39 }
 0x2e3   : > { %v1885_v20 = vadd.f32 %v7532_v38, %v1884_v34  ;;  %5050 = vrot.lane.b32.xlu0 %v5044_v32, %s5746_s12  ;;  %v4073_v22 = vpop.f32.mrb[26].mxu0  ;;  %9049 = vst [vmem:[#allocation29_spill] sm:$0xff] %v7797_v43  ;;  %9050 = vst [vmem:[#allocation30_spill] sm:$0xff] %v7803_v35  ;;  %v2263_v32 = vrot.slane %v7788_v3, 2 }
 0x2e4   : > { %v1941_v19 = vmax.f32 %v1893_v10, 0.0  ;;  %v1896_v44 = vadd.f32 %v4073_v22, %v7532_v38  ;;  %v1887_v27 = vpop.f32.mrb[27].mxu0  ;;  %v5099_v10 = vpack.i.bf16 %v2176_v60, %v2174_v49  ;;  %v2187_v60 = vrot.slane %v7775_v59, 1 }
 0x2e5   : > { %v1939_v61 = vmax.f32 %v1885_v20, 0.0  ;;  %v1888_v16 = vadd.f32 %v7532_v38, %v1887_v27  ;;  %v7814_v48 = vsel %vm519_vm1, %v2262_v15, %v2263_v32  ;;  %v7817_v56 = vsel %vm519_vm1, %v2263_v32, %v2265_v58 }
 0x2e6   : > { %2019 = vst.msk [vmem:[#allocation2 + $0x151] sm:$0xff] %vm1493_vm6, %v1941_v19  ;;  %v1942_v42 = vmax.f32 %v1896_v44, 0.0  ;;  %5080 = vrot.lane.b32.xlu1 %v5079_v51, %s5751_s20 }
 0x2e7   : > { %2017 = vst.msk [vmem:[#allocation2 + $0x139] sm:$0xff] %vm1493_vm6, %v1939_v61  ;;  %v1940_v31 = vmax.f32 %v1888_v16, 0.0  ;;  %5055 = vrot.lane.b32.xlu0 %v5059_v25, %s5750_s19  ;;  %v5114_v16 = vpack.i.bf16 %v7761_v23, %v7757_v50 }
 0x2e8   : > { %2020 = vst.msk [vmem:[#allocation2 + $0x159] sm:$0xff] %vm1493_vm6, %v1942_v42 }
 0x2e9   : > { %2018 = vst.msk [vmem:[#allocation2 + $0x141] sm:$0xff] %vm1493_vm6, %v1940_v31  ;;  %v2188_v31 = vrot.slane %v7769_v4, 1 }
 0x2ea   : > { %5090 = vrot.lane.b32.xlu1 %v5089_v55, %s5753_s27 }
 0x2eb   : > { %5065 = vrot.lane.b32.xlu0 %v5069_v33, %s5750_s19 }
 0x2ed   : > { %v7836_v19 = vld [vmem:[#allocation2 + $0x150] sm:$0xff] }
 0x2ee   : > { %5100 = vrot.lane.b32.xlu1 %v5099_v10, %s5742_s26  ;;  %v7838_v33 = vld [vmem:[#allocation2 + $0x138] sm:$0xff] }
 0x2ef   : > { %5075 = vrot.lane.b32.xlu0 %v5079_v51, %s5742_s26  ;;  %v7845_v15 = vld [vmem:[#allocation2 + $0x158] sm:$0xff]  ;;  %v7847_v42 = vld [vmem:[#allocation2 + $0x160] sm:$0x3] }
 0x2f0   : > { %v7830_v0 = vld [vmem:[#allocation2 + $0x140] sm:$0xff]  ;;  %v7840_v44 = vld [vmem:[#allocation2 + $0x148] sm:$0x3]  ;;  %v2278_v53 = vrot.slane %v7845_v15, 2 }
 0x2f1   : > { %v4076_v34 = vpop.f32.mrb[28].mxu0 }
 0x2f2   : > { %v1909_v20 = vadd.f32 %v4076_v34, %v7532_v38  ;;  %v1900_v22 = vpop.f32.mrb[29].mxu0  ;;  %5105 = vrot.lane.b32.xlu1 %v5099_v10, %s5751_s20  ;;  %v2272_v34 = vrot.slane %v7838_v33, 2 }
 0x2f3   : > { %v1901_v57 = vadd.f32 %v7532_v38, %v1900_v22  ;;  %5085 = vrot.lane.b32.xlu0 %v5079_v51, %s5752_s15  ;;  %v4077_v41 = vpop.f32.mrb[30].mxu0  ;;  %v2273_v51 = vrot.slane %v7830_v0, 2 }
 0x2f4   : > { %v1945_v27 = vmax.f32 %v1909_v20, 0.0  ;;  %v1912_v39 = vadd.f32 %v4077_v41, %v7532_v38  ;;  %v1903_v61 = vpop.f32.mrb[31].mxu0  ;;  %v2275_v20 = vrot.slane %v7840_v44, 2  ;;  %v5139_v41 = vpack.i.bf16 %v7788_v3, %v7782_v37 }
 0x2f5   : > { %v1943_v32 = vmax.f32 %v1901_v57, 0.0  ;;  %v1904_v58 = vadd.f32 %v7532_v38, %v1903_v61  ;;  %v2277_v38 = vrot.slane %v7836_v19, 2  ;;  %v2280_v57 = vrot.slane %v7847_v42, 2 }
 0x2f6   : > { %2023 = vst.msk [vmem:[#allocation2 + $0x181] sm:$0xff] %vm1493_vm6, %v1945_v27  ;;  %v1946_v49 = vmax.f32 %v1912_v39, 0.0  ;;  %5115 = vrot.lane.b32.xlu1 %v5114_v16, %s5753_s27  ;;  %v7867_v27 = vsel %vm519_vm1, %v2272_v34, %v2273_v51  ;;  %v7870_v39 = vsel %vm519_vm1, %v2273_v51, %v2275_v20  ;;  %v2191_v61 = vsel %vm438_vm0, %v2188_v31, %v2190_v45 }
 0x2f7   : > { %2021 = vst.msk [vmem:[#allocation2 + $0x169] sm:$0xff] %vm1493_vm6, %v1943_v32  ;;  %v1944_v22 = vmax.f32 %v1904_v58, 0.0  ;;  %5095 = vrot.lane.b32.xlu0 %v5089_v55, %s5746_s12  ;;  %v2189_v55 = vsel %vm438_vm0, %v2187_v60, %v2188_v31  ;;  %v7876_v32 = vsel %vm519_vm1, %v2277_v38, %v2278_v53  ;;  %v7879_v58 = vsel %vm519_vm1, %v2278_v53, %v2280_v57  ;;  %v4856_v60 = vpop.permute.xlu0 %4855 }
 0x2f8   : > { %2024 = vst.msk [vmem:[#allocation2 + $0x189] sm:$0xff] %vm1493_vm6, %v1946_v49  ;;  %v5149_v34 = vpack.i.bf16 %v2191_v61, %v2189_v55  ;;  %v2183_v31 = vrot.slane %v7788_v3, 1  ;;  %v2185_v45 = vrot.slane %v7791_v2, 1  ;;  %v2182_v20 = vrot.slane %v7782_v37, 1 }
 0x2f9   : > { %2022 = vst.msk [vmem:[#allocation2 + $0x171] sm:$0xff] %vm1493_vm6, %v1944_v22  ;;  %v5124_v3 = vpack.i.bf16 %v7769_v4, %v7775_v59 }
 0x2fa   : > { %5140 = vrot.lane.b32.xlu1 %v5139_v41, %s5749_s8  ;;  %v2184_v2 = vsel %vm438_vm0, %v2182_v20, %v2183_v31  ;;  %v2186_v57 = vsel %vm438_vm0, %v2183_v31, %v2185_v45 }
 0x2fb   : > { %5110 = vrot.lane.b32.xlu0 %v5099_v10, %s5752_s15  ;;  %v5164_v10 = vpack.i.bf16 %v7803_v35, %v7797_v43  ;;  %v4861_v37 = vpop.permute.xlu0 %4860  ;;  %v7915_v4 = vpack.i.bf16 %v2186_v57, %v2184_v2  ;;  %v2200_v43 = vrot.slane %v7847_v42, 1  ;;  %v2193_v35 = vrot.slane %v7830_v0, 1 }
 0x2fc   : > { %v4863_v63 = vunpack.i.h.bf16 %v4861_v37  ;;  %v4862_v62 = vunpack.i.l.bf16 %v4861_v37  ;;  %v2195_v37 = vrot.slane %v7840_v44, 1  ;;  %v2192_v42 = vrot.slane %v7838_v33, 1 }
 0x2fd   : > { %v7904_v55 = vld [vmem:[#allocation2 + $0x180] sm:$0xff] }
 0x2fe   : > { %5150 = vrot.lane.b32.xlu1 %v5149_v34, %s5751_s20  ;;  %v7892_v22 = vld [vmem:[#allocation2 + $0x168] sm:$0xff]  ;;  %v2295_v45 = vrot.slane %v7904_v55, 2 }
 0x2ff   : > { %5120 = vrot.lane.b32.xlu0 %v5114_v16, %s5746_s12  ;;  %v2282_v16 = vrot.slane %v7892_v22, 2  ;;  %v7910_v36 = vld [vmem:[#allocation2 + $0x188] sm:$0xff]  ;;  %v7912_v49 = vld [vmem:[#allocation2 + $0x190] sm:$0x3] }
 0x300   : > { %v7896_v38 = vld [vmem:[#allocation2 + $0x170] sm:$0xff]  ;;  %v7898_v53 = vld [vmem:[#allocation2 + $0x178] sm:$0x3]  ;;  %v2296_v20 = vrot.slane %v7910_v36, 2  ;;  %v2298_v51 = vrot.slane %v7912_v49, 2 }
 0x301   : > { %v2283_v61 = vrot.slane %v7896_v38, 2  ;;  %v2285_v21 = vrot.slane %v7898_v53, 2 }
 0x302   : > { %5165 = vrot.lane.b32.xlu1 %v5164_v10, %s5746_s12  ;;  %v7932_v2 = vsel %vm519_vm1, %v2295_v45, %v2296_v20  ;;  %v4858_v45 = vunpack.i.h.bf16 %v4856_v60 }
 0x303   : > { %5125 = vrot.lane.b32.xlu0 %v5124_v3, %s5750_s19  ;;  %v7918_v59 = vsel %vm519_vm1, %v2282_v16, %v2283_v61  ;;  %v7921_v31 = vsel %vm519_vm1, %v2283_v61, %v2285_v21  ;;  %v7935_v21 = vsel %vm519_vm1, %v2296_v20, %v2298_v51  ;;  %v4857_v20 = vunpack.i.l.bf16 %v4856_v60 }
 0x304   : > { %v3018_v9 = vsel %vm1493_vm6, %v5446_v6, %v4858_v45 }
 0x305   : > { %v3017_v7 = vsel %vm1493_vm6, %v5447_v26, %v4857_v20  ;;  %v3050_v6 = vsel %vm1625_vm10, %v3018_v9, %v4863_v63  ;;  %v2197_v26 = vrot.slane %v7836_v19, 1  ;;  %v2222_v20 = vrot.slane %v7579_v18, 2 }
 0x306   : > { %5170 = vrot.lane.b32.xlu1 %v7915_v4, %s5742_s26  ;;  %v2225_v63 = vrot.slane %v7589_v30, 2  ;;  %v2196_v18 = vsel %vm438_vm0, %v2193_v35, %v2195_v37  ;;  %v5448_v37 = vld [vmem:[#allocation2 + $0x20] sm:$0xff] }
 0x307   : > { %5130 = vrot.lane.b32.xlu0 %v5124_v3, %s5749_s8  ;;  %v7950_v3 = vpack.i.bf16 %v7817_v56, %v7814_v48 }
 0x308   : > { %v7937_v57 = vpop.permute.xlu0 %4870  ;;  %v7939_v16 = vpop.permute.xlu1 %4865 }
 0x30a   : > { %5175 = vrot.lane.b32.xlu1 %v7915_v4, %s5751_s20 }
 0x30b   : > { %5135 = vrot.lane.b32.xlu0 %v5139_v41, %s5750_s19  ;;  %v5194_v41 = vpack.i.bf16 %v7845_v15, %v7836_v19 }
 0x30c   : > { %v7946_v25 = vpop.permute.xlu1 %4875 }
 0x30d   : > { %v7952_v51 = vpop.permute.xlu0 %4880  ;;  %v4877_v30 = vunpack.i.l.bf16 %v7946_v25 }
 0x30e   : > { %9051 = vst [vmem:[#allocation28_spill] sm:$0xff] %v7952_v51  ;;  %5185 = vrot.lane.b32.xlu1 %v7950_v3, %s5753_s27  ;;  %v2198_v51 = vrot.slane %v7845_v15, 1  ;;  %v5209_v15 = vpack.i.bf16 %v7830_v0, %v7838_v33  ;;  %v2194_v0 = vsel %vm438_vm0, %v2192_v42, %v2193_v35 }
 0x30f   : > { %5145 = vrot.lane.b32.xlu0 %v5149_v34, %s5742_s26  ;;  %v8000_v42 = vpack.i.bf16 %v2196_v18, %v2194_v0 }
 0x310   : > { %v7957_v61 = vpop.permute.xlu1 %4885  ;;  %v2199_v9 = vsel %vm438_vm0, %v2197_v26, %v2198_v51 }
 0x311   : > { %v7961_v8 = vpop.permute.xlu0 %4890  ;;  %v4888_v18 = vunpack.i.h.bf16 %v7957_v61 }
 0x312   : > { %5195 = vrot.lane.b32.xlu1 %v5194_v41, %s5750_s19 }
 0x313   : > { %5155 = vrot.lane.b32.xlu0 %v5149_v34, %s5752_s15  ;;  %v3049_v34 = vsel %vm1625_vm10, %v3017_v7, %v4862_v62  ;;  %v2201_v7 = vsel %vm438_vm0, %v2198_v51, %v2200_v43  ;;  %v4878_v43 = vunpack.i.h.bf16 %v7946_v25 }
 0x314   : > { %v4906_v60 = vpop.permute.xlu1 %4905  ;;  %v5219_v51 = vpack.i.bf16 %v2201_v7, %v2199_v9  ;;  %v4872_v9 = vunpack.i.l.bf16 %v7937_v57 }
 0x315   : > { %v7967_v14 = vpop.permute.xlu0 %4895  ;;  %v4908_v62 = vunpack.i.h.bf16 %v4906_v60  ;;  %v4907_v19 = vunpack.i.l.bf16 %v4906_v60 }
 0x316   : > { %5200 = vrot.lane.b32.xlu1 %v5194_v41, %s5749_s8  ;;  %v2223_v41 = vrot.slane %v7586_v11, 2 }
 0x317   : > { %5160 = vrot.lane.b32.xlu0 %v5164_v10, %s5753_s27 }
 0x318   : > { %v4911_v45 = vpop.permute.xlu1 %4910  ;;  %v7996_v60 = vsel %vm519_vm1, %v2222_v20, %v2223_v41  ;;  %v8003_v35 = vsel %vm519_vm1, %v2223_v41, %v2225_v63  ;;  %v4873_v20 = vunpack.i.h.bf16 %v7937_v57  ;;  %v4868_v41 = vunpack.i.h.bf16 %v7939_v16 }
 0x319   : > { %v7983_v44 = vpop.permute.xlu0 %4900  ;;  %v4913_v33 = vunpack.i.h.bf16 %v4911_v45  ;;  %v4912_v11 = vunpack.i.l.bf16 %v4911_v45  ;;  %v3019_v45 = vsel %vm1493_vm6, %v7560_v13, %v4907_v19  ;;  %v4867_v63 = vunpack.i.l.bf16 %v7939_v16 }
 0x31a   : > { %9052 = vst [vmem:[#allocation27_spill] sm:$0xff] %v7983_v44  ;;  %5210 = vrot.lane.b32.xlu1 %v5209_v15, %s5749_s8  ;;  %v3083_v13 = vsel %vm3081_vm14, %v3050_v6, %v4878_v43  ;;  %v4887_v57 = vunpack.i.l.bf16 %v7957_v61  ;;  %v4892_v6 = vunpack.i.l.bf16 %v7961_v8 }
 0x31b   : > { %5180 = vrot.lane.b32.xlu0 %v7915_v4, %s5752_s15  ;;  %v3020_v4 = vsel %vm1493_vm6, %v5448_v37, %v4908_v62  ;;  %v3051_v7 = vsel %vm1625_vm10, %v3019_v45, %v4912_v11  ;;  %v3082_v62 = vsel %vm3081_vm14, %v3049_v34, %v4877_v30  ;;  %v4893_v34 = vunpack.i.h.bf16 %v7961_v8 }
 0x31c   : > { %v4916_v10 = vpop.permute.xlu1 %4915  ;;  %v3052_v0 = vsel %vm1625_vm10, %v3020_v4, %v4913_v33  ;;  %v3084_v37 = vsel %vm3081_vm14, %v3051_v7, %v4872_v9 }
 0x31d   : > { %v7998_v26 = vpop.permute.xlu0 %4925  ;;  %v4918_v44 = vunpack.i.h.bf16 %v4916_v10  ;;  %v4917_v25 = vunpack.i.l.bf16 %v4916_v10 }
 0x31e   : > { %5220 = vrot.lane.b32.xlu1 %v5219_v51, %s5751_s20 }
 0x31f   : > { %5190 = vrot.lane.b32.xlu0 %v7950_v3, %s5746_s12  ;;  %v3085_v3 = vsel %vm3081_vm14, %v3052_v0, %v4873_v20  ;;  %v3116_v4 = vsel %vm3114_vm15, %v3083_v13, %v4918_v44  ;;  %v3115_v16 = vsel %vm3114_vm15, %v3082_v62, %v4917_v25  ;;  %v3117_v25 = vsel %vm3114_vm15, %v3084_v37, %v4892_v6 }
 0x320   : > { %v4921_v19 = vpop.permute.xlu1 %4920  ;;  %v3118_v20 = vsel %vm3114_vm15, %v3085_v3, %v4893_v34  ;;  %v4898_v0 = vunpack.i.h.bf16 %v7967_v14  ;;  %v4927_v13 = vunpack.i.l.bf16 %v7998_v26  ;;  %v3249_v62 = vpack.c.bf16 %v8003_v35, %v7996_v60 }
 0x321   : > { %v8021_v10 = vpop.permute.xlu0 %4930  ;;  %v4923_v11 = vunpack.i.h.bf16 %v4921_v19  ;;  %v4922_v33 = vunpack.i.l.bf16 %v4921_v19  ;;  %v2228_v19 = vrot.slane %v7583_v40, 2 }
 0x322   : > { %5225 = vrot.lane.b32.xlu1 %v8000_v42, %s5742_s26 }
 0x323   : > { %v3148_v61 = vsel %vm3147_vm2, %v3115_v16, %v4922_v33  ;;  %v3149_v43 = vsel %vm3147_vm2, %v3116_v4, %v4923_v11  ;;  %5205 = vrot.lane.b32.xlu0 %v5209_v15, %s5750_s19  ;;  %v4897_v15 = vunpack.i.l.bf16 %v7967_v14  ;;  %v5449_v14 = vld [vmem:[#allocation2 + $0x70] sm:$0x3] }
 0x324   : > { %v3181_v30 = vsel %vm3180_vm3, %v3148_v61, %v4867_v63  ;;  %v3182_v45 = vsel %vm3180_vm3, %v3149_v43, %v4868_v41  ;;  %v8036_v44 = vpop.permute.xlu1 %4940  ;;  %v4928_v41 = vunpack.i.h.bf16 %v7998_v26  ;;  %v2230_v33 = vrot.slane %v5449_v14, 2  ;;  %v5450_v26 = vld [vmem:[#allocation2 + $0x60] sm:$0xff] }
 0x325   : > { %v3214_v9 = vsel %vm3213_vm4, %v3181_v30, %v4887_v57  ;;  %v3215_v8 = vsel %vm3213_vm4, %v3182_v45, %v4888_v18  ;;  %v8042_v7 = vpop.permute.xlu0 %4935  ;;  %v3150_v18 = vsel %vm3147_vm2, %v3117_v25, %v4897_v15  ;;  %v3151_v57 = vsel %vm3147_vm2, %v3118_v20, %v4898_v0 }
 0x326   : > { %5240 = vrot.lane.b32.xlu1 %v5219_v51, %s5752_s15  ;;  %v3246_v63 = vpack.c.bf16 %v3215_v8, %v3214_v9  ;;  %v2227_v3 = vrot.slane %v5450_v26, 2  ;;  %v3183_v40 = vsel %vm3180_vm3, %v3150_v18, %v4927_v13  ;;  %v3184_v16 = vsel %vm3180_vm3, %v3151_v57, %v4928_v41 }
 0x327   : > { %5215 = vrot.lane.b32.xlu0 %v5219_v51, %s5742_s26  ;;  %v5254_v61 = vpack.i.bf16 %v7870_v39, %v7867_v27  ;;  %v8074_v45 = vsel %vm519_vm1, %v2228_v19, %v2230_v33  ;;  %v5244_v0 = vpack.i.bf16 %v8003_v35, %v7996_v60  ;;  %v2203_v15 = vrot.slane %v7896_v38, 1 }
 0x328   : > { %v8055_v11 = vpop.permute.xlu1 %4950  ;;  %3438 = vmatmul.mubr.bf16.vlgmr.msra.gmra.mrb[32].mxu0 %v3246_v63  ;;  %v8065_v34 = vsel %vm519_vm1, %v2227_v3, %v2228_v19  ;;  %v2205_v63 = vrot.slane %v7898_v53, 1  ;;  %v5264_v13 = vpack.i.bf16 %v7879_v58, %v7876_v32  ;;  %v5451_v19 = vld [vmem:[#allocation2 + $0x68] sm:$0xff] }
 0x329   : > { %v4946_v37 = vpop.permute.xlu0 %4945  ;;  %3958 = vmatprep.mubr.msk.bf16.mxu0 %vm1493_vm6, %v3249_v62  ;;  %v3251_v20 = vpack.c.bf16 %v8074_v45, %v8065_v34  ;;  %v5269_v18 = vpack.i.bf16 %v5451_v19, %v5450_v26 }
 0x32a   : > { %v4948_v51 = vunpack.i.h.bf16 %v4946_v37  ;;  %v4947_v4 = vunpack.i.l.bf16 %v4946_v37  ;;  %5250 = vrot.lane.b32.xlu1 %v8000_v42, %s5752_s15  ;;  %v2206_v35 = vsel %vm438_vm0, %v2203_v15, %v2205_v63 }
 0x32b   : > { %5230 = vrot.lane.b32.xlu0 %v8000_v42, %s5751_s20 }
 0x32c   : > { %v8067_v6 = vpop.permute.xlu1 %4965  ;;  %v3216_v43 = vsel %vm3213_vm4, %v3183_v40, %v4947_v4  ;;  %v3217_v30 = vsel %vm3213_vm4, %v3184_v16, %v4948_v51  ;;  %v5279_v4 = vpack.i.bf16 %v7896_v38, %v7892_v22  ;;  %v4952_v38 = vunpack.i.l.bf16 %v8055_v11 }
 0x32d   : > { %v8076_v25 = vpop.permute.xlu0 %4955  ;;  %v3248_v42 = vpack.c.bf16 %v3217_v30, %v3216_v43 }
 0x32e   : > { %5255 = vrot.lane.b32.xlu1 %v5254_v61, %s5753_s27 }
 0x32f   : > { %5235 = vrot.lane.b32.xlu0 %v7610_v52, %s5752_s15  ;;  %v2202_v52 = vrot.slane %v7892_v22, 1  ;;  %v4953_v22 = vunpack.i.h.bf16 %v8055_v11 }
 0x330   : > { %v4976_v9 = vpop.permute.xlu1 %4975  ;;  %3446 = vmatmul.mubr.bf16.gmra.mrb[36].mxu0 %v3248_v42 }
 0x331   : > { %v4961_v8 = vpop.permute.xlu0 %4960  ;;  %3959 = vmatprep.mubr.msk.bf16.mxu0 %vm1493_vm6, %v3251_v20  ;;  %v2204_v60 = vsel %vm438_vm0, %v2202_v52, %v2203_v15  ;;  %v4978_v33 = vunpack.i.h.bf16 %v4976_v9  ;;  %v4977_v37 = vunpack.i.l.bf16 %v4976_v9 }
 0x332   : > { %5260 = vrot.lane.b32.xlu1 %v5254_v61, %s5746_s12  ;;  %v5274_v57 = vpack.i.bf16 %v2206_v35, %v2204_v60  ;;  %v4968_v35 = vunpack.i.h.bf16 %v8067_v6 }
 0x333   : > { %5245 = vrot.lane.b32.xlu0 %v5244_v0, %s5753_s27  ;;  %v3028_v16 = vsel %vm1493_vm6, %v7628_v5, %v4978_v33  ;;  %v3027_v61 = vsel %vm1493_vm6, %v7626_v54, %v4977_v37  ;;  %v4963_v54 = vunpack.i.h.bf16 %v4961_v8 }
 0x334   : > { %v8091_v41 = vpop.permute.xlu1 %4990 }
 0x335   : > { %v8095_v62 = vpop.permute.xlu0 %4970 }
 0x336   : > { %5265 = vrot.lane.b32.xlu1 %v5264_v13, %s5753_s27 }
 0x337   : > { %5270 = vrot.lane.b32.xlu0 %v5269_v18, %s5750_s19 }
 0x338   : > { %v8101_v53 = vpop.permute.xlu1 %5000 }
 0x339   : > { %v4981_v14 = vpop.permute.xlu0 %4980 }
 0x33a   : > { %5275 = vrot.lane.b32.xlu1 %v5274_v57, %s5742_s26  ;;  %v4983_v26 = vunpack.i.h.bf16 %v4981_v14  ;;  %v4982_v3 = vunpack.i.l.bf16 %v4981_v14  ;;  %v4967_v14 = vunpack.i.l.bf16 %v8067_v6  ;;  %s8596_s26 = scalar_lea.vmem [#allocation12], %s3926_s17 }
 0x33b   : > { %5285 = vrot.lane.b32.xlu0 %v7614_v28, %s5751_s20  ;;  %s3754_s10 = sshll.u32 %s8596_s26, 4  ;;  %s8748_s10 = int_to_ptr.vmem [resolvable:$true] %s3754_s10 }
 0x33c   : > { %v8106_v51 = vpop.permute.xlu1 %5010  ;;  %v3059_v43 = vsel %vm1625_vm10, %v3027_v61, %v4982_v3  ;;  %v3060_v30 = vsel %vm1625_vm10, %v3028_v16, %v4983_v26  ;;  %v5452_v61 = vld [vmem:[#allocation2 + $0x78] sm:$0xff] }
 0x33d   : > { %v8110_v40 = vpop.permute.xlu0 %4985  ;;  %v3092_v5 = vsel %vm3081_vm14, %v3059_v43, %v4952_v38  ;;  %v3093_v9 = vsel %vm3081_vm14, %v3060_v30, %v4953_v22  ;;  %v5453_v43 = vld [vmem:[#allocation2 + $0x80] sm:$0xff]  ;;  %v4958_v38 = vunpack.i.h.bf16 %v8076_v25 }
 0x33e   : > { %5280 = vrot.lane.b32.xlu1 %v5279_v4, %s5750_s19  ;;  %v3126_v11 = vsel %vm3114_vm15, %v3093_v9, %v4963_v54  ;;  %v8154_v30 = vpack.i.bf16 %v5453_v43, %v5452_v61  ;;  %v2293_v9 = vrot.slane %v7912_v49, 1  ;;  %v4973_v54 = vunpack.i.h.bf16 %v8095_v62 }
 0x33f   : > { %5295 = vrot.lane.b32.xlu0 %v5244_v0, %s5746_s12  ;;  %v4962_v0 = vunpack.i.l.bf16 %v4961_v8  ;;  %v3159_v37 = vsel %vm3147_vm2, %v3126_v11, %v4968_v35  ;;  %v2290_v49 = vrot.slane %v7904_v55, 1  ;;  %v8186_v35 = vld [vmem:[#allocation2 + $0x90] sm:$0xff] }
 0x340   : > { %v8120_v42 = vpop.permute.xlu1 %5020 }
 0x341   : > { %v4996_v20 = vpop.permute.xlu0 %4995  ;;  %v3125_v60 = vsel %vm3114_vm15, %v3092_v5, %v4962_v0  ;;  %v4972_v0 = vunpack.i.l.bf16 %v8095_v62  ;;  %v5329_v62 = vpack.i.bf16 %v7921_v31, %v7918_v59 }
 0x342   : > { %5290 = vrot.lane.b32.xlu1 %v5274_v57, %s5751_s20  ;;  %v4998_v52 = vunpack.i.h.bf16 %v4996_v20  ;;  %v4997_v19 = vunpack.i.l.bf16 %v4996_v20  ;;  %v3158_v33 = vsel %vm3147_vm2, %v3125_v60, %v4967_v14  ;;  %v4957_v20 = vunpack.i.l.bf16 %v8076_v25 }
 0x343   : > { %5305 = vrot.lane.b32.xlu0 %v5269_v18, %s5749_s8  ;;  %v8141_v18 = vpack.i.bf16 %v8074_v45, %v8065_v34  ;;  %v9053_v25 = vpack.c.bf16 %v7713_v24, %v7709_v29 }
 0x344   : > { %v8128_v15 = vpop.permute.xlu1 %5030  ;;  %v3191_v16 = vsel %vm3180_vm3, %v3158_v33, %v4997_v19  ;;  %v3192_v6 = vsel %vm3180_vm3, %v3159_v37, %v4998_v52  ;;  %v5003_v52 = vunpack.i.h.bf16 %v8101_v53  ;;  %v5002_v19 = vunpack.i.l.bf16 %v8101_v53  ;;  %v8182_v53 = vld [vmem:[#allocation2 + $0x98] sm:$0xff] }
 0x345   : > { %v8130_v63 = vpop.permute.xlu0 %5005  ;;  %v3030_v11 = vsel %vm1493_vm6, %v8182_v53, %v4958_v38  ;;  %v3029_v29 = vsel %vm1493_vm6, %v8186_v35, %v4957_v20  ;;  %v5013_v38 = vunpack.i.h.bf16 %v8106_v51  ;;  %v5012_v20 = vunpack.i.l.bf16 %v8106_v51 }
 0x346   : > { %5300 = vrot.lane.b32.xlu1 %v5264_v13, %s5746_s12  ;;  %v3061_v33 = vsel %vm1625_vm10, %v3029_v29, %v4972_v0  ;;  %v5032_v0 = vunpack.i.l.bf16 %v8128_v15 }
 0x347   : > { %5315 = vrot.lane.b32.xlu0 %v7614_v28, %s5752_s15 }
 0x348   : > { %v5036_v8 = vpop.permute.xlu1 %5035 }
 0x349   : > { %v8145_v26 = vpop.permute.xlu0 %5015  ;;  %v5038_v3 = vunpack.i.h.bf16 %v5036_v8  ;;  %v5037_v13 = vunpack.i.l.bf16 %v5036_v8 }
 0x34a   : > { %5310 = vrot.lane.b32.xlu1 %v5279_v4, %s5749_s8  ;;  %v2291_v4 = vrot.slane %v7910_v36, 1 }
 0x34b   : > { %5325 = vrot.lane.b32.xlu0 %v8141_v18, %s5753_s27  ;;  %v3224_v28 = vsel %vm3213_vm4, %v3191_v16, %v5037_v13  ;;  %v3225_v34 = vsel %vm3213_vm4, %v3192_v6, %v5038_v3  ;;  %v3094_v13 = vsel %vm3081_vm14, %v3061_v33, %v5002_v19  ;;  %v5456_v33 = vld [vmem:[#allocation2 + $0xb0] sm:$0xff] }
 0x34c   : > { %v5046_v45 = vpop.permute.xlu1 %5045  ;;  %v3256_v22 = vpack.c.bf16 %v3225_v34, %v3224_v28  ;;  %v2292_v14 = vsel %vm438_vm0, %v2290_v49, %v2291_v4  ;;  %v2294_v8 = vsel %vm438_vm0, %v2291_v4, %v2293_v9  ;;  %v4988_v28 = vunpack.i.h.bf16 %v8110_v40 }
 0x34d   : > { %v8158_v5 = vpop.permute.xlu0 %5025  ;;  %v5048_v16 = vunpack.i.h.bf16 %v5046_v45  ;;  %v5047_v6 = vunpack.i.l.bf16 %v5046_v45  ;;  %v4987_v34 = vunpack.i.l.bf16 %v8110_v40 }
 0x34e   : > { %5320 = vrot.lane.b32.xlu1 %v5274_v57, %s5752_s15  ;;  %3478 = vmatmul.mubr.bf16.vlgmr.msra.gmra.mrb[0].mxu1 %v3256_v22  ;;  %v8180_v57 = vpack.i.bf16 %v7910_v36, %v7904_v55  ;;  %v3062_v36 = vsel %vm1625_vm10, %v3030_v11, %v4973_v54  ;;  %v5033_v54 = vunpack.i.h.bf16 %v8128_v15  ;;  %v5349_v15 = vpack.i.bf16 %v2294_v8, %v2292_v14 }
 0x34f   : > { %5335 = vrot.lane.b32.xlu0 %v8154_v30, %s5750_s19  ;;  %3963 = vmatprep.mubr.msk.bf16.mxu1 %vm1493_vm6, %v9053_v25  ;;  %v3095_v3 = vsel %vm3081_vm14, %v3062_v36, %v5003_v52  ;;  %v9054_v14 = vpack.c.bf16 %v7761_v23, %v7757_v50  ;;  %v4993_v8 = vunpack.i.h.bf16 %v8091_v41  ;;  %v8247_v23 = vld [vmem:[#allocation2 + $0x198] sm:$0xff] }
 0x350   : > { %v8174_v60 = vpop.permute.xlu1 %5060  ;;  %v3032_v36 = vsel %vm1493_vm6, %v5456_v33, %v5033_v54  ;;  %v5394_v54 = vpack.i.bf16 %v8182_v53, %v8186_v35  ;;  %v2303_v35 = vrot.slane %v8247_v23, 1 }
 0x351   : > { %v5041_v24 = vpop.permute.xlu0 %5040 }
 0x352   : > { %v5043_v55 = vunpack.i.h.bf16 %v5041_v24  ;;  %v5042_v37 = vunpack.i.l.bf16 %v5041_v24  ;;  %5330 = vrot.lane.b32.xlu1 %v5329_v62, %s5753_s27 }
 0x353   : > { %5345 = vrot.lane.b32.xlu0 %v7660_v1, %s5751_s20 }
 0x354   : > { %v3127_v61 = vsel %vm3114_vm15, %v3094_v13, %v5042_v37  ;;  %v3128_v43 = vsel %vm3114_vm15, %v3095_v3, %v5043_v55  ;;  %v8203_v22 = vpop.permute.xlu1 %5070  ;;  %v5457_v55 = vld [vmem:[#allocation2 + $0xa8] sm:$0xff]  ;;  %v4992_v13 = vunpack.i.l.bf16 %v8091_v41  ;;  %v8249_v41 = vld [vmem:[#allocation2 + $0x1a0] sm:$0xff] }
 0x355   : > { %v3160_v4 = vsel %vm3147_vm2, %v3127_v61, %v5047_v6  ;;  %v3161_v45 = vsel %vm3147_vm2, %v3128_v43, %v5048_v16  ;;  %v5051_v9 = vpop.permute.xlu0 %5050  ;;  %v3031_v37 = vsel %vm1493_vm6, %v5457_v55, %v5032_v0  ;;  %v5017_v61 = vunpack.i.l.bf16 %v8145_v26  ;;  %v2078_v0 = vld [vmem:[#allocation2 + $0x1a8] sm:$0x3] }
 0x356   : > { %5340 = vrot.lane.b32.xlu1 %v8180_v57, %s5750_s19  ;;  %v3193_v40 = vsel %vm3180_vm3, %v3160_v4, %v4987_v34  ;;  %v3194_v52 = vsel %vm3180_vm3, %v3161_v45, %v4988_v28  ;;  %v5053_v19 = vunpack.i.h.bf16 %v5051_v9  ;;  %v5052_v25 = vunpack.i.l.bf16 %v5051_v9 }
 0x357   : > { %5355 = vrot.lane.b32.xlu0 %v8141_v18, %s5746_s12  ;;  %v3226_v51 = vsel %vm3213_vm4, %v3193_v40, %v5012_v20  ;;  %v3227_v49 = vsel %vm3213_vm4, %v3194_v52, %v5013_v38  ;;  %v2308_v4 = vrot.slane %v8247_v23, 2  ;;  %v2306_v33 = vrot.slane %v2078_v0, 1 }
 0x358   : > { %v8219_v11 = vpop.permute.xlu1 %5080  ;;  %v3258_v29 = vpack.c.bf16 %v3227_v49, %v3226_v51  ;;  %v3063_v18 = vsel %vm1625_vm10, %v3031_v37, %v5052_v25  ;;  %v3064_v3 = vsel %vm1625_vm10, %v3032_v36, %v5053_v19  ;;  %v2304_v25 = vrot.slane %v8249_v41, 1 }
 0x359   : > { %v8221_v24 = vpop.permute.xlu0 %5055  ;;  %v3096_v28 = vsel %vm3081_vm14, %v3063_v18, %v4992_v13  ;;  %v3097_v34 = vsel %vm3081_vm14, %v3064_v3, %v4993_v8  ;;  %v5389_v36 = vpack.i.bf16 %v7935_v21, %v7932_v2  ;;  %v5008_v3 = vunpack.i.h.bf16 %v8130_v63 }
 0x35a   : > { %3486 = vmatmul.mubr.bf16.gmra.mrb[4].mxu1 %v3258_v29  ;;  %5350 = vrot.lane.b32.xlu1 %v5349_v15, %s5751_s20  ;;  %v3129_v43 = vsel %vm3114_vm15, %v3096_v28, %v5017_v61  ;;  %v2311_v29 = vrot.slane %v2078_v0, 2  ;;  %v5027_v28 = vunpack.i.l.bf16 %v8158_v5  ;;  %v5073_v61 = vunpack.i.h.bf16 %v8203_v22 }
 0x35b   : > { %5365 = vrot.lane.b32.xlu0 %v8154_v30, %s5749_s8  ;;  %3964 = vmatprep.mubr.msk.bf16.mxu1 %vm1493_vm6, %v9054_v14  ;;  %v5018_v30 = vunpack.i.h.bf16 %v8145_v26  ;;  %v5023_v26 = vunpack.i.h.bf16 %v8120_v42  ;;  %v5007_v14 = vunpack.i.l.bf16 %v8130_v63  ;;  %v2305_v63 = vsel %vm438_vm0, %v2303_v35, %v2304_v25 }
 0x35c   : > { %v8236_v16 = vpop.permute.xlu1 %5090  ;;  %v5083_v0 = vunpack.i.h.bf16 %v8219_v11 }
 0x35d   : > { %v5066_v6 = vpop.permute.xlu0 %5065  ;;  %v3130_v38 = vsel %vm3114_vm15, %v3097_v34, %v5018_v30  ;;  %v5399_v30 = vpack.i.bf16 %v8249_v41, %v8247_v23  ;;  %v5458_v23 = vld [vmem:[#allocation2 + $0xc8] sm:$0xff] }
 0x35e   : > { %5360 = vrot.lane.b32.xlu1 %v5329_v62, %s5746_s12  ;;  %v2309_v62 = vrot.slane %v8249_v41, 2  ;;  %v5068_v45 = vunpack.i.h.bf16 %v5066_v6  ;;  %v5067_v9 = vunpack.i.l.bf16 %v5066_v6  ;;  %v3163_v52 = vsel %vm3147_vm2, %v3130_v38, %v5023_v26 }
 0x35f   : > { %5375 = vrot.lane.b32.xlu0 %v7660_v1, %s5752_s15  ;;  %v5022_v1 = vunpack.i.l.bf16 %v8120_v42  ;;  %v5028_v6 = vunpack.i.h.bf16 %v8158_v5  ;;  %v2307_v38 = vsel %vm438_vm0, %v2304_v25, %v2306_v33  ;;  %v9055_v5 = vpack.c.bf16 %v7739_v46, %v7736_v12 }
 0x360   : > { %v8245_v50 = vpop.permute.xlu1 %5100  ;;  %v3196_v53 = vsel %vm3180_vm3, %v3163_v52, %v5068_v45  ;;  %v8283_v18 = vsel %vm519_vm1, %v2309_v62, %v2311_v29  ;;  %v3034_v41 = vsel %vm1493_vm6, %v5458_v23, %v5008_v3  ;;  %v5058_v25 = vunpack.i.h.bf16 %v8221_v24 }
 0x361   : > { %v8253_v20 = vpop.permute.xlu0 %5075  ;;  %v3162_v40 = vsel %vm3147_vm2, %v3129_v43, %v5022_v1  ;;  %v5072_v43 = vunpack.i.l.bf16 %v8203_v22  ;;  %v3066_v1 = vsel %vm1625_vm10, %v3034_v41, %v5028_v6  ;;  %v5102_v35 = vunpack.i.l.bf16 %v8245_v50  ;;  %v5460_v6 = vld [vmem:[#allocation2 + $0xe0] sm:$0xff] }
 0x362   : > { %5370 = vrot.lane.b32.xlu1 %v8180_v57, %s5749_s8  ;;  %v8271_v57 = vsel %vm519_vm1, %v2308_v4, %v2309_v62  ;;  %v5459_v62 = vld [vmem:[#allocation2 + $0xc0] sm:$0xff]  ;;  %v5062_v23 = vunpack.i.l.bf16 %v8174_v60  ;;  %v9056_v41 = vpack.c.bf16 %v7817_v56, %v7814_v48  ;;  %v5093_v48 = vunpack.i.h.bf16 %v8236_v16  ;;  %s3736_s8 = scalar_lea.sflag [#allocation5], %s6003_s13 }
 0x363   : > { %5385 = vrot.lane.b32.xlu0 %v7673_v17, %s5753_s27  ;;  %v3195_v17 = vsel %vm3180_vm3, %v3162_v40, %v5067_v9  ;;  %v3277_v13 = vpack.c.bf16 %v8283_v18, %v8271_v57  ;;  %v3033_v22 = vsel %vm1493_vm6, %v5459_v62, %v5007_v14  ;;  %v5409_v9 = vpack.i.bf16 %v2307_v38, %v2305_v63  ;;  %v5477_v18 = vld [vmem:[#allocation2 + $0x60] sm:$0xff] }
 0x364   : > { %v5106_v19 = vpop.permute.xlu1 %5105  ;;  %v3065_v26 = vsel %vm1625_vm10, %v3033_v22, %v5027_v28  ;;  %v5082_v40 = vunpack.i.l.bf16 %v8219_v11  ;;  %v5092_v56 = vunpack.i.l.bf16 %v8236_v16 }
 0x365   : > { %v8268_v42 = vpop.permute.xlu0 %5085  ;;  %v5108_v51 = vunpack.i.h.bf16 %v5106_v19  ;;  %v5107_v49 = vunpack.i.l.bf16 %v5106_v19  ;;  %v3098_v12 = vsel %vm3081_vm14, %v3065_v26, %v5072_v43 }
 0x366   : > { %5380 = vrot.lane.b32.xlu1 %v5349_v15, %s5752_s15 }
 0x367   : > { %5395 = vrot.lane.b32.xlu0 %v5394_v54, %s5750_s19  ;;  %v3228_v55 = vsel %vm3213_vm4, %v3195_v17, %v5107_v49  ;;  %v3229_v37 = vsel %vm3213_vm4, %v3196_v53, %v5108_v51  ;;  %v5057_v51 = vunpack.i.l.bf16 %v8221_v24  ;;  %v5103_v53 = vunpack.i.h.bf16 %v8245_v50 }
 0x368   : > { %v5116_v15 = vpop.permute.xlu1 %5115  ;;  %v3260_v8 = vpack.c.bf16 %v3229_v37, %v3228_v55 }
 0x369   : > { %v8291_v34 = vpop.permute.xlu0 %5095  ;;  %v5118_v52 = vunpack.i.h.bf16 %v5116_v15  ;;  %v5117_v19 = vunpack.i.l.bf16 %v5116_v15  ;;  %v3036_v28 = vsel %vm1493_vm6, %v5460_v6, %v5103_v53 }
 0x36a   : > { %5390 = vrot.lane.b32.xlu1 %v5389_v36, %s5753_s27  ;;  %3494 = vmatmul.mubr.bf16.gmra.mrb[8].mxu1 %v3260_v8 }
 0x36b   : > { %5405 = vrot.lane.b32.xlu0 %v7668_v47, %s5751_s20  ;;  %3965 = vmatprep.mubr.msk.bf16.mxu1 %vm1493_vm6, %v9055_v5  ;;  %v3099_v47 = vsel %vm3081_vm14, %v3066_v1, %v5073_v61  ;;  %v5063_v5 = vunpack.i.h.bf16 %v8174_v60 }
 0x36c   : > { %v8308_v4 = vpop.permute.xlu1 %5140 }
 0x36d   : > { %v5111_v45 = vpop.permute.xlu0 %5110  ;;  %v5143_v6 = vunpack.i.h.bf16 %v8308_v4 }
 0x36e   : > { %v5113_v46 = vunpack.i.h.bf16 %v5111_v45  ;;  %v5112_v54 = vunpack.i.l.bf16 %v5111_v45  ;;  %5400 = vrot.lane.b32.xlu1 %v5399_v30, %s5750_s19  ;;  %v5461_v30 = vld [vmem:[#allocation2 + $0xd8] sm:$0xff]  ;;  %v5088_v45 = vunpack.i.h.bf16 %v8268_v42  ;;  %s5622_s19 = scalar_lea.vmem %s8748_s10, 4096 }
 0x36f   : > { %v3035_v61 = vsel %vm1493_vm6, %v5461_v30, %v5102_v35  ;;  %v5142_v30 = vunpack.i.l.bf16 %v8308_v4  ;;  %p5623_p3 = scmp.ne.s32.totalorder %s8748_s10, %s5622_s19 }
 0x370   : > { %v3131_v49 = vsel %vm3114_vm15, %v3098_v12, %v5112_v54  ;;  %v3132_v29 = vsel %vm3114_vm15, %v3099_v47, %v5113_v46  ;;  %v8321_v17 = vpop.permute.xlu1 %5150 }
 0x371   : > { %v3164_v33 = vsel %vm3147_vm2, %v3131_v49, %v5117_v19  ;;  %v3165_v11 = vsel %vm3147_vm2, %v3132_v29, %v5118_v52  ;;  %v5121_v36 = vpop.permute.xlu0 %5120  ;;  %p5624_p5 = pnand %p5623_p3, %p5951_p10 }
 0x372   : > { %v5123_v55 = vunpack.i.h.bf16 %v5121_v36  ;;  %v5122_v37 = vunpack.i.l.bf16 %v5121_v36  ;;  %5410 = vrot.lane.b32.xlu1 %v5409_v9, %s5751_s20  ;;  %v3197_v24 = vsel %vm3180_vm3, %v3164_v33, %v5057_v51  ;;  %v3198_v3 = vsel %vm3180_vm3, %v3165_v11, %v5058_v25  ;;  %v9057_v36 = vld [vmem:[#allocation30_spill] sm:$0xff]  ;;  %s5754_s20 = smov [#allocation12]  }
 0x373   : > { %v3230_v14 = vsel %vm3213_vm4, %v3197_v24, %v5082_v40  ;;  %v3231_v15 = vsel %vm3213_vm4, %v3198_v3, %v5083_v0  ;;  %v5087_v9 = vunpack.i.l.bf16 %v8268_v42  ;;  %v5078_v24 = vunpack.i.h.bf16 %v8253_v20  ;;  %p5625_p7 = pneg %p5624_p5  ;;  %s5626_s15 = sshll.u32 %s5754_s20, 4  ;;  %s5627_s15 = int_to_ptr.vmem [resolvable:$false] %s5626_s15 }
 0x374   : > { %v8332_v8 = vpop.permute.xlu1 %5165  ;;  %v3262_v50 = vpack.c.bf16 %v3231_v15, %v3230_v14  ;;  %v3067_v63 = vsel %vm1625_vm10, %v3035_v61, %v5122_v37  ;;  %v3068_v38 = vsel %vm1625_vm10, %v3036_v28, %v5123_v55  ;;  %v9058_v55 = vld [vmem:[#allocation29_spill] sm:$0xff]  ;;  %v5077_v3 = vunpack.i.l.bf16 %v8253_v20  ;;  %s5628_s27 = scalar_lea.vmem %s5627_s15, 8192  ;;  %p5629_p12 = scmp.lt.s32.totalorder %s8748_s10, %s5627_s15 }
 0x375   : > { %v8336_v43 = vpop.permute.xlu0 %5125  ;;  %v3100_v22 = vsel %vm3081_vm14, %v3067_v63, %v5062_v23  ;;  %v3101_v26 = vsel %vm3081_vm14, %v3068_v38, %v5063_v5  ;;  %v9059_v37 = vpack.c.bf16 %v9057_v36, %v9058_v55  ;;  %v5098_v14 = vunpack.i.h.bf16 %v8291_v34  ;;  %v5462_v61 = vld [vmem:[#allocation2 + $0xf8] sm:$0xff]  ;;  %v5463_v38 = vld [vmem:[#allocation2 + $0xf0] sm:$0xff]  ;;  %v5465_v36 = vld [vmem:[#allocation2 + $0x108] sm:$0xff]  ;;  %p5630_p2 = scmp.lt.s32.totalorder %s5628_s27, %s5622_s19 }
 0x376   : > { %3502 = vmatmul.mubr.bf16.gmra.mrb[12].mxu1 %v3262_v50  ;;  %v3133_v47 = vsel %vm3114_vm15, %v3100_v22, %v5087_v9  ;;  %v3134_v60 = vsel %vm3114_vm15, %v3101_v26, %v5088_v45  ;;  %v5097_v50 = vunpack.i.l.bf16 %v8291_v34  ;;  %v3038_v63 = vsel %vm1493_vm6, %v5462_v61, %v5078_v24 }
 0x377   : > { %3966 = vmatprep.mubr.msk.bf16.mxu1 %vm1493_vm6, %v9056_v41  ;;  %v3166_v19 = vsel %vm3147_vm2, %v3133_v47, %v5092_v56  ;;  %v3167_v25 = vsel %vm3147_vm2, %v3134_v60, %v5093_v48  ;;  %v3037_v5 = vsel %vm1493_vm6, %v5463_v38, %v5077_v3  ;;  %v3070_v20 = vsel %vm1625_vm10, %v3038_v63, %v5098_v14  ;;  %p5631_p1 = por %p5630_p2, %p5629_p12 }
 0x378   : > { %v8346_v62 = vpop.permute.xlu1 %5170  ;;  %v3069_v41 = vsel %vm1625_vm10, %v3037_v5, %v5097_v50  ;;  %v3103_v34 = vsel %vm3081_vm14, %v3070_v20, %v5143_v6  ;;  %v5153_v45 = vunpack.i.h.bf16 %v8321_v17  ;;  %v5128_v56 = vunpack.i.h.bf16 %v8336_v43 }
 0x379   : > { %v8350_v1 = vpop.permute.xlu0 %5130  ;;  %v3102_v26 = vsel %vm3081_vm14, %v3069_v41, %v5142_v30  ;;  %v5173_v47 = vunpack.i.h.bf16 %v8346_v62  ;;  %v5172_v60 = vunpack.i.l.bf16 %v8346_v62  ;;  %p5632_p13 = pnand %p5631_p1, %p5625_p7 }
 0x37a   : > { %v5132_v24 = vunpack.i.l.bf16 %v8350_v1 }
 0x37b   : > { %v3039_v55 = vsel %vm1493_vm6, %v5465_v36, %v5172_v60 }
 0x37c   : > { %v5176_v12 = vpop.permute.xlu1 %5175 }
 0x37d   : > { %v5136_v46 = vpop.permute.xlu0 %5135  ;;  %v5178_v54 = vunpack.i.h.bf16 %v5176_v12  ;;  %v5177_v0 = vunpack.i.l.bf16 %v5176_v12 }
 0x37e   : > { %v5138_v40 = vunpack.i.h.bf16 %v5136_v46  ;;  %v5137_v52 = vunpack.i.l.bf16 %v5136_v46  ;;  %v5127_v46 = vunpack.i.l.bf16 %v8336_v43 }
 0x380   : > { %v3199_v42 = vsel %vm3180_vm3, %v3166_v19, %v5137_v52  ;;  %v3200_v51 = vsel %vm3180_vm3, %v3167_v25, %v5138_v40  ;;  %v5186_v49 = vpop.permute.xlu1 %5185  ;;  %v5152_v52 = vunpack.i.l.bf16 %v8321_v17  ;;  %v5133_v19 = vunpack.i.h.bf16 %v8350_v1 }
 0x381   : > { %v8362_v29 = vpop.permute.xlu0 %5145  ;;  %v3232_v53 = vsel %vm3213_vm4, %v3199_v42, %v5177_v0  ;;  %v3233_v16 = vsel %vm3213_vm4, %v3200_v51, %v5178_v54  ;;  %v5188_v12 = vunpack.i.h.bf16 %v5186_v49  ;;  %v5187_v48 = vunpack.i.l.bf16 %v5186_v49 }
 0x382   : > { %v3264_v35 = vpack.c.bf16 %v3233_v16, %v3232_v53  ;;  %v5464_v16 = vld [vmem:[#allocation2 + $0x110] sm:$0xff]  ;;  %v9060_v1 = vpack.c.bf16 %v7870_v39, %v7867_v27  ;;  %v5147_v20 = vunpack.i.l.bf16 %v8362_v29  ;;  %v5466_v39 = vld [vmem:[#allocation2 + $0x120] sm:$0xff] }
 0x384   : > { %3510 = vmatmul.mubr.bf16.gmra.mrb[16].mxu1 %v3264_v35  ;;  %v8366_v33 = vpop.permute.xlu1 %5195  ;;  %v3040_v35 = vsel %vm1493_vm6, %v5464_v16, %v5173_v47  ;;  %v3041_v47 = vsel %vm1493_vm6, %v5466_v39, %v5147_v20 }
 0x385   : > { %v8368_v11 = vpop.permute.xlu0 %5155  ;;  %3967 = vmatprep.mubr.msk.bf16.mxu1 %vm1493_vm6, %v9059_v37 }
 0x386   : > { %v5158_v38 = vunpack.i.h.bf16 %v8368_v11  ;;  %v5157_v5 = vunpack.i.l.bf16 %v8368_v11 }
 0x388   : > { %v8377_v15 = vpop.permute.xlu1 %5200 }
 0x389   : > { %v8381_v28 = vpop.permute.xlu0 %5160 }
 0x38a   : > { %v5162_v11 = vunpack.i.l.bf16 %v8381_v28 }
 0x38c   : > { %v8387_v23 = vpop.permute.xlu1 %5210 }
 0x38d   : > { %v5181_v22 = vpop.permute.xlu0 %5180  ;;  %v5212_v60 = vunpack.i.l.bf16 %v8387_v23 }
 0x38e   : > { %v5183_v4 = vunpack.i.h.bf16 %v5181_v22  ;;  %v5182_v9 = vunpack.i.l.bf16 %v5181_v22 }
 0x390   : > { %v3135_v54 = vsel %vm3114_vm15, %v3102_v26, %v5182_v9  ;;  %v3136_v0 = vsel %vm3114_vm15, %v3103_v34, %v5183_v4  ;;  %v8399_v40 = vpop.permute.xlu1 %5220  ;;  %v5148_v34 = vunpack.i.h.bf16 %v8362_v29  ;;  %v5163_v4 = vunpack.i.h.bf16 %v8381_v28 }
 0x391   : > { %v3168_v25 = vsel %vm3147_vm2, %v3135_v54, %v5187_v48  ;;  %v3169_v62 = vsel %vm3147_vm2, %v3136_v0, %v5188_v12  ;;  %v5191_v42 = vpop.permute.xlu0 %5190  ;;  %v5467_v54 = vld [vmem:[#allocation2 + $0x128] sm:$0xff]  ;;  %v5213_v28 = vunpack.i.h.bf16 %v8387_v23  ;;  %v5222_v20 = vunpack.i.l.bf16 %v8399_v40 }
 0x392   : > { %v5193_v51 = vunpack.i.h.bf16 %v5191_v42  ;;  %v5192_v49 = vunpack.i.l.bf16 %v5191_v42  ;;  %v3201_v53 = vsel %vm3180_vm3, %v3168_v25, %v5127_v46  ;;  %v3202_v43 = vsel %vm3180_vm3, %v3169_v62, %v5128_v56 }
 0x393   : > { %v3234_v17 = vsel %vm3213_vm4, %v3201_v53, %v5152_v52  ;;  %v3235_v37 = vsel %vm3213_vm4, %v3202_v43, %v5153_v45  ;;  %v5168_v56 = vunpack.i.h.bf16 %v8332_v8  ;;  %v5167_v46 = vunpack.i.l.bf16 %v8332_v8 }
 0x394   : > { %v3071_v3 = vsel %vm1625_vm10, %v3039_v55, %v5192_v49  ;;  %v3072_v14 = vsel %vm1625_vm10, %v3040_v35, %v5193_v51  ;;  %v8414_v50 = vpop.permute.xlu1 %5225  ;;  %v3266_v6 = vpack.c.bf16 %v3235_v37, %v3234_v17  ;;  %v3042_v0 = vsel %vm1493_vm6, %v5467_v54, %v5148_v34 }
 0x395   : > { %v5206_v30 = vpop.permute.xlu0 %5205  ;;  %v3104_v61 = vsel %vm3081_vm14, %v3071_v3, %v5132_v24  ;;  %v3105_v63 = vsel %vm3081_vm14, %v3072_v14, %v5133_v19  ;;  %v3073_v51 = vsel %vm1625_vm10, %v3041_v47, %v5167_v46  ;;  %v3074_v43 = vsel %vm1625_vm10, %v3042_v0, %v5168_v56  ;;  %v5469_v0 = vld [vmem:[#allocation2 + $0x30] sm:$0xff] }
 0x396   : > { %3518 = vmatmul.mubr.bf16.gmra.mrb[20].mxu1 %v3266_v6  ;;  %v3137_v22 = vsel %vm3114_vm15, %v3104_v61, %v5157_v5  ;;  %v3138_v26 = vsel %vm3114_vm15, %v3105_v63, %v5158_v38  ;;  %v5208_v9 = vunpack.i.h.bf16 %v5206_v30  ;;  %v5207_v27 = vunpack.i.l.bf16 %v5206_v30  ;;  %v9061_v61 = vld [vmem:[#allocation28_spill] sm:$0xff] }
 0x397   : > { %3968 = vmatprep.mubr.msk.bf16.mxu1 %vm1493_vm6, %v9060_v1  ;;  %v3170_v12 = vsel %vm3147_vm2, %v3137_v22, %v5162_v11  ;;  %v3171_v29 = vsel %vm3147_vm2, %v3138_v26, %v5163_v4  ;;  %v3106_v8 = vsel %vm3081_vm14, %v3073_v51, %v5212_v60  ;;  %v3107_v36 = vsel %vm3081_vm14, %v3074_v43, %v5213_v28  ;;  %v5468_v60 = vld [vmem:[#allocation2 + $0x38] sm:$0xff] }
 0x398   : > { %v8425_v41 = vpop.permute.xlu1 %5240  ;;  %v3203_v49 = vsel %vm3180_vm3, %v3170_v12, %v5207_v27  ;;  %v3204_v53 = vsel %vm3180_vm3, %v3171_v29, %v5208_v9  ;;  %v5198_v3 = vunpack.i.h.bf16 %v8366_v33  ;;  %v5197_v14 = vunpack.i.l.bf16 %v8366_v33  ;;  %v9063_v9 = vld [vmem:[#allocation27_spill] sm:$0xff] }
 0x399   : > { %v8430_v45 = vpop.permute.xlu0 %5215  ;;  %v4883_v63 = vunpack.i.h.bf16 %v9061_v61  ;;  %v5223_v1 = vunpack.i.h.bf16 %v8399_v40  ;;  %v9062_v34 = vpack.c.bf16 %v7879_v58, %v7876_v32  ;;  %v4882_v4 = vunpack.i.l.bf16 %v9061_v61 }
 0x39a   : > { %v4903_v27 = vunpack.i.h.bf16 %v9063_v9  ;;  %v4902_v39 = vunpack.i.l.bf16 %v9063_v9  ;;  %v5228_v58 = vunpack.i.h.bf16 %v8414_v50  ;;  %v5227_v12 = vunpack.i.l.bf16 %v8414_v50 }
 0x39b   : > { %v3022_v32 = vsel %vm1493_vm6, %v5468_v60, %v4883_v63  ;;  %v4933_v29 = vunpack.i.h.bf16 %v8021_v10  ;;  %v3021_v28 = vsel %vm1493_vm6, %v5469_v0, %v4882_v4 }
 0x39c   : > { %v5251_v48 = vpop.permute.xlu1 %5250  ;;  %v3054_v51 = vsel %vm1625_vm10, %v3022_v32, %v4903_v27 }
 0x39d   : > { %v5231_v52 = vpop.permute.xlu0 %5230  ;;  %v5253_v62 = vunpack.i.h.bf16 %v5251_v48  ;;  %v5252_v42 = vunpack.i.l.bf16 %v5251_v48  ;;  %v4932_v48 = vunpack.i.l.bf16 %v8021_v10  ;;  %v5471_v10 = vld [vmem:[#allocation2 + $0x138] sm:$0xff] }
 0x39e   : > { %v5233_v19 = vunpack.i.h.bf16 %v5231_v52  ;;  %v5232_v25 = vunpack.i.l.bf16 %v5231_v52 }
 0x39f   : > { %v3139_v6 = vsel %vm3114_vm15, %v3106_v8, %v5252_v42  ;;  %v3140_v30 = vsel %vm3114_vm15, %v3107_v36, %v5253_v62  ;;  %v3053_v42 = vsel %vm1625_vm10, %v3021_v28, %v4902_v39  ;;  %v3043_v8 = vsel %vm1493_vm6, %v5471_v10, %v5227_v12  ;;  %v9066_v12 = vld [vmem:[#allocation24_spill] sm:$0xff] }
 0x3a0   : > { %v5256_v16 = vpop.permute.xlu1 %5255  ;;  %v3236_v35 = vsel %vm3213_vm4, %v3203_v49, %v5232_v25  ;;  %v3237_v23 = vsel %vm3213_vm4, %v3204_v53, %v5233_v19  ;;  %v5470_v53 = vld [vmem:[#allocation2 + $0x140] sm:$0xff]  ;;  %v3086_v36 = vsel %vm3081_vm14, %v3053_v42, %v4932_v48  ;;  %v4942_v10 = vunpack.i.l.bf16 %v8036_v44 }
 0x3a1   : > { %v5236_v55 = vpop.permute.xlu0 %5235  ;;  %v5258_v17 = vunpack.i.h.bf16 %v5256_v16  ;;  %v5257_v37 = vunpack.i.l.bf16 %v5256_v16  ;;  %v3268_v24 = vpack.c.bf16 %v3237_v23, %v3236_v35  ;;  %v3044_v43 = vsel %vm1493_vm6, %v5470_v53, %v5228_v58  ;;  %v9065_v58 = vld [vmem:[#allocation21_spill] sm:$0xff] }
 0x3a2   : > { %v5238_v52 = vunpack.i.h.bf16 %v5236_v55  ;;  %v5237_v19 = vunpack.i.l.bf16 %v5236_v55  ;;  %v3087_v23 = vsel %vm3081_vm14, %v3054_v51, %v4933_v29  ;;  %v9067_v29 = vpack.c.bf16 %v9065_v58, %v9066_v12 }
 0x3a3   : > { %v3172_v38 = vsel %vm3147_vm2, %v3139_v6, %v5257_v37  ;;  %v3173_v5 = vsel %vm3147_vm2, %v3140_v30, %v5258_v17  ;;  %3526 = vmatmul.mubr.bf16.gmra.mrb[24].mxu1 %v3268_v24  ;;  %v9064_v37 = vpack.c.bf16 %v7921_v31, %v7918_v59 }
 0x3a4   : > { %3969 = vmatprep.mubr.msk.bf16.mxu1 %vm1493_vm6, %v9062_v34  ;;  %v5261_v33 = vpop.permute.xlu1 %5260  ;;  %v3205_v22 = vsel %vm3180_vm3, %v3172_v38, %v5197_v14  ;;  %v3206_v26 = vsel %vm3180_vm3, %v3173_v5, %v5198_v3  ;;  %v5203_v3 = vunpack.i.h.bf16 %v8377_v15  ;;  %v5202_v14 = vunpack.i.l.bf16 %v8377_v15 }
 0x3a5   : > { %v5246_v11 = vpop.permute.xlu0 %5245  ;;  %v3238_v47 = vsel %vm3213_vm4, %v3205_v22, %v5222_v20  ;;  %v3239_v40 = vsel %vm3213_vm4, %v3206_v26, %v5223_v1  ;;  %v5263_v56 = vunpack.i.h.bf16 %v5261_v33  ;;  %v5262_v46 = vunpack.i.l.bf16 %v5261_v33 }
 0x3a6   : > { %v3270_v62 = vpack.c.bf16 %v3239_v40, %v3238_v47  ;;  %v5248_v49 = vunpack.i.h.bf16 %v5246_v11  ;;  %v5247_v50 = vunpack.i.l.bf16 %v5246_v11  ;;  %v3120_v6 = vsel %vm3114_vm15, %v3087_v23, %v5238_v52 }
 0x3a7   : > { %v3075_v55 = vsel %vm1625_vm10, %v3043_v8, %v5262_v46  ;;  %v3076_v17 = vsel %vm1625_vm10, %v3044_v43, %v5263_v56  ;;  %v3119_v30 = vsel %vm3114_vm15, %v3086_v36, %v5237_v19  ;;  %v5243_v15 = vunpack.i.h.bf16 %v8425_v41 }
 0x3a8   : > { %v5266_v54 = vpop.permute.xlu1 %5265  ;;  %v3152_v63 = vsel %vm3147_vm2, %v3119_v30, %v5247_v50  ;;  %v3153_v38 = vsel %vm3147_vm2, %v3120_v6, %v5248_v49  ;;  %v3108_v59 = vsel %vm3081_vm14, %v3075_v55, %v5202_v14  ;;  %v3109_v31 = vsel %vm3081_vm14, %v3076_v17, %v5203_v3  ;;  %v5472_v14 = vld [vmem:[#allocation2 + $0x50] sm:$0xff] }
 0x3a9   : > { %v5271_v25 = vpop.permute.xlu0 %5270  ;;  %v5242_v33 = vunpack.i.l.bf16 %v8425_v41  ;;  %v5268_v11 = vunpack.i.h.bf16 %v5266_v54  ;;  %v5267_v9 = vunpack.i.l.bf16 %v5266_v54  ;;  %v3142_v40 = vsel %vm3114_vm15, %v3109_v31, %v5243_v15 }
 0x3aa   : > { %v5273_v16 = vunpack.i.h.bf16 %v5271_v25  ;;  %v5272_v35 = vunpack.i.l.bf16 %v5271_v25  ;;  %v9068_v49 = vpack.c.bf16 %v7935_v21, %v7932_v2  ;;  %v4943_v43 = vunpack.i.h.bf16 %v8036_v44  ;;  %v5473_v21 = vld [vmem:[#allocation2 + $0x48] sm:$0xff] }
 0x3ab   : > { %3534 = vmatmul.mubr.bf16.gmra.mrb[28].mxu1 %v3270_v62  ;;  %v3141_v47 = vsel %vm3114_vm15, %v3108_v59, %v5242_v33  ;;  %v3175_v56 = vsel %vm3147_vm2, %v3142_v40, %v5268_v11  ;;  %v3023_v6 = vsel %vm1493_vm6, %v5473_v21, %v4942_v10  ;;  %v5217_v31 = vunpack.i.l.bf16 %v8430_v45  ;;  %v9070_v10 = vld [vmem:[#allocation20_spill] sm:$0xff] }
 0x3ac   : > { %3970 = vmatprep.mubr.msk.bf16.mxu1 %vm1493_vm6, %v9064_v37  ;;  %v8488_v24 = vpop.permute.xlu1 %5275  ;;  %v3185_v20 = vsel %vm3180_vm3, %v3152_v63, %v5272_v35  ;;  %v3186_v34 = vsel %vm3180_vm3, %v3153_v38, %v5273_v16  ;;  %v3174_v48 = vsel %vm3147_vm2, %v3141_v47, %v5267_v9  ;;  %v5218_v35 = vunpack.i.h.bf16 %v8430_v45 }
 0x3ad   : > { %v5286_v61 = vpop.permute.xlu0 %5285  ;;  %v3024_v2 = vsel %vm1493_vm6, %v5472_v14, %v4943_v43  ;;  %v9069_v43 = vld [vmem:[#allocation22_spill] sm:$0xff] }
 0x3ae   : > { %v5288_v5 = vunpack.i.h.bf16 %v5286_v61  ;;  %v5287_v1 = vunpack.i.l.bf16 %v5286_v61 }
 0x3b0   : > { %v5281_v22 = vpop.permute.xlu1 %5280  ;;  %v3218_v26 = vsel %vm3213_vm4, %v3185_v20, %v5287_v1  ;;  %v3219_v4 = vsel %vm3213_vm4, %v3186_v34, %v5288_v5  ;;  %v5474_v1 = vld [vmem:[#allocation2 + $0x158] sm:$0xff] }
 0x3b1   : > { %v5296_v27 = vpop.permute.xlu0 %5295  ;;  %v3250_v39 = vpack.c.bf16 %v3219_v4, %v3218_v26  ;;  %v5283_v60 = vunpack.i.h.bf16 %v5281_v22  ;;  %v5282_v32 = vunpack.i.l.bf16 %v5281_v22  ;;  %v3046_v59 = vsel %vm1493_vm6, %v5474_v1, %v5218_v35 }
 0x3b2   : > { %v5298_v8 = vunpack.i.h.bf16 %v5296_v27  ;;  %v5297_v16 = vunpack.i.l.bf16 %v5296_v27 }
 0x3b3   : > { %3454 = vmatmul.mubr.bf16.gmra.mrb[40].mxu0 %v3250_v39  ;;  %v3207_v28 = vsel %vm3180_vm3, %v3174_v48, %v5282_v32  ;;  %v3208_v52 = vsel %vm3180_vm3, %v3175_v56, %v5283_v60  ;;  %v5475_v56 = vld [vmem:[#allocation2 + $0x150] sm:$0xff] }
 0x3b4   : > { %3960 = vmatprep.mubr.msk.bf16.mxu0 %vm1493_vm6, %v9067_v29  ;;  %v5291_v41 = vpop.permute.xlu1 %5290  ;;  %v3055_v44 = vsel %vm1625_vm10, %v3023_v6, %v5297_v16  ;;  %v3056_v63 = vsel %vm1625_vm10, %v3024_v2, %v5298_v8  ;;  %v9071_v8 = vpack.c.bf16 %v9069_v43, %v9070_v10 }
 0x3b5   : > { %v5306_v46 = vpop.permute.xlu0 %5305  ;;  %v5293_v54 = vunpack.i.h.bf16 %v5291_v41  ;;  %v5292_v0 = vunpack.i.l.bf16 %v5291_v41 }
 0x3b6   : > { %v5308_v23 = vunpack.i.h.bf16 %v5306_v46  ;;  %v5307_v36 = vunpack.i.l.bf16 %v5306_v46  ;;  %v3045_v46 = vsel %vm1493_vm6, %v5475_v56, %v5217_v31 }
 0x3b7   : > { %v3240_v19 = vsel %vm3213_vm4, %v3207_v28, %v5292_v0  ;;  %v3241_v25 = vsel %vm3213_vm4, %v3208_v52, %v5293_v54 }
 0x3b8   : > { %v5301_v62 = vpop.permute.xlu1 %5300  ;;  %v3272_v42 = vpack.c.bf16 %v3241_v25, %v3240_v19  ;;  %v3088_v20 = vsel %vm3081_vm14, %v3055_v44, %v5307_v36  ;;  %v3089_v34 = vsel %vm3081_vm14, %v3056_v63, %v5308_v23  ;;  %v4938_v63 = vunpack.i.h.bf16 %v8042_v7 }
 0x3b9   : > { %v5316_v51 = vpop.permute.xlu0 %5315  ;;  %v5303_v26 = vunpack.i.h.bf16 %v5301_v62  ;;  %v5302_v4 = vunpack.i.l.bf16 %v5301_v62 }
 0x3ba   : > { %3542 = vmatmul.mubr.bf16.gmra.mrb[32].mxu1 %v3272_v42  ;;  %v5318_v17 = vunpack.i.h.bf16 %v5316_v51  ;;  %v5317_v37 = vunpack.i.l.bf16 %v5316_v51 }
 0x3bb   : > { %3971 = vmatprep.mubr.msk.bf16.mxu1 %vm1493_vm6, %v9068_v49  ;;  %v3078_v19 = vsel %vm1625_vm10, %v3046_v59, %v5303_v26  ;;  %v3077_v25 = vsel %vm1625_vm10, %v3045_v46, %v5302_v4  ;;  %v5278_v59 = vunpack.i.h.bf16 %v8488_v24  ;;  %v5476_v26 = vld [vmem:[#allocation2 + $0x68] sm:$0xff] }
 0x3bc   : > { %v5311_v50 = vpop.permute.xlu1 %5310  ;;  %v3121_v33 = vsel %vm3114_vm15, %v3088_v20, %v5317_v37  ;;  %v3122_v22 = vsel %vm3114_vm15, %v3089_v34, %v5318_v17  ;;  %v3026_v57 = vsel %vm1493_vm6, %v5476_v26, %v4938_v63 }
 0x3bd   : > { %v5326_v53 = vpop.permute.xlu0 %5325  ;;  %v5313_v40 = vunpack.i.h.bf16 %v5311_v50  ;;  %v5312_v45 = vunpack.i.l.bf16 %v5311_v50 }
 0x3be   : > { %v5328_v30 = vunpack.i.h.bf16 %v5326_v53  ;;  %v5327_v61 = vunpack.i.l.bf16 %v5326_v53 }
 0x3bf   : > { %v3110_v51 = vsel %vm3081_vm14, %v3077_v25, %v5312_v45  ;;  %v3111_v49 = vsel %vm3081_vm14, %v3078_v19, %v5313_v40  ;;  %v5277_v45 = vunpack.i.l.bf16 %v8488_v24 }
 0x3c0   : > { %v5321_v55 = vpop.permute.xlu1 %5320  ;;  %v3154_v9 = vsel %vm3147_vm2, %v3121_v33, %v5327_v61  ;;  %v3155_v27 = vsel %vm3147_vm2, %v3122_v22, %v5328_v30 }
 0x3c1   : > { %v5336_v3 = vpop.permute.xlu0 %5335  ;;  %v5323_v58 = vunpack.i.h.bf16 %v5321_v55  ;;  %v5322_v12 = vunpack.i.l.bf16 %v5321_v55 }
 0x3c2   : > { %v5338_v38 = vunpack.i.h.bf16 %v5336_v3  ;;  %v5337_v5 = vunpack.i.l.bf16 %v5336_v3 }
 0x3c3   : > { %v3143_v50 = vsel %vm3114_vm15, %v3110_v51, %v5322_v12  ;;  %v3144_v53 = vsel %vm3114_vm15, %v3111_v49, %v5323_v58 }
 0x3c4   : > { %v5331_v15 = vpop.permute.xlu1 %5330  ;;  %v3187_v60 = vsel %vm3180_vm3, %v3154_v9, %v5337_v5  ;;  %v3188_v32 = vsel %vm3180_vm3, %v3155_v27, %v5338_v38  ;;  %v4937_v38 = vunpack.i.l.bf16 %v8042_v7 }
 0x3c5   : > { %v5346_v11 = vpop.permute.xlu0 %5345  ;;  %v5333_v54 = vunpack.i.h.bf16 %v5331_v15  ;;  %v5332_v0 = vunpack.i.l.bf16 %v5331_v15 }
 0x3c6   : > { %v5348_v39 = vunpack.i.h.bf16 %v5346_v11  ;;  %v5347_v47 = vunpack.i.l.bf16 %v5346_v11 }
 0x3c7   : > { %v3176_v35 = vsel %vm3147_vm2, %v3143_v50, %v5332_v0  ;;  %v3177_v23 = vsel %vm3147_vm2, %v3144_v53, %v5333_v54  ;;  %v5479_v53 = vld [vmem:[#allocation2 + $0x168] sm:$0xff] }
 0x3c8   : > { %v5341_v29 = vpop.permute.xlu1 %5340  ;;  %v3220_v41 = vsel %vm3213_vm4, %v3187_v60, %v5347_v47  ;;  %v3221_v48 = vsel %vm3213_vm4, %v3188_v32, %v5348_v39  ;;  %v5478_v47 = vld [vmem:[#allocation2 + $0x170] sm:$0xff]  ;;  %v3047_v43 = vsel %vm1493_vm6, %v5479_v53, %v5277_v45 }
 0x3c9   : > { %v5356_v28 = vpop.permute.xlu0 %5355  ;;  %v3252_v52 = vpack.c.bf16 %v3221_v48, %v3220_v41  ;;  %v5343_v62 = vunpack.i.h.bf16 %v5341_v29  ;;  %v5342_v42 = vunpack.i.l.bf16 %v5341_v29  ;;  %v3048_v40 = vsel %vm1493_vm6, %v5478_v47, %v5278_v59  ;;  %v8593_v59 = vld [vmem:[#allocation11] ss:$0 sm:$0xff] }
 0x3ca   : > { %v5358_v5 = vunpack.i.h.bf16 %v5356_v28  ;;  %v5357_v1 = vunpack.i.l.bf16 %v5356_v28 }
 0x3cb   : > { %3462 = vmatmul.mubr.bf16.gmra.mrb[44].mxu0 %v3252_v52  ;;  %v3209_v37 = vsel %vm3180_vm3, %v3176_v35, %v5342_v42  ;;  %v3210_v3 = vsel %vm3180_vm3, %v3177_v23, %v5343_v62 }
 0x3cc   : > { %3961 = vmatprep.mubr.msk.bf16.mxu0 %vm1493_vm6, %v9071_v8  ;;  %v5351_v16 = vpop.permute.xlu1 %5350  ;;  %v3058_v7 = vsel %vm1625_vm10, %v3026_v57, %v5358_v5 }
 0x3cd   : > { %v5366_v36 = vpop.permute.xlu0 %5365  ;;  %v5353_v55 = vunpack.i.h.bf16 %v5351_v16  ;;  %v5352_v17 = vunpack.i.l.bf16 %v5351_v16 }
 0x3ce   : > { %v5368_v31 = vunpack.i.h.bf16 %v5366_v36  ;;  %v5367_v20 = vunpack.i.l.bf16 %v5366_v36 }
 0x3cf   : > { %v3242_v14 = vsel %vm3213_vm4, %v3209_v37, %v5352_v17  ;;  %v3243_v2 = vsel %vm3213_vm4, %v3210_v3, %v5353_v55 }
 0x3d0   : > { %v5361_v21 = vpop.permute.xlu1 %5360  ;;  %v3274_v6 = vpack.c.bf16 %v3243_v2, %v3242_v14  ;;  %v3091_v32 = vsel %vm3081_vm14, %v3058_v7, %v5368_v31 }
 0x3d1   : > { %v5376_v30 = vpop.permute.xlu0 %5375  ;;  %v5363_v41 = vunpack.i.h.bf16 %v5361_v21  ;;  %v5362_v48 = vunpack.i.l.bf16 %v5361_v21 }
 0x3d2   : > { %3550 = vmatmul.mubr.bf16.gmra.mrb[36].mxu1 %v3274_v6  ;;  %v5378_v15 = vunpack.i.h.bf16 %v5376_v30  ;;  %v5377_v33 = vunpack.i.l.bf16 %v5376_v30 }
 0x3d3   : > { %3972 = vmatprep.mubr.msk.bf16.mxu1 %vm1493_vm6, %v3277_v13  ;;  %v3025_v13 = vsel %vm1493_vm6, %v5477_v18, %v4937_v38  ;;  %v3079_v35 = vsel %vm1625_vm10, %v3047_v43, %v5362_v48  ;;  %v3080_v23 = vsel %vm1625_vm10, %v3048_v40, %v5363_v41 }
 0x3d4   : > { %v5371_v61 = vpop.permute.xlu1 %5370  ;;  %v3057_v9 = vsel %vm1625_vm10, %v3025_v13, %v5357_v1  ;;  %v3124_v29 = vsel %vm3114_vm15, %v3091_v32, %v5378_v15 }
 0x3d5   : > { %v5386_v44 = vpop.permute.xlu0 %5385  ;;  %v3090_v60 = vsel %vm3081_vm14, %v3057_v9, %v5367_v20  ;;  %v5373_v52 = vunpack.i.h.bf16 %v5371_v61  ;;  %v5372_v24 = vunpack.i.l.bf16 %v5371_v61 }
 0x3d6   : > { %v5388_v4 = vunpack.i.h.bf16 %v5386_v44  ;;  %v5387_v11 = vunpack.i.l.bf16 %v5386_v44  ;;  %v3123_v12 = vsel %vm3114_vm15, %v3090_v60, %v5377_v33 }
 0x3d7   : > { %v3112_v17 = vsel %vm3081_vm14, %v3079_v35, %v5372_v24  ;;  %v3113_v37 = vsel %vm3081_vm14, %v3080_v23, %v5373_v52 }
 0x3d8   : > { %v5381_v34 = vpop.permute.xlu1 %5380  ;;  %v3156_v46 = vsel %vm3147_vm2, %v3123_v12, %v5387_v11  ;;  %v3157_v54 = vsel %vm3147_vm2, %v3124_v29, %v5388_v4 }
 0x3d9   : > { %v5396_v22 = vpop.permute.xlu0 %5395  ;;  %v5383_v62 = vunpack.i.h.bf16 %v5381_v34  ;;  %v5382_v42 = vunpack.i.l.bf16 %v5381_v34 }
 0x3da   : > { %v5398_v27 = vunpack.i.h.bf16 %v5396_v22  ;;  %v5397_v39 = vunpack.i.l.bf16 %v5396_v22 }
 0x3db   : > { %v3145_v3 = vsel %vm3114_vm15, %v3112_v17, %v5382_v42  ;;  %v3146_v14 = vsel %vm3114_vm15, %v3113_v37, %v5383_v62 }
 0x3dc   : > { %v5391_v58 = vpop.permute.xlu1 %5390  ;;  %v3189_v19 = vsel %vm3180_vm3, %v3156_v46, %v5397_v39  ;;  %v3190_v25 = vsel %vm3180_vm3, %v3157_v54, %v5398_v27 }
 0x3dd   : > { %v5406_v56 = vpop.permute.xlu0 %5405  ;;  %v5393_v10 = vunpack.i.h.bf16 %v5391_v58  ;;  %v5392_v8 = vunpack.i.l.bf16 %v5391_v58 }
 0x3de   : > { %v5408_v0 = vunpack.i.h.bf16 %v5406_v56  ;;  %v5407_v28 = vunpack.i.l.bf16 %v5406_v56 }
 0x3df   : > { %v3178_v21 = vsel %vm3147_vm2, %v3145_v3, %v5392_v8  ;;  %v3179_v6 = vsel %vm3147_vm2, %v3146_v14, %v5393_v10 }
 0x3e0   : > { %v5401_v51 = vpop.permute.xlu1 %5400  ;;  %v3222_v49 = vsel %vm3213_vm4, %v3189_v19, %v5407_v28  ;;  %v3223_v50 = vsel %vm3213_vm4, %v3190_v25, %v5408_v0 }
 0x3e1   : > { %v3254_v16 = vpack.c.bf16 %v3223_v50, %v3222_v49  ;;  %v5403_v36 = vunpack.i.h.bf16 %v5401_v51  ;;  %v5402_v55 = vunpack.i.l.bf16 %v5401_v51 }
 0x3e3   : > { %3470 = vmatmul.mubr.bf16.gmra.mrb[48].mxu0 %v3254_v16  ;;  %v3211_v44 = vsel %vm3180_vm3, %v3178_v21, %v5402_v55  ;;  %v3212_v63 = vsel %vm3180_vm3, %v3179_v6, %v5403_v36 }
 0x3e4   : > { %v5411_v2 = vpop.permute.xlu1 %5410 }
 0x3e5   : > { %v5413_v30 = vunpack.i.h.bf16 %v5411_v2  ;;  %v5412_v61 = vunpack.i.l.bf16 %v5411_v2 }
 0x3e7   : > { %v3244_v38 = vsel %vm3213_vm4, %v3211_v44, %v5412_v61  ;;  %v3245_v5 = vsel %vm3213_vm4, %v3212_v63, %v5413_v30 }
 0x3e8   : > { %v3276_v1 = vpack.c.bf16 %v3245_v5, %v3244_v38 }
 0x3ea   : > { %3558 = vmatmul.mubr.bf16.gmra.mrb[40].mxu1 %v3276_v1 }
 0x3fb   : > { %v3439_v31 = vpop.f32.mrb[32].mxu0 }
 0x3fc   : > { %v3440_v20 = vadd.f32 %v8593_v59, %v3439_v31  ;;  %v3441_v34 = vpop.f32.mrb[33].mxu0 }
 0x3fd   : > { %v3442_v15 = vpop.f32.mrb[34].mxu0 }
 0x3fe   : > { %3566 = vst.msk [vmem:[%s8596_s26] sm:$0xff] %vm1493_vm6, %v3440_v20  ;;  %v3443_v33 = vadd.f32 %v8593_v59, %v3442_v15  ;;  %v3444_v22 = vpop.f32.mrb[35].mxu0 }
 0x400   : > { %3567 = vst.msk [vmem:[%s8596_s26 + $0x8] sm:$0xff] %vm1493_vm6, %v3443_v33 }
 0x403   : > { %v3447_v26 = vpop.f32.mrb[36].mxu0 }
 0x404   : > { %v3448_v57 = vadd.f32 %v8593_v59, %v3447_v26  ;;  %v3449_v18 = vpop.f32.mrb[37].mxu0 }
 0x405   : > { %v3450_v13 = vpop.f32.mrb[38].mxu0 }
 0x406   : > { %3568 = vst.msk [vmem:[%s8596_s26 + $0x10] sm:$0xff] %vm1493_vm6, %v3448_v57  ;;  %v3451_v4 = vadd.f32 %v8593_v59, %v3450_v13  ;;  %v3452_v11 = vpop.f32.mrb[39].mxu0 }
 0x407   : > { %v3623_v7 = vld [vmem:[%s8596_s26] ss:$2 sm:$0xff]  ;;  %v3990_v9 = vld [vmem:[%s8596_s26 + $0x1] ss:$2 sm:$0xff] }
 0x408   : > { %3569 = vst.msk [vmem:[%s8596_s26 + $0x18] sm:$0xff] %vm1493_vm6, %v3451_v4  ;;  %v3686_v27 = vmax.f32 %v3623_v7, %v3990_v9 }
 0x40a   : > { %v3702_v45 = vsel %vm1493_vm6, %v3686_v27, -inf }
 0x40f   : > { %v3975_v39 = vld [vmem:[%s8596_s26 + $0x10] ss:$2 sm:$0xff]  ;;  %v3991_v47 = vld [vmem:[%s8596_s26 + $0x11] ss:$2 sm:$0xff] }
 0x410   : > { %v3687_v40 = vmax.f32 %v3975_v39, %v3991_v47 }
 0x412   : > { %v3703_v60 = vsel %vm1493_vm6, %v3687_v40, -inf }
 0x413   : > { %v3704_v32 = vmax.f32 %v3702_v45, %v3703_v60 }
 0x415   : > { %4006 = vst.msk [vmem:[%s7422_s30 + $0x11] sm:$0xff] %vm1493_vm6, %v3704_v32 }
 0x421   : > { %v3479_v58 = vpop.f32.mrb[0].mxu1 }
 0x422   : > { %v3480_v12 = vadd.f32 %v8593_v59, %v3479_v58  ;;  %v3481_v29 = vpop.f32.mrb[1].mxu1 }
 0x423   : > { %v3482_v41 = vpop.f32.mrb[2].mxu1 }
 0x424   : > { %3576 = vst.msk [vmem:[%s8596_s26 + $0x50] sm:$0xff] %vm1493_vm6, %v3480_v12  ;;  %v3483_v48 = vadd.f32 %v8593_v59, %v3482_v41  ;;  %v3484_v56 = vpop.f32.mrb[3].mxu1 }
 0x426   : > { %3577 = vst.msk [vmem:[%s8596_s26 + $0x58] sm:$0xff] %vm1493_vm6, %v3483_v48 }
 0x42d   : > { %v3487_v46 = vpop.f32.mrb[4].mxu1 }
 0x42e   : > { %v3488_v54 = vadd.f32 %v8593_v59, %v3487_v46  ;;  %v3489_v0 = vpop.f32.mrb[5].mxu1 }
 0x42f   : > { %v3490_v28 = vpop.f32.mrb[6].mxu1 }
 0x430   : > { %3578 = vst.msk [vmem:[%s8596_s26 + $0x60] sm:$0xff] %vm1493_vm6, %v3488_v54  ;;  %v3491_v52 = vadd.f32 %v8593_v59, %v3490_v28  ;;  %v3492_v24 = vpop.f32.mrb[7].mxu1 }
 0x432   : > { %3579 = vst.msk [vmem:[%s8596_s26 + $0x68] sm:$0xff] %vm1493_vm6, %v3491_v52 }
 0x439   : > { %v3980_v50 = vld [vmem:[%s8596_s26 + $0x60] ss:$2 sm:$0xff]  ;;  %v3996_v53 = vld [vmem:[%s8596_s26 + $0x61] ss:$2 sm:$0xff] }
 0x43a   : > { %v3692_v43 = vmax.f32 %v3980_v50, %v3996_v53 }
 0x43c   : > { %v3711_v17 = vsel %vm1493_vm6, %v3692_v43, -inf }
 0x43d   : > { %v3495_v19 = vpop.f32.mrb[8].mxu1 }
 0x43e   : > { %v3496_v25 = vadd.f32 %v8593_v59, %v3495_v19  ;;  %v3497_v62 = vpop.f32.mrb[9].mxu1 }
 0x43f   : > { %v3498_v42 = vpop.f32.mrb[10].mxu1 }
 0x440   : > { %3580 = vst.msk [vmem:[%s8596_s26 + $0x70] sm:$0xff] %vm1493_vm6, %v3496_v25  ;;  %v3499_v51 = vadd.f32 %v8593_v59, %v3498_v42  ;;  %v3500_v49 = vpop.f32.mrb[11].mxu1 }
 0x442   : > { %3581 = vst.msk [vmem:[%s8596_s26 + $0x78] sm:$0xff] %vm1493_vm6, %v3499_v51 }
 0x449   : > { %v3981_v10 = vld [vmem:[%s8596_s26 + $0x70] ss:$2 sm:$0xff]  ;;  %v3997_v8 = vld [vmem:[%s8596_s26 + $0x71] ss:$2 sm:$0xff]  ;;  %v3503_v16 = vpop.f32.mrb[12].mxu1 }
 0x44a   : > { %v3693_v35 = vmax.f32 %v3981_v10, %v3997_v8  ;;  %v3504_v23 = vadd.f32 %v8593_v59, %v3503_v16  ;;  %v3505_v36 = vpop.f32.mrb[13].mxu1 }
 0x44b   : > { %v3506_v55 = vpop.f32.mrb[14].mxu1 }
 0x44c   : > { %v3712_v37 = vsel %vm1493_vm6, %v3693_v35, -inf  ;;  %3582 = vst.msk [vmem:[%s8596_s26 + $0x80] sm:$0xff] %vm1493_vm6, %v3504_v23  ;;  %v3507_v3 = vadd.f32 %v8593_v59, %v3506_v55  ;;  %v3508_v14 = vpop.f32.mrb[15].mxu1 }
 0x44d   : > { %v3713_v2 = vmax.f32 %v3711_v17, %v3712_v37 }
 0x44e   : > { %3583 = vst.msk [vmem:[%s8596_s26 + $0x88] sm:$0xff] %vm1493_vm6, %v3507_v3 }
 0x44f   : > { %4009 = vst.msk [vmem:[%s7422_s30 + $0x41] sm:$0xff] %vm1493_vm6, %v3713_v2 }
 0x455   : > { %v3982_v38 = vld [vmem:[%s8596_s26 + $0x80] ss:$2 sm:$0xff]  ;;  %v3998_v5 = vld [vmem:[%s8596_s26 + $0x81] ss:$2 sm:$0xff] }
 0x456   : > { %v3694_v1 = vmax.f32 %v3982_v38, %v3998_v5 }
 0x457   : > { %v3511_v21 = vpop.f32.mrb[16].mxu1 }
 0x458   : > { %v3512_v6 = vadd.f32 %v8593_v59, %v3511_v21  ;;  %v3513_v30 = vpop.f32.mrb[17].mxu1  ;;  %v3714_v15 = vsel %vm1493_vm6, %v3694_v1, -inf }
 0x459   : > { %v3514_v61 = vpop.f32.mrb[18].mxu1 }
 0x45a   : > { %3584 = vst.msk [vmem:[%s8596_s26 + $0x90] sm:$0xff] %vm1493_vm6, %v3512_v6  ;;  %v3515_v44 = vadd.f32 %v8593_v59, %v3514_v61  ;;  %v3516_v63 = vpop.f32.mrb[19].mxu1 }
 0x45c   : > { %3585 = vst.msk [vmem:[%s8596_s26 + $0x98] sm:$0xff] %vm1493_vm6, %v3515_v44 }
 0x463   : > { %v3983_v31 = vld [vmem:[%s8596_s26 + $0x90] ss:$2 sm:$0xff]  ;;  %v3999_v20 = vld [vmem:[%s8596_s26 + $0x91] ss:$2 sm:$0xff] }
 0x464   : > { %v3695_v34 = vmax.f32 %v3983_v31, %v3999_v20 }
 0x466   : > { %v3715_v33 = vsel %vm1493_vm6, %v3695_v34, -inf }
 0x467   : > { %v3716_v22 = vmax.f32 %v3714_v15, %v3715_v33 }
 0x469   : > { %4010 = vst.msk [vmem:[%s7422_s30 + $0x51] sm:$0xff] %vm1493_vm6, %v3716_v22  ;;  %v3519_v26 = vpop.f32.mrb[20].mxu1 }
 0x46a   : > { %v3520_v57 = vadd.f32 %v8593_v59, %v3519_v26  ;;  %v3521_v18 = vpop.f32.mrb[21].mxu1 }
 0x46b   : > { %v3522_v13 = vpop.f32.mrb[22].mxu1 }
 0x46c   : > { %3586 = vst.msk [vmem:[%s8596_s26 + $0xa0] sm:$0xff] %vm1493_vm6, %v3520_v57  ;;  %v3523_v4 = vadd.f32 %v8593_v59, %v3522_v13  ;;  %v3524_v11 = vpop.f32.mrb[23].mxu1 }
 0x46e   : > { %3587 = vst.msk [vmem:[%s8596_s26 + $0xa8] sm:$0xff] %vm1493_vm6, %v3523_v4 }
 0x475   : > { %v3984_v45 = vld [vmem:[%s8596_s26 + $0xa0] ss:$2 sm:$0xff]  ;;  %v4000_v60 = vld [vmem:[%s8596_s26 + $0xa1] ss:$2 sm:$0xff] }
 0x476   : > { %v3527_v7 = vpop.f32.mrb[24].mxu1  ;;  %v3696_v41 = vmax.f32 %v3984_v45, %v4000_v60  ;;  %v3979_v60 = vld [vmem:[%s8596_s26 + $0x50] ss:$2 sm:$0xff] }
 0x477   : > { %v3528_v9 = vadd.f32 %v8593_v59, %v3527_v7  ;;  %v3529_v27 = vpop.f32.mrb[25].mxu1 }
 0x478   : > { %v3530_v39 = vpop.f32.mrb[26].mxu1  ;;  %v3717_v28 = vsel %vm1493_vm6, %v3696_v41, -inf }
 0x479   : > { %3588 = vst.msk [vmem:[%s8596_s26 + $0xb0] sm:$0xff] %vm1493_vm6, %v3528_v9  ;;  %v3531_v47 = vadd.f32 %v8593_v59, %v3530_v39  ;;  %v3532_v40 = vpop.f32.mrb[27].mxu1 }
 0x47b   : > { %3589 = vst.msk [vmem:[%s8596_s26 + $0xb8] sm:$0xff] %vm1493_vm6, %v3531_v47 }
 0x47e   : > { %v3535_v32 = vpop.f32.mrb[28].mxu1 }
 0x47f   : > { %v3536_v58 = vadd.f32 %v8593_v59, %v3535_v32  ;;  %v3537_v12 = vpop.f32.mrb[29].mxu1  ;;  %v3995_v32 = vld [vmem:[%s8596_s26 + $0x51] ss:$2 sm:$0xff] }
 0x480   : > { %v3538_v29 = vpop.f32.mrb[30].mxu1 }
 0x481   : > { %3590 = vst.msk [vmem:[%s8596_s26 + $0xc0] sm:$0xff] %vm1493_vm6, %v3536_v58  ;;  %v3539_v48 = vadd.f32 %v8593_v59, %v3538_v29  ;;  %v3540_v56 = vpop.f32.mrb[31].mxu1 }
 0x482   : > { %v3985_v46 = vld [vmem:[%s8596_s26 + $0xb0] ss:$2 sm:$0xff]  ;;  %v4001_v54 = vld [vmem:[%s8596_s26 + $0xb1] ss:$2 sm:$0xff]  ;;  %v3691_v56 = vmax.f32 %v3979_v60, %v3995_v32 }
 0x483   : > { %v3697_v0 = vmax.f32 %v3985_v46, %v4001_v54  ;;  %3591 = vst.msk [vmem:[%s8596_s26 + $0xc8] sm:$0xff] %vm1493_vm6, %v3539_v48 }
 0x485   : > { %v3718_v52 = vsel %vm1493_vm6, %v3697_v0, -inf }
 0x486   : > { %v3719_v24 = vmax.f32 %v3717_v28, %v3718_v52  ;;  %v3455_v19 = vpop.f32.mrb[40].mxu0 }
 0x487   : > { %v3456_v25 = vadd.f32 %v8593_v59, %v3455_v19  ;;  %v3457_v62 = vpop.f32.mrb[41].mxu0 }
 0x488   : > { %4011 = vst.msk [vmem:[%s7422_s30 + $0x61] sm:$0xff] %vm1493_vm6, %v3719_v24  ;;  %v3458_v42 = vpop.f32.mrb[42].mxu0 }
 0x489   : > { %3570 = vst.msk [vmem:[%s8596_s26 + $0x20] sm:$0xff] %vm1493_vm6, %v3456_v25  ;;  %v3459_v51 = vadd.f32 %v8593_v59, %v3458_v42  ;;  %v3460_v49 = vpop.f32.mrb[43].mxu0 }
 0x48a   : > { %v3986_v35 = vld [vmem:[%s8596_s26 + $0xc0] ss:$2 sm:$0xff]  ;;  %v4002_v23 = vld [vmem:[%s8596_s26 + $0xc1] ss:$2 sm:$0xff] }
 0x48b   : > { %3571 = vst.msk [vmem:[%s8596_s26 + $0x28] sm:$0xff] %vm1493_vm6, %v3459_v51  ;;  %v3698_v36 = vmax.f32 %v3986_v35, %v4002_v23 }
 0x48d   : > { %v3543_v50 = vpop.f32.mrb[32].mxu1  ;;  %v3720_v3 = vsel %vm1493_vm6, %v3698_v36, -inf }
 0x48e   : > { %v3544_v53 = vadd.f32 %v8593_v59, %v3543_v50  ;;  %v3545_v43 = vpop.f32.mrb[33].mxu1 }
 0x48f   : > { %v3546_v10 = vpop.f32.mrb[34].mxu1 }
 0x490   : > { %3592 = vst.msk [vmem:[%s8596_s26 + $0xd0] sm:$0xff] %vm1493_vm6, %v3544_v53  ;;  %v3547_v8 = vadd.f32 %v8593_v59, %v3546_v10  ;;  %v3548_v16 = vpop.f32.mrb[35].mxu1 }
 0x492   : > { %3593 = vst.msk [vmem:[%s8596_s26 + $0xd8] sm:$0xff] %vm1493_vm6, %v3547_v8  ;;  %v3976_v5 = vld [vmem:[%s8596_s26 + $0x20] ss:$2 sm:$0xff]  ;;  %v3992_v1 = vld [vmem:[%s8596_s26 + $0x21] ss:$2 sm:$0xff] }
 0x493   : > { %v3688_v22 = vmax.f32 %v3976_v5, %v3992_v1 }
 0x495   : > { %v3705_v13 = vsel %vm1493_vm6, %v3688_v22, -inf }
 0x499   : > { %v3987_v55 = vld [vmem:[%s8596_s26 + $0xd0] ss:$2 sm:$0xff]  ;;  %v4003_v17 = vld [vmem:[%s8596_s26 + $0xd1] ss:$2 sm:$0xff] }
 0x49a   : > { %v3699_v37 = vmax.f32 %v3987_v55, %v4003_v17 }
 0x49c   : > { %v3721_v14 = vsel %vm1493_vm6, %v3699_v37, -inf }
 0x49d   : > { %v3722_v2 = vmax.f32 %v3720_v3, %v3721_v14 }
 0x49e   : > { %v3463_v21 = vpop.f32.mrb[44].mxu0 }
 0x49f   : > { %4012 = vst.msk [vmem:[%s7422_s30 + $0x71] sm:$0xff] %vm1493_vm6, %v3722_v2  ;;  %v3464_v6 = vadd.f32 %v8593_v59, %v3463_v21  ;;  %v3465_v30 = vpop.f32.mrb[45].mxu0 }
 0x4a0   : > { %v3466_v61 = vpop.f32.mrb[46].mxu0 }
 0x4a1   : > { %3572 = vst.msk [vmem:[%s8596_s26 + $0x30] sm:$0xff] %vm1493_vm6, %v3464_v6  ;;  %v3467_v44 = vadd.f32 %v8593_v59, %v3466_v61  ;;  %v3468_v63 = vpop.f32.mrb[47].mxu0 }
 0x4a3   : > { %3573 = vst.msk [vmem:[%s8596_s26 + $0x38] sm:$0xff] %vm1493_vm6, %v3467_v44 }
 0x4a5   : > { %v3551_v38 = vpop.f32.mrb[36].mxu1 }
 0x4a6   : > { %v3552_v31 = vadd.f32 %v8593_v59, %v3551_v38  ;;  %v3553_v20 = vpop.f32.mrb[37].mxu1 }
 0x4a7   : > { %v3554_v34 = vpop.f32.mrb[38].mxu1 }
 0x4a8   : > { %3594 = vst.msk [vmem:[%s8596_s26 + $0xe0] sm:$0xff] %vm1493_vm6, %v3552_v31  ;;  %v3555_v15 = vadd.f32 %v8593_v59, %v3554_v34  ;;  %v3556_v33 = vpop.f32.mrb[39].mxu1 }
 0x4aa   : > { %v3977_v26 = vld [vmem:[%s8596_s26 + $0x30] ss:$2 sm:$0xff]  ;;  %v3993_v57 = vld [vmem:[%s8596_s26 + $0x31] ss:$2 sm:$0xff]  ;;  %3595 = vst.msk [vmem:[%s8596_s26 + $0xe8] sm:$0xff] %vm1493_vm6, %v3555_v15 }
 0x4ab   : > { %v3689_v18 = vmax.f32 %v3977_v26, %v3993_v57 }
 0x4ad   : > { %v3706_v4 = vsel %vm1493_vm6, %v3689_v18, -inf }
 0x4ae   : > { %v3707_v11 = vmax.f32 %v3705_v13, %v3706_v4 }
 0x4b0   : > { %4007 = vst.msk [vmem:[%s7422_s30 + $0x21] sm:$0xff] %vm1493_vm6, %v3707_v11 }
 0x4b6   : > { %v3471_v7 = vpop.f32.mrb[48].mxu0 }
 0x4b7   : > { %v3472_v9 = vadd.f32 %v8593_v59, %v3471_v7  ;;  %v3473_v27 = vpop.f32.mrb[49].mxu0 }
 0x4b8   : > { %v3474_v39 = vpop.f32.mrb[50].mxu0 }
 0x4b9   : > { %3574 = vst.msk [vmem:[%s8596_s26 + $0x40] sm:$0xff] %vm1493_vm6, %v3472_v9  ;;  %v3475_v47 = vadd.f32 %v8593_v59, %v3474_v39  ;;  %v3476_v40 = vpop.f32.mrb[51].mxu0 }
 0x4bb   : > { %3575 = vst.msk [vmem:[%s8596_s26 + $0x48] sm:$0xff] %vm1493_vm6, %v3475_v47 }
 0x4bd   : > { %v3559_v45 = vpop.f32.mrb[40].mxu1 }
 0x4be   : > { %v3560_v58 = vadd.f32 %v8593_v59, %v3559_v45  ;;  %v3561_v12 = vpop.f32.mrb[41].mxu1 }
 0x4bf   : > { %v3562_v29 = vpop.f32.mrb[42].mxu1 }
 0x4c0   : > { %3596 = vst.msk [vmem:[%s8596_s26 + $0xf0] sm:$0xff] %vm1493_vm6, %v3560_v58  ;;  %v3563_v41 = vadd.f32 %v8593_v59, %v3562_v29  ;;  %v3564_v48 = vpop.f32.mrb[43].mxu1 }
 0x4c2   : > { %v3978_v46 = vld [vmem:[%s8596_s26 + $0x40] ss:$2 sm:$0xff]  ;;  %v3994_v54 = vld [vmem:[%s8596_s26 + $0x41] ss:$2 sm:$0xff]  ;;  %3597 = vst.msk [vmem:[%s8596_s26 + $0xf8] sm:$0xff] %vm1493_vm6, %v3563_v41 }
 0x4c3   : > { %v3690_v0 = vmax.f32 %v3978_v46, %v3994_v54 }
 0x4c4   : > { %5635 = shalt.err (!%p5632_p13)
}
 0x4c5   : > { %s5636_s17 = scalar_lea.hbm %s8743_s9, 4096  ;;  %s5640_s12 = scalar_lea.hbm %s8852_s5, 8192 }
 0x4c6   : > { %p5637_p9 = scmp.ne.s32.totalorder %s8743_s9, %s5636_s17  ;;  %p5641_p6 = scmp.lt.u32.totalorder %s8743_s9, %s8852_s5 }
 0x4c7   : > { %p5642_p4 = scmp.lt.u32.totalorder %s5640_s12, %s5636_s17  ;;  %p5644_p3 = scmp.lt.u32.totalorder %s5636_s17, %s8743_s9 }
 0x4c8   : > { %p5638_p0 = pnand %p5637_p9, %p5951_p10 }
 0x4c9   : > { %p5643_p8 = por %p5642_p4, %p5641_p6 }
 0x4ca   : > { %p5639_p11 = pneg %p5638_p0 }
 0x4cb   : > { %p5645_p5 = por %p5644_p3, %p5643_p8 }
 0x4cd   : > { %p5646_p7 = pnand %p5645_p5, %p5639_p11 }
 0x4cf   : > { %5649 = shalt.err (!%p5646_p7)
}
 0x4d0   : > { %s5755_s19 = smov 128   ;;  %v3709_v59 = vsel %vm1493_vm6, %v3691_v56, -inf  ;;  %v3988_v28 = vld [vmem:[%s8596_s26 + $0xe0] ss:$2 sm:$0xff]  ;;  %v4004_v52 = vld [vmem:[%s8596_s26 + $0xe1] ss:$2 sm:$0xff] }
 0x4d1   : > { %4120 = dma.vmem_to_hbm [thread:$0]  (%p5951_p10), %s8748_s10, 4096, %s8743_s9, %s3736_s8, %s5755_s19, %s5755_s19, %s5740_s29   ;;  %v3708_v24 = vsel %vm1493_vm6, %v3690_v0, -inf  ;;  %v3700_v25 = vmax.f32 %v3988_v28, %v4004_v52 }
 0x4d2   : > { %v3710_v19 = vmax.f32 %v3708_v24, %v3709_v59  ;;  %v3989_v62 = vld [vmem:[%s8596_s26 + $0xf0] ss:$2 sm:$0xff]  ;;  %v4005_v42 = vld [vmem:[%s8596_s26 + $0xf1] ss:$2 sm:$0xff]  ;;  %s4101_s27 = smul.u32 2560, %s5813_s25  ;;  %s3770_s17 = sshll.u32 %s7422_s30, 4  ;;  %s8798_s17 = int_to_ptr.vmem [resolvable:$true] %s3770_s17 }
 0x4d3   : > { %v3701_v51 = vmax.f32 %v3989_v62, %v4005_v42  ;;  %v3723_v49 = vsel %vm1493_vm6, %v3700_v25, -inf  ;;  %s3741_s25 = scalar_lea.sflag [#allocation14], %s6003_s13  ;;  %s5650_s26 = scalar_lea.vmem %s8798_s17, 2560 }
 0x4d4   : > { %4008 = vst.msk [vmem:[%s7422_s30 + $0x31] sm:$0xff] %vm1493_vm6, %v3710_v19  ;;  %s8796_s8 = scalar_lea.hbm %s8853_s6, %s4101_s27  ;;  %p5651_p12 = scmp.ne.s32.totalorder %s8798_s17, %s5650_s26 }
 0x4d5   : > { %v3724_v50 = vsel %vm1493_vm6, %v3701_v51, -inf  ;;  %s5756_s7 = smov [#allocation13]  }
 0x4d6   : > { %v3725_v53 = vmax.f32 %v3723_v49, %v3724_v50  ;;  %p5652_p2 = pnand %p5651_p12, %p5951_p10  ;;  %s5654_s16 = sshll.u32 %s5756_s7, 4  ;;  %s5655_s16 = int_to_ptr.vmem [resolvable:$false] %s5654_s16 }
 0x4d7   : > { %s5656_s12 = scalar_lea.vmem %s5655_s16, 5120  ;;  %p5657_p13 = scmp.lt.s32.totalorder %s8798_s17, %s5655_s16 }
 0x4d8   : > { %4013 = vst.msk [vmem:[%s7422_s30 + $0x81] sm:$0xff] %vm1493_vm6, %v3725_v53  ;;  %p5653_p1 = pneg %p5652_p2  ;;  %p5658_p9 = scmp.lt.s32.totalorder %s5656_s12, %s5650_s26 }
 0x4da   : > { %p5659_p0 = por %p5658_p9, %p5657_p13 }
 0x4dc   : > { %p5660_p11 = pnand %p5659_p0, %p5653_p1 }
 0x4de   : > { %5663 = shalt.err (!%p5660_p11)
}
 0x4df   : > { %s5664_s30 = scalar_lea.hbm %s8796_s8, 2560  ;;  %s5668_s27 = scalar_lea.hbm %s8853_s6, 5120 }
 0x4e0   : > { %p5665_p6 = scmp.ne.s32.totalorder %s8796_s8, %s5664_s30  ;;  %p5669_p3 = scmp.lt.u32.totalorder %s8796_s8, %s8853_s6 }
 0x4e1   : > { %p5670_p5 = scmp.lt.u32.totalorder %s5668_s27, %s5664_s30  ;;  %p5672_p12 = scmp.lt.u32.totalorder %s5664_s30, %s8796_s8 }
 0x4e2   : > { %p5666_p4 = pnand %p5665_p6, %p5951_p10 }
 0x4e3   : > { %p5671_p7 = por %p5670_p5, %p5669_p3 }
 0x4e4   : > { %p5667_p8 = pneg %p5666_p4 }
 0x4e5   : > { %p5673_p2 = por %p5672_p12, %p5671_p7 }
 0x4e7   : > { %p5674_p1 = pnand %p5673_p2, %p5667_p8 }
 0x4e9   : > { %5677 = shalt.err (!%p5674_p1)
}
 0x4ea   : > { %4121 = dma.vmem_to_hbm [thread:$0]  (%p5951_p10), %s8798_s17, 2560, %s8796_s8, %s3741_s25, %s5755_s19, %s5755_s19, %s5740_s29  }
 0x4eb PF: > { %s3785_s26 = sand.u32 1, %s5716_s21   ;;  %p9072_p13 = scmp.ne.s32.totalorder %s8923_s28, 0 }
 0x4ec   : > { %p9073_p9 = scmp.ge.s32.totalorder %s5728_s24, 2  ;;  %s3786_s7 = scalar_lea.sflag [#allocation5], %s3785_s26 }
 0x4ee   : > { %p4142_p0 = pnand %p9073_p9, %p9072_p13 }
 0x4f0   : > { %5707 = dma.done.wait (!%p4142_p0), %s3786_s7, 4096  }
 0x4f1   : > { %5709 = vsyncadd (!%p4142_p0), %s3786_s7, 4294963200  ;;  %s3795_s11 = scalar_lea.sflag [#allocation14], %s3785_s26 }
 0x4f2   : > { %5711 = dma.done.wait (!%p4142_p0), %s3795_s11, 2560  }
 0x4f3   : > { %5713 = vsyncadd (!%p4142_p0), %s3795_s11, 4294964736  ;;  %p25_p10 = scmp.ge.s32.totalorder %s5941_s18, 4   ;;  %s9074_s21 = smov %s5720_s22 }
 0x4f4   : > { %s9075_s22 = smov %s5724_s23  ;;  %s9076_s23 = smov %s5957_s14 }
 0x4f5   : > { %s9077_s24 = smov %s5941_s18  ;;  %27 = sbr.rel (!%p25_p10) target bundleno = 9 (0x9), region = 153 }
 0x4fc   :  { %3800 = vsyncpa [#allocation4], 1 }
 0x4fd   :  { %3802 = vsyncpa [#allocation4 + $0x1], 1 }
 0x4fe   :  { %3803 = vsyncpa [#allocation7], 1 }
 0x4ff   :  { %3804 = vsyncpa [#allocation10], 1 }
 0x500   :  { %3805 = vsyncpa [#allocation5], 1 }
 0x501   :  { %3807 = vsyncpa [#allocation5 + $0x1], 1 }
 0x502   :  { %3808 = vsyncpa [#allocation14], 1 }
 0x503   :  { %3810 = vsyncpa [#allocation14 + $0x1], 1 }

</bundles_post_ra>
